<compile_context>
chip_gen: v6e
topology: v6e:2x2x1
jax: 0.10.0
libtpu: 0.0.40
codegen_flags: <defaults>
</compile_context>

<pallas_src>
import functools

import jax
import jax.numpy as jnp
from jax import lax
from jax.experimental import pallas as pl
from jax.experimental.pallas import tpu as pltpu


def _build_patch(xpad, rows, W, cin):
    """im2col: xpad (rows+2, W+2, cin) -> (rows*W, 9*cin); tap order (dy, dx, cin)
    matches w.reshape(9*cin, cout) of an HWIO (3,3,cin,cout) kernel."""
    # Only 3 sublane-shifting slices (one per dx); dy slices are on the major dim (cheap).
    shifted = [xpad[:, dx:dx + W, :] for dx in range(3)]
    cols = []
    for dy in range(3):
        for dx in range(3):
            cols.append(shifted[dx][dy:dy + rows].reshape(rows * W, cin))
    return jnp.concatenate(cols, axis=-1)


def fused_flow_kernel(x_ref, w1_ref, b1_ref, w2_ref, b2_ref, w3_ref, b3_ref,
                      out_ref, *, H, W, tH):
    """Fused 3-layer conv stack for one (batch, row-tile) grid step.

    x_ref : (1, H+6, W+2, 6) bf16  zero-padded input image (3-row / 1-col halo)
    w*_ref: (9*Cin, Cout)    bf16  im2col-reshaped conv weights
    b*_ref: (1, Cout)        f32   biases
    out_ref: (1, tH*W, 3)    f32   [flow_x, flow_y, sigmoid(weight)] for this row tile
    """
    i = pl.program_id(1)
    row0 = i * tH
    if tH % 8 == 0:
        row0 = pl.multiple_of(row0, 8)

    R1 = tH + 4   # h1 rows needed (output rows +/- 2), recomputed halo
    R2 = tH + 2   # h2 rows needed (output rows +/- 1)

    # (tH+6, W+2, 6) window of the padded input for this row tile.
    xw = x_ref[0, pl.ds(row0, tH + 6), :, :]

    # ---- layer 1: 6 -> 64, single im2col matmul (K = 54) ----
    p1 = _build_patch(xw, R1, W, 6)                                   # (R1*W, 54) bf16
    h1 = jnp.dot(p1, w1_ref[...], preferred_element_type=jnp.float32)  # f32 accum
    h1 = jnp.maximum(h1 + b1_ref[...], 0.0).reshape(R1, W, 64)
    # Zero halo rows outside the image: they are layer-2's zero conv padding.
    g1 = (i * tH - 2) + lax.broadcasted_iota(jnp.int32, (R1, 1, 1), 0)
    h1 = jnp.where((g1 >= 0) & (g1 < H), h1, 0.0).astype(jnp.bfloat16)

    # ---- layer 2: 64 -> 64, single im2col matmul (K = 576) ----
    zc1 = jnp.zeros((R1, 1, 64), jnp.bfloat16)
    h1p = jnp.concatenate([zc1, h1, zc1], axis=1)                      # (R1, W+2, 64)
    p2 = _build_patch(h1p, R2, W, 64)                                  # (R2*W, 576)
    h2 = jnp.dot(p2, w2_ref[...], preferred_element_type=jnp.float32)
    h2 = jnp.maximum(h2 + b2_ref[...], 0.0).reshape(R2, W, 64)
    g2 = (i * tH - 1) + lax.broadcasted_iota(jnp.int32, (R2, 1, 1), 0)
    h2 = jnp.where((g2 >= 0) & (g2 < H), h2, 0.0).astype(jnp.bfloat16)

    # ---- layer 3: 64 -> 3, single im2col matmul (K = 576), sigmoid on channel 2 ----
    zc2 = jnp.zeros((R2, 1, 64), jnp.bfloat16)
    h2p = jnp.concatenate([zc2, h2, zc2], axis=1)                      # (R2, W+2, 64)
    p3 = _build_patch(h2p, tH, W, 64)                                  # (tH*W, 576)
    out = jnp.dot(p3, w3_ref[...], preferred_element_type=jnp.float32) + b3_ref[...]
    lane = lax.broadcasted_iota(jnp.int32, out.shape, 1)
    out = jnp.where(lane < 2, out, 1.0 / (1.0 + jnp.exp(-out)))        # sigmoid only on ch 2
    out_ref[0] = out.astype(out_ref.dtype)


def _choose_row_tile(H, W, vmem_budget_bytes=20 * 1024 * 1024):
    """Largest divisor of H whose fused per-tile working set fits the VMEM budget."""
    # Dominant per-output-row bytes: ~3 bf16 im2col patches (9*64 wide) + activations.
    per_row = W * (3 * 9 * 64 * 2 + 6 * 64 * 4)
    max_rows = max(1, vmem_budget_bytes // max(per_row, 1))
    tH = 1
    for d in range(1, H + 1):
        if H % d == 0 and d <= max_rows:
            tH = d
    return tH


def flow_forward_pallas(xp, w1, b1, w2, b2, w3, b3, *, H, W, tH):
    """xp: (B, H+6, W+2, 6) bf16 padded input; returns (B, H*W, 3) f32."""
    B = xp.shape[0]
    nH = H // tH
    kernel = functools.partial(fused_flow_kernel, H=H, W=W, tH=tH)
    return pl.pallas_call(
        kernel,
        out_shape=jax.ShapeDtypeStruct((B, H * W, 3), jnp.float32),
        grid=(B, nH),
        in_specs=[
            # Full padded image per batch element; index ignores the row-tile axis so the
            # DMA is elided across row tiles (image stays VMEM-resident).
            pl.BlockSpec((1, H + 6, W + 2, 6), lambda b, i: (b, 0, 0, 0)),
            pl.BlockSpec((54, 64), lambda b, i: (0, 0)),
            pl.BlockSpec((1, 64), lambda b, i: (0, 0)),
            pl.BlockSpec((576, 64), lambda b, i: (0, 0)),
            pl.BlockSpec((1, 64), lambda b, i: (0, 0)),
            pl.BlockSpec((576, 3), lambda b, i: (0, 0)),
            pl.BlockSpec((1, 3), lambda b, i: (0, 0)),
        ],
        out_specs=pl.BlockSpec((1, tH * W, 3), lambda b, i: (b, i, 0)),
        compiler_params=pltpu.CompilerParams(
            dimension_semantics=("parallel", "parallel"),
            vmem_limit_bytes=48 * 1024 * 1024,
        ),
    )(xp, w1, b1, w2, b2, w3, b3)


def init_params(key):
    """Deterministic synthetic parameters matching the PyTorch module's shapes.
    Conv weights are stored HWIO: (kh, kw, Cin, Cout)."""
    k1, k2, k3 = jax.random.split(key, 3)
    return {
        "w1": jax.random.normal(k1, (3, 3, 6, 64), jnp.float32) * 0.05,
        "b1": jnp.linspace(-0.1, 0.1, 64, dtype=jnp.float32),
        "w2": jax.random.normal(k2, (3, 3, 64, 64), jnp.float32) * 0.05,
        "b2": jnp.linspace(0.1, -0.1, 64, dtype=jnp.float32),
        "w3": jax.random.normal(k3, (3, 3, 64, 3), jnp.float32) * 0.05,
        "b3": jnp.array([0.01, -0.01, 0.0], dtype=jnp.float32),
    }


@jax.jit
def flow_model_forward(params, left_nchw, right_nchw):
    """Reproduces FlowModel.forward: NCHW inputs/outputs like PyTorch."""
    left = jnp.transpose(left_nchw, (0, 2, 3, 1))
    right = jnp.transpose(right_nchw, (0, 2, 3, 1))
    x = jnp.concatenate([left, right], axis=-1)                    # (B, H, W, 6)
    B, H, W, _ = x.shape
    tH = _choose_row_tile(H, W)

    # One pad for the whole fused stack: 3-row halo (layer 1/2/3 recompute) + 1-col halo.
    xp = jnp.pad(x, ((0, 0), (3, 3), (1, 1), (0, 0))).astype(jnp.bfloat16)

    w1 = params["w1"].reshape(9 * 6, 64).astype(jnp.bfloat16)
    w2 = params["w2"].reshape(9 * 64, 64).astype(jnp.bfloat16)
    w3 = params["w3"].reshape(9 * 64, 3).astype(jnp.bfloat16)
    b1 = params["b1"].reshape(1, 64).astype(jnp.float32)
    b2 = params["b2"].reshape(1, 64).astype(jnp.float32)
    b3 = params["b3"].reshape(1, 3).astype(jnp.float32)

    out = flow_forward_pallas(xp, w1, b1, w2, b2, w3, b3, H=H, W=W, tH=tH)
    out = out.reshape(B, H, W, 3)                                   # sigmoid already applied to ch 2
    flow = jnp.transpose(out[..., :2], (0, 3, 1, 2))                # (B, 2, H, W)
    weight = jnp.transpose(out[..., 2:], (0, 3, 1, 2))              # (B, 1, H, W)
    return flow, weight


def _reference_forward(params, left_nchw, right_nchw):
    """Pure-JAX f32 reference using lax.conv for correctness checking."""
    x = jnp.concatenate([left_nchw, right_nchw], axis=1)            # (B, 6, H, W)

    def conv(v, w, b):
        y = lax.conv_general_dilated(v, w, (1, 1), "SAME",
                                     dimension_numbers=("NCHW", "HWIO", "NCHW"))
        return y + b.reshape(1, -1, 1, 1)

    h = jax.nn.relu(conv(x, params["w1"], params["b1"]))
    h = jax.nn.relu(conv(h, params["w2"], params["b2"]))
    out = conv(h, params["w3"], params["b3"])
    return out[:, :2], jax.nn.sigmoid(out[:, 2:])


if __name__ == "__main__":
    key = jax.random.PRNGKey(0)
    kp, kl, kr = jax.random.split(key, 3)

    B, C, H, W = 2, 3, 16, 16
    left = jax.random.normal(kl, (B, C, H, W), jnp.float32)
    right = jax.random.normal(kr, (B, C, H, W), jnp.float32)
    params = init_params(kp)

    flow, weight = flow_model_forward(params, left, right)
    jax.block_until_ready((flow, weight))

    assert flow.shape == (B, 2, H, W) and weight.shape == (B, 1, H, W)

    ref_flow, ref_weight = _reference_forward(params, left, right)
    # bf16 MXU operands with f32 accumulation vs. f32 reference -> loosened tolerance.
    assert jnp.allclose(flow, ref_flow, atol=5e-2, rtol=5e-2), \
        float(jnp.max(jnp.abs(flow - ref_flow)))
    assert jnp.allclose(weight, ref_weight, atol=5e-2, rtol=5e-2), \
        float(jnp.max(jnp.abs(weight - ref_weight)))

    print("KERNEL_OK")
</pallas_src>

<mosaic_0001>
module attributes {stable_mosaic.version = 11 : i64} {
  func.func @fused_flow_kernel(%arg0: i32, %arg1: i32, %arg2: memref<1x22x18x6xbf16, #tpu.memory_space<vmem>>, %arg3: memref<54x64xbf16, #tpu.memory_space<vmem>>, %arg4: memref<1x64xf32, #tpu.memory_space<vmem>>, %arg5: memref<576x64xbf16, #tpu.memory_space<vmem>>, %arg6: memref<1x64xf32, #tpu.memory_space<vmem>>, %arg7: memref<576x3xbf16, #tpu.memory_space<vmem>>, %arg8: memref<1x3xf32, #tpu.memory_space<vmem>>, %arg9: memref<1x256x3xf32, #tpu.memory_space<vmem>>) attributes {dimension_semantics = [#tpu.dimension_semantics<parallel>, #tpu.dimension_semantics<parallel>], iteration_bounds = array<i64: 2, 1>, scalar_prefetch = 0 : i64, scratch_operands = 0 : i64, tpu.core_type = #tpu.core_type<tc>, window_params = [{transform_indices = @transform_0, window_bounds = array<i64: 1, 22, 18, 6>}, {pipeline_mode = #tpu.pipeline_mode<synchronous>, transform_indices = @transform_1, window_bounds = array<i64: 54, 64>}, {pipeline_mode = #tpu.pipeline_mode<synchronous>, transform_indices = @transform_2, window_bounds = array<i64: 1, 64>}, {pipeline_mode = #tpu.pipeline_mode<synchronous>, transform_indices = @transform_3, window_bounds = array<i64: 576, 64>}, {pipeline_mode = #tpu.pipeline_mode<synchronous>, transform_indices = @transform_4, window_bounds = array<i64: 1, 64>}, {pipeline_mode = #tpu.pipeline_mode<synchronous>, transform_indices = @transform_5, window_bounds = array<i64: 576, 3>}, {pipeline_mode = #tpu.pipeline_mode<synchronous>, transform_indices = @transform_6, window_bounds = array<i64: 1, 3>}, {transform_indices = @transform_7, window_bounds = array<i64: 1, 256, 3>}]} {
    %c16_i32 = arith.constant 16 : i32
    %0 = arith.muli %arg1, %c16_i32 : i32
    %1 = tpu.assume_multiple %0, 8 : i32
    %c0 = arith.constant 0 : index
    %2 = arith.index_cast %1 : i32 to index
    %c0_0 = arith.constant 0 : index
    %c0_1 = arith.constant 0 : index
    %3 = vector.load %arg2[%c0, %2, %c0_0, %c0_1] : memref<1x22x18x6xbf16, #tpu.memory_space<vmem>>, vector<1x22x18x6xbf16>
    %4 = vector.shape_cast %3 : vector<1x22x18x6xbf16> to vector<22x18x6xbf16>
    %5 = vector.extract_strided_slice %4 {offsets = [0, 0, 0], sizes = [22, 16, 6], strides = [1, 1, 1]} : vector<22x18x6xbf16> to vector<22x16x6xbf16>
    %6 = vector.extract_strided_slice %4 {offsets = [0, 1, 0], sizes = [22, 16, 6], strides = [1, 1, 1]} : vector<22x18x6xbf16> to vector<22x16x6xbf16>
    %7 = vector.extract_strided_slice %4 {offsets = [0, 2, 0], sizes = [22, 16, 6], strides = [1, 1, 1]} : vector<22x18x6xbf16> to vector<22x16x6xbf16>
    %8 = vector.extract_strided_slice %5 {offsets = [0, 0, 0], sizes = [20, 16, 6], strides = [1, 1, 1]} : vector<22x16x6xbf16> to vector<20x16x6xbf16>
    %9 = vector.shape_cast %8 : vector<20x16x6xbf16> to vector<320x6xbf16>
    %10 = vector.extract_strided_slice %6 {offsets = [0, 0, 0], sizes = [20, 16, 6], strides = [1, 1, 1]} : vector<22x16x6xbf16> to vector<20x16x6xbf16>
    %11 = vector.shape_cast %10 : vector<20x16x6xbf16> to vector<320x6xbf16>
    %12 = vector.extract_strided_slice %7 {offsets = [0, 0, 0], sizes = [20, 16, 6], strides = [1, 1, 1]} : vector<22x16x6xbf16> to vector<20x16x6xbf16>
    %13 = vector.shape_cast %12 : vector<20x16x6xbf16> to vector<320x6xbf16>
    %14 = vector.extract_strided_slice %5 {offsets = [1, 0, 0], sizes = [20, 16, 6], strides = [1, 1, 1]} : vector<22x16x6xbf16> to vector<20x16x6xbf16>
    %15 = vector.shape_cast %14 : vector<20x16x6xbf16> to vector<320x6xbf16>
    %16 = vector.extract_strided_slice %6 {offsets = [1, 0, 0], sizes = [20, 16, 6], strides = [1, 1, 1]} : vector<22x16x6xbf16> to vector<20x16x6xbf16>
    %17 = vector.shape_cast %16 : vector<20x16x6xbf16> to vector<320x6xbf16>
    %18 = vector.extract_strided_slice %7 {offsets = [1, 0, 0], sizes = [20, 16, 6], strides = [1, 1, 1]} : vector<22x16x6xbf16> to vector<20x16x6xbf16>
    %19 = vector.shape_cast %18 : vector<20x16x6xbf16> to vector<320x6xbf16>
    %20 = vector.extract_strided_slice %5 {offsets = [2, 0, 0], sizes = [20, 16, 6], strides = [1, 1, 1]} : vector<22x16x6xbf16> to vector<20x16x6xbf16>
    %21 = vector.shape_cast %20 : vector<20x16x6xbf16> to vector<320x6xbf16>
    %22 = vector.extract_strided_slice %6 {offsets = [2, 0, 0], sizes = [20, 16, 6], strides = [1, 1, 1]} : vector<22x16x6xbf16> to vector<20x16x6xbf16>
    %23 = vector.shape_cast %22 : vector<20x16x6xbf16> to vector<320x6xbf16>
    %24 = vector.extract_strided_slice %7 {offsets = [2, 0, 0], sizes = [20, 16, 6], strides = [1, 1, 1]} : vector<22x16x6xbf16> to vector<20x16x6xbf16>
    %25 = vector.shape_cast %24 : vector<20x16x6xbf16> to vector<320x6xbf16>
    %26 = tpu.concatenate %9, %11, %13, %15, %17, %19, %21, %23, %25 in 1 : vector<320x6xbf16>, vector<320x6xbf16>, vector<320x6xbf16>, vector<320x6xbf16>, vector<320x6xbf16>, vector<320x6xbf16>, vector<320x6xbf16>, vector<320x6xbf16>, vector<320x6xbf16> -> vector<320x54xbf16>
    %c0_2 = arith.constant 0 : index
    %c0_3 = arith.constant 0 : index
    %27 = vector.load %arg3[%c0_2, %c0_3] : memref<54x64xbf16, #tpu.memory_space<vmem>>, vector<54x64xbf16>
    %cst = arith.constant dense<0.000000e+00> : vector<320x64xf32>
    %28 = tpu.matmul %26, %27, %cst {dimension_numbers = #tpu.dot_dimension_numbers<[1], [0], [0], [1], [0, 0, 1, 1], [], []>} : vector<320x54xbf16>, vector<54x64xbf16>, vector<320x64xf32> -> vector<320x64xf32>
    %c0_4 = arith.constant 0 : index
    %c0_5 = arith.constant 0 : index
    %29 = vector.load %arg4[%c0_4, %c0_5] : memref<1x64xf32, #tpu.memory_space<vmem>>, vector<1x64xf32>
    %30 = vector.broadcast %29 : vector<1x64xf32> to vector<320x64xf32>
    %31 = arith.addf %28, %30 : vector<320x64xf32>
    %cst_6 = arith.constant 0.000000e+00 : f32
    %32 = vector.broadcast %cst_6 : f32 to vector<320x64xf32>
    %33 = arith.maximumf %31, %32 : vector<320x64xf32>
    %34 = vector.shape_cast %33 : vector<320x64xf32> to vector<20x16x64xf32>
    %c16_i32_7 = arith.constant 16 : i32
    %35 = arith.muli %arg1, %c16_i32_7 : i32
    %c2_i32 = arith.constant 2 : i32
    %36 = arith.subi %35, %c2_i32 : i32
    %37 = tpu.iota {dimensions = array<i32: 0>} : vector<20x1x1xi32>
    %38 = vector.broadcast %36 : i32 to vector<20x1x1xi32>
    %39 = arith.addi %38, %37 : vector<20x1x1xi32>
    %c0_i32 = arith.constant 0 : i32
    %40 = vector.broadcast %c0_i32 : i32 to vector<20x1x1xi32>
    %41 = arith.cmpi sge, %39, %40 : vector<20x1x1xi32>
    %c16_i32_8 = arith.constant 16 : i32
    %42 = vector.broadcast %c16_i32_8 : i32 to vector<20x1x1xi32>
    %43 = arith.cmpi slt, %39, %42 : vector<20x1x1xi32>
    %44 = arith.andi %41, %43 : vector<20x1x1xi1>
    %cst_9 = arith.constant 0.000000e+00 : f32
    %45 = vector.shape_cast %44 : vector<20x1x1xi1> to vector<20x1x1xi1>
    %46 = vector.broadcast %45 : vector<20x1x1xi1> to vector<20x16x64xi1>
    %47 = vector.broadcast %cst_9 : f32 to vector<20x16x64xf32>
    %48 = arith.select %46, %34, %47 : vector<20x16x64xi1>, vector<20x16x64xf32>
    %49 = arith.truncf %48 : vector<20x16x64xf32> to vector<20x16x64xbf16>
    %cst_10 = arith.constant 0.000000e+00 : bf16
    %50 = vector.broadcast %cst_10 : bf16 to vector<20x1x64xbf16>
    %51 = tpu.concatenate %50, %49, %50 in 1 : vector<20x1x64xbf16>, vector<20x16x64xbf16>, vector<20x1x64xbf16> -> vector<20x18x64xbf16>
    %52 = vector.extract_strided_slice %51 {offsets = [0, 0, 0], sizes = [20, 16, 64], strides = [1, 1, 1]} : vector<20x18x64xbf16> to vector<20x16x64xbf16>
    %53 = vector.extract_strided_slice %51 {offsets = [0, 1, 0], sizes = [20, 16, 64], strides = [1, 1, 1]} : vector<20x18x64xbf16> to vector<20x16x64xbf16>
    %54 = vector.extract_strided_slice %51 {offsets = [0, 2, 0], sizes = [20, 16, 64], strides = [1, 1, 1]} : vector<20x18x64xbf16> to vector<20x16x64xbf16>
    %55 = vector.extract_strided_slice %52 {offsets = [0, 0, 0], sizes = [18, 16, 64], strides = [1, 1, 1]} : vector<20x16x64xbf16> to vector<18x16x64xbf16>
    %56 = vector.shape_cast %55 : vector<18x16x64xbf16> to vector<288x64xbf16>
    %57 = vector.extract_strided_slice %53 {offsets = [0, 0, 0], sizes = [18, 16, 64], strides = [1, 1, 1]} : vector<20x16x64xbf16> to vector<18x16x64xbf16>
    %58 = vector.shape_cast %57 : vector<18x16x64xbf16> to vector<288x64xbf16>
    %59 = vector.extract_strided_slice %54 {offsets = [0, 0, 0], sizes = [18, 16, 64], strides = [1, 1, 1]} : vector<20x16x64xbf16> to vector<18x16x64xbf16>
    %60 = vector.shape_cast %59 : vector<18x16x64xbf16> to vector<288x64xbf16>
    %61 = vector.extract_strided_slice %52 {offsets = [1, 0, 0], sizes = [18, 16, 64], strides = [1, 1, 1]} : vector<20x16x64xbf16> to vector<18x16x64xbf16>
    %62 = vector.shape_cast %61 : vector<18x16x64xbf16> to vector<288x64xbf16>
    %63 = vector.extract_strided_slice %53 {offsets = [1, 0, 0], sizes = [18, 16, 64], strides = [1, 1, 1]} : vector<20x16x64xbf16> to vector<18x16x64xbf16>
    %64 = vector.shape_cast %63 : vector<18x16x64xbf16> to vector<288x64xbf16>
    %65 = vector.extract_strided_slice %54 {offsets = [1, 0, 0], sizes = [18, 16, 64], strides = [1, 1, 1]} : vector<20x16x64xbf16> to vector<18x16x64xbf16>
    %66 = vector.shape_cast %65 : vector<18x16x64xbf16> to vector<288x64xbf16>
    %67 = vector.extract_strided_slice %52 {offsets = [2, 0, 0], sizes = [18, 16, 64], strides = [1, 1, 1]} : vector<20x16x64xbf16> to vector<18x16x64xbf16>
    %68 = vector.shape_cast %67 : vector<18x16x64xbf16> to vector<288x64xbf16>
    %69 = vector.extract_strided_slice %53 {offsets = [2, 0, 0], sizes = [18, 16, 64], strides = [1, 1, 1]} : vector<20x16x64xbf16> to vector<18x16x64xbf16>
    %70 = vector.shape_cast %69 : vector<18x16x64xbf16> to vector<288x64xbf16>
    %71 = vector.extract_strided_slice %54 {offsets = [2, 0, 0], sizes = [18, 16, 64], strides = [1, 1, 1]} : vector<20x16x64xbf16> to vector<18x16x64xbf16>
    %72 = vector.shape_cast %71 : vector<18x16x64xbf16> to vector<288x64xbf16>
    %73 = tpu.concatenate %56, %58, %60, %62, %64, %66, %68, %70, %72 in 1 : vector<288x64xbf16>, vector<288x64xbf16>, vector<288x64xbf16>, vector<288x64xbf16>, vector<288x64xbf16>, vector<288x64xbf16>, vector<288x64xbf16>, vector<288x64xbf16>, vector<288x64xbf16> -> vector<288x576xbf16>
    %c0_11 = arith.constant 0 : index
    %c0_12 = arith.constant 0 : index
    %74 = vector.load %arg5[%c0_11, %c0_12] : memref<576x64xbf16, #tpu.memory_space<vmem>>, vector<576x64xbf16>
    %cst_13 = arith.constant dense<0.000000e+00> : vector<288x64xf32>
    %75 = tpu.matmul %73, %74, %cst_13 {dimension_numbers = #tpu.dot_dimension_numbers<[1], [0], [0], [1], [0, 0, 1, 1], [], []>} : vector<288x576xbf16>, vector<576x64xbf16>, vector<288x64xf32> -> vector<288x64xf32>
    %c0_14 = arith.constant 0 : index
    %c0_15 = arith.constant 0 : index
    %76 = vector.load %arg6[%c0_14, %c0_15] : memref<1x64xf32, #tpu.memory_space<vmem>>, vector<1x64xf32>
    %77 = vector.broadcast %76 : vector<1x64xf32> to vector<288x64xf32>
    %78 = arith.addf %75, %77 : vector<288x64xf32>
    %cst_16 = arith.constant 0.000000e+00 : f32
    %79 = vector.broadcast %cst_16 : f32 to vector<288x64xf32>
    %80 = arith.maximumf %78, %79 : vector<288x64xf32>
    %81 = vector.shape_cast %80 : vector<288x64xf32> to vector<18x16x64xf32>
    %c16_i32_17 = arith.constant 16 : i32
    %82 = arith.muli %arg1, %c16_i32_17 : i32
    %c1_i32 = arith.constant 1 : i32
    %83 = arith.subi %82, %c1_i32 : i32
    %84 = tpu.iota {dimensions = array<i32: 0>} : vector<18x1x1xi32>
    %85 = vector.broadcast %83 : i32 to vector<18x1x1xi32>
    %86 = arith.addi %85, %84 : vector<18x1x1xi32>
    %c0_i32_18 = arith.constant 0 : i32
    %87 = vector.broadcast %c0_i32_18 : i32 to vector<18x1x1xi32>
    %88 = arith.cmpi sge, %86, %87 : vector<18x1x1xi32>
    %c16_i32_19 = arith.constant 16 : i32
    %89 = vector.broadcast %c16_i32_19 : i32 to vector<18x1x1xi32>
    %90 = arith.cmpi slt, %86, %89 : vector<18x1x1xi32>
    %91 = arith.andi %88, %90 : vector<18x1x1xi1>
    %cst_20 = arith.constant 0.000000e+00 : f32
    %92 = vector.shape_cast %91 : vector<18x1x1xi1> to vector<18x1x1xi1>
    %93 = vector.broadcast %92 : vector<18x1x1xi1> to vector<18x16x64xi1>
    %94 = vector.broadcast %cst_20 : f32 to vector<18x16x64xf32>
    %95 = arith.select %93, %81, %94 : vector<18x16x64xi1>, vector<18x16x64xf32>
    %96 = arith.truncf %95 : vector<18x16x64xf32> to vector<18x16x64xbf16>
    %cst_21 = arith.constant 0.000000e+00 : bf16
    %97 = vector.broadcast %cst_21 : bf16 to vector<18x1x64xbf16>
    %98 = tpu.concatenate %97, %96, %97 in 1 : vector<18x1x64xbf16>, vector<18x16x64xbf16>, vector<18x1x64xbf16> -> vector<18x18x64xbf16>
    %99 = vector.extract_strided_slice %98 {offsets = [0, 0, 0], sizes = [18, 16, 64], strides = [1, 1, 1]} : vector<18x18x64xbf16> to vector<18x16x64xbf16>
    %100 = vector.extract_strided_slice %98 {offsets = [0, 1, 0], sizes = [18, 16, 64], strides = [1, 1, 1]} : vector<18x18x64xbf16> to vector<18x16x64xbf16>
    %101 = vector.extract_strided_slice %98 {offsets = [0, 2, 0], sizes = [18, 16, 64], strides = [1, 1, 1]} : vector<18x18x64xbf16> to vector<18x16x64xbf16>
    %102 = vector.extract_strided_slice %99 {offsets = [0, 0, 0], sizes = [16, 16, 64], strides = [1, 1, 1]} : vector<18x16x64xbf16> to vector<16x16x64xbf16>
    %103 = vector.shape_cast %102 : vector<16x16x64xbf16> to vector<256x64xbf16>
    %104 = vector.extract_strided_slice %100 {offsets = [0, 0, 0], sizes = [16, 16, 64], strides = [1, 1, 1]} : vector<18x16x64xbf16> to vector<16x16x64xbf16>
    %105 = vector.shape_cast %104 : vector<16x16x64xbf16> to vector<256x64xbf16>
    %106 = vector.extract_strided_slice %101 {offsets = [0, 0, 0], sizes = [16, 16, 64], strides = [1, 1, 1]} : vector<18x16x64xbf16> to vector<16x16x64xbf16>
    %107 = vector.shape_cast %106 : vector<16x16x64xbf16> to vector<256x64xbf16>
    %108 = vector.extract_strided_slice %99 {offsets = [1, 0, 0], sizes = [16, 16, 64], strides = [1, 1, 1]} : vector<18x16x64xbf16> to vector<16x16x64xbf16>
    %109 = vector.shape_cast %108 : vector<16x16x64xbf16> to vector<256x64xbf16>
    %110 = vector.extract_strided_slice %100 {offsets = [1, 0, 0], sizes = [16, 16, 64], strides = [1, 1, 1]} : vector<18x16x64xbf16> to vector<16x16x64xbf16>
    %111 = vector.shape_cast %110 : vector<16x16x64xbf16> to vector<256x64xbf16>
    %112 = vector.extract_strided_slice %101 {offsets = [1, 0, 0], sizes = [16, 16, 64], strides = [1, 1, 1]} : vector<18x16x64xbf16> to vector<16x16x64xbf16>
    %113 = vector.shape_cast %112 : vector<16x16x64xbf16> to vector<256x64xbf16>
    %114 = vector.extract_strided_slice %99 {offsets = [2, 0, 0], sizes = [16, 16, 64], strides = [1, 1, 1]} : vector<18x16x64xbf16> to vector<16x16x64xbf16>
    %115 = vector.shape_cast %114 : vector<16x16x64xbf16> to vector<256x64xbf16>
    %116 = vector.extract_strided_slice %100 {offsets = [2, 0, 0], sizes = [16, 16, 64], strides = [1, 1, 1]} : vector<18x16x64xbf16> to vector<16x16x64xbf16>
    %117 = vector.shape_cast %116 : vector<16x16x64xbf16> to vector<256x64xbf16>
    %118 = vector.extract_strided_slice %101 {offsets = [2, 0, 0], sizes = [16, 16, 64], strides = [1, 1, 1]} : vector<18x16x64xbf16> to vector<16x16x64xbf16>
    %119 = vector.shape_cast %118 : vector<16x16x64xbf16> to vector<256x64xbf16>
    %120 = tpu.concatenate %103, %105, %107, %109, %111, %113, %115, %117, %119 in 1 : vector<256x64xbf16>, vector<256x64xbf16>, vector<256x64xbf16>, vector<256x64xbf16>, vector<256x64xbf16>, vector<256x64xbf16>, vector<256x64xbf16>, vector<256x64xbf16>, vector<256x64xbf16> -> vector<256x576xbf16>
    %c0_22 = arith.constant 0 : index
    %c0_23 = arith.constant 0 : index
    %121 = vector.load %arg7[%c0_22, %c0_23] : memref<576x3xbf16, #tpu.memory_space<vmem>>, vector<576x3xbf16>
    %cst_24 = arith.constant dense<0.000000e+00> : vector<256x3xf32>
    %122 = tpu.matmul %120, %121, %cst_24 {dimension_numbers = #tpu.dot_dimension_numbers<[1], [0], [0], [1], [0, 0, 1, 1], [], []>} : vector<256x576xbf16>, vector<576x3xbf16>, vector<256x3xf32> -> vector<256x3xf32>
    %c0_25 = arith.constant 0 : index
    %c0_26 = arith.constant 0 : index
    %123 = vector.load %arg8[%c0_25, %c0_26] : memref<1x3xf32, #tpu.memory_space<vmem>>, vector<1x3xf32>
    %124 = vector.broadcast %123 : vector<1x3xf32> to vector<256x3xf32>
    %125 = arith.addf %122, %124 : vector<256x3xf32>
    %126 = tpu.iota {dimensions = array<i32: 1>} : vector<256x3xi32>
    %c2_i32_27 = arith.constant 2 : i32
    %127 = vector.broadcast %c2_i32_27 : i32 to vector<256x3xi32>
    %128 = arith.cmpi slt, %126, %127 : vector<256x3xi32>
    %cst_28 = arith.constant 0.000000e+00 : f32
    %129 = vector.broadcast %cst_28 : f32 to vector<256x3xf32>
    %130 = arith.subf %129, %125 : vector<256x3xf32>
    %131 = math.exp %130 : vector<256x3xf32>
    %cst_29 = arith.constant 1.000000e+00 : f32
    %132 = vector.broadcast %cst_29 : f32 to vector<256x3xf32>
    %133 = arith.addf %132, %131 : vector<256x3xf32>
    %cst_30 = arith.constant 1.000000e+00 : f32
    %134 = vector.broadcast %cst_30 : f32 to vector<256x3xf32>
    %135 = arith.divf %134, %133 : vector<256x3xf32>
    %136 = arith.select %128, %125, %135 : vector<256x3xi1>, vector<256x3xf32>
    %c0_31 = arith.constant 0 : index
    %c0_32 = arith.constant 0 : index
    %c0_33 = arith.constant 0 : index
    %137 = vector.load %arg9[%c0_31, %c0_32, %c0_33] : memref<1x256x3xf32, #tpu.memory_space<vmem>>, vector<1x256x3xf32>
    %138 = vector.shape_cast %137 : vector<1x256x3xf32> to vector<256x3xf32>
    %139 = vector.shape_cast %136 : vector<256x3xf32> to vector<1x256x3xf32>
    tpu.vector_store %arg9[%c0_31, %c0_32, %c0_33], %139 {strides = array<i32>} : memref<1x256x3xf32, #tpu.memory_space<vmem>>, vector<1x256x3xf32>,
    return
  }
  func.func @transform_0(%arg0: i32, %arg1: i32) -> (i32, i32, i32, i32) {
    %c0_i32 = arith.constant 0 : i32
    %c0_i32_0 = arith.constant 0 : i32
    %c0_i32_1 = arith.constant 0 : i32
    %c0_i32_2 = arith.constant 0 : i32
    return %arg0, %c0_i32, %c0_i32_0, %c0_i32_1 : i32, i32, i32, i32
  }
  func.func @transform_1(%arg0: i32, %arg1: i32) -> (i32, i32) {
    %c0_i32 = arith.constant 0 : i32
    %c0_i32_0 = arith.constant 0 : i32
    %c0_i32_1 = arith.constant 0 : i32
    return %c0_i32, %c0_i32_0 : i32, i32
  }
  func.func @transform_2(%arg0: i32, %arg1: i32) -> (i32, i32) {
    %c0_i32 = arith.constant 0 : i32
    %c0_i32_0 = arith.constant 0 : i32
    %c0_i32_1 = arith.constant 0 : i32
    return %c0_i32, %c0_i32_0 : i32, i32
  }
  func.func @transform_3(%arg0: i32, %arg1: i32) -> (i32, i32) {
    %c0_i32 = arith.constant 0 : i32
    %c0_i32_0 = arith.constant 0 : i32
    %c0_i32_1 = arith.constant 0 : i32
    return %c0_i32, %c0_i32_0 : i32, i32
  }
  func.func @transform_4(%arg0: i32, %arg1: i32) -> (i32, i32) {
    %c0_i32 = arith.constant 0 : i32
    %c0_i32_0 = arith.constant 0 : i32
    %c0_i32_1 = arith.constant 0 : i32
    return %c0_i32, %c0_i32_0 : i32, i32
  }
  func.func @transform_5(%arg0: i32, %arg1: i32) -> (i32, i32) {
    %c0_i32 = arith.constant 0 : i32
    %c0_i32_0 = arith.constant 0 : i32
    %c0_i32_1 = arith.constant 0 : i32
    return %c0_i32, %c0_i32_0 : i32, i32
  }
  func.func @transform_6(%arg0: i32, %arg1: i32) -> (i32, i32) {
    %c0_i32 = arith.constant 0 : i32
    %c0_i32_0 = arith.constant 0 : i32
    %c0_i32_1 = arith.constant 0 : i32
    return %c0_i32, %c0_i32_0 : i32, i32
  }
  func.func @transform_7(%arg0: i32, %arg1: i32) -> (i32, i32, i32) {
    %c0_i32 = arith.constant 0 : i32
    %c0_i32_0 = arith.constant 0 : i32
    return %arg0, %arg1, %c0_i32 : i32, i32, i32
  }
}

</mosaic_0001>

<bundles_post_ra>
// kernel: flow_model_forward.1
= control target key start
LH: loop header
LB: loop body
LE: loop exit
PB: predicated region body
PF: predicated region fallthrough
CT: control target
= control target key end

     0   :  { %s7379_s24 = smov 0   ;;  %s7381_s25 = smov 0   ;;  %s10832_s0 = inlined_call_operand.vmem [shape: bf16[2,22,18,6], index: 0, kind: input, shape index: {}]   ;;  %s10833_s1 = inlined_call_operand.vmem [shape: bf16[54,64], index: 1, kind: input, shape index: {}]   ;;  %s10834_s2 = inlined_call_operand.vmem [shape: f32[1,64], index: 2, kind: input, shape index: {}]   ;;  %s10835_s3 = inlined_call_operand.vmem [shape: bf16[576,64], index: 3, kind: input, shape index: {}]   ;;  %s10836_s4 = inlined_call_operand.vmem [shape: f32[1,64], index: 4, kind: input, shape index: {}]   ;;  %s10837_s5 = inlined_call_operand.vmem [shape: bf16[576,3], index: 5, kind: input, shape index: {}]   ;;  %s10838_s6 = inlined_call_operand.vmem [shape: f32[1,3], index: 6, kind: input, shape index: {}]   ;;  %s10839_s7 = inlined_call_operand.vmem [shape: f32[2,256,3], index: 7, kind: output, shape index: {}]  }
   0x1   :  { %s7383_s26 = smov 0  }
   0x2 LB: > { %s29_s27 = sadd.s32 1, %s7323_s25  ;;  %p6377_p0 = scmp.ge.s32.totalorder %s7327_s26, 1  ;;  %s7327_s26 = sphi %s7383_s26, %s17_s26   ;;  %s7323_s25 = sphi %s7381_s25, %s10921_s25   ;;  %s7319_s24 = sphi %s7379_s24, %s10920_s24  }
   0x3   : > { %p31_p1 = scmp.ge.s32.totalorder %s29_s27, 2  ;;  %p251_p2 = scmp.lt.s32.totalorder %s7327_s26, 3 }
   0x5   : > { %s10923_s27 = smov (%p31_p1, %s29_s27), 0  ;;  %p252_p3 = pnand %p6377_p0, %p251_p2 }
   0x7   : > { %255 = sbr.rel (%p252_p3) target bundleno = 1535 (0x5ff), region = 48 }
   0xc   : > { %p287_p4 = scmp.lt.s32.totalorder %s7319_s24, 1  ;;  %vm916_vm0 = vcmask 1042432   ;;  %vm917_vm1 = vcmask 1046532   ;;  %vm373_vm2 = vsmask.f32 3328  ;;  %s7329_s9 = smov 18  }
   0xd   : > { %vm374_vm3 = vsmask.f32 7440  ;;  %vm7425_vm4 = vmor %vm916_vm0, %vm917_vm1  ;;  %s7330_s10 = smov 30   ;;  %s7331_s11 = smov 12   ;;  %vm1645_vm6 = vcmask 48128   ;;  %vm1706_vm7 = vcmask 97280  }
   0xe   : > { %s10925_s24 = smov (!%p287_p4, %s7319_s24), 1  ;;  %vm7460_vm5 = vmor %vm373_vm2, %vm374_vm3  ;;  %s7332_s12 = smov 6   ;;  %vm1747_vm8 = vcmask 146432   ;;  %vm1788_vm9 = vcmask 195584   ;;  %vm1829_vm10 = vcmask 244736   ;;  %vm1870_vm11 = vcmask 293888  }
   0xf   : > { %s7037_s28 = smul.u32 264, %s10925_s24  ;;  %s7333_s15 = smov 24   ;;  %vm1911_vm12 = vcmask 343040   ;;  %vm1952_vm13 = vcmask 392192   ;;  %vm2028_vm14 = vcmask 441344   ;;  %vm2667_vm15 = vcmask 1040384  }
  0x10   : > { %s7334_s16 = smov 36   ;;  %s7335_s17 = smov 42   ;;  %vm2710_vm2 = vsmask.f32 7424  ;;  %vm2963_vm3 = vcmask 1046528  }
  0x11   : > { %s7403_s8 = scalar_lea.vmem %s10832_s0, %s7037_s28  ;;  %s7336_s18 = smov 48  }
  0x12   : > { %v7406_v0 = vld [vmem:[%s7403_s8 + $0x18] sm:$0xf]  ;;  %v7409_v1 = vld [vmem:[%s7403_s8 + $0x1c] sm:$0xf]  ;;  %v310_v2 = vld [vmem:[%s7403_s8 + $0xc] sm:$0xf] }
  0x13   : > { %v438_v3 = vshrl.u32 %v7409_v1, 16  ;;  %v7415_v4 = vcombine.low %v7406_v0, %v7409_v1  ;;  %v425_v5 = vshrl.u32 %v7406_v0, 16  ;;  %v428_v6 = vshll.u32 %v7406_v0, 16  ;;  %v311_v7 = vld [vmem:[%s7403_s8 + $0x10] sm:$0xf]  ;;  %s7338_s29 = smov 64  }
  0x14   : > { %v410_v8 = vshll.u32 %v311_v7, 16  ;;  %v414_v9 = vshrl.u32 %v311_v7, 16  ;;  %v7420_v10 = vcombine.low %v310_v2, %v311_v7  ;;  %v401_v11 = vshrl.u32 %v310_v2, 16  ;;  %v312_v12 = vld [vmem:[%s7403_s8 + $0x14] sm:$0x1] }
  0x15   : > { %1392 = vrot.lane.b32.xlu1 %v7415_v4, %s7329_s9  ;;  %v404_v14 = vshll.u32 %v310_v2, 16  ;;  %v6382_v15 = vrot.slane %v310_v2, 9  ;;  %v928_v16 = vrot.slane %v311_v7, 5  ;;  %v931_v17 = vrot.slane %v312_v12, 5  ;;  %v7432_v18 = vld [vmem:[%s7403_s8] sm:$0xf] }
  0x16   : > { %v416_v19 = vrot.slane %v414_v9, 4  ;;  %1390 = vrot.lane.b32.xlu0 %v7420_v10, %s7329_s9  ;;  %v403_v20 = vrot.slane %v401_v11, 4  ;;  %v7437_v21 = vld [vmem:[%s7403_s8 + $0x4] sm:$0xf]  ;;  %v309_v22 = vld [vmem:[%s7403_s8 + $0x8] sm:$0x1] }
  0x17   : > { %v406_v23 = vrot.slane %v404_v14, 5  ;;  %v929_v24 = vsel %vm7425_vm4, %v6382_v15, %v928_v16  ;;  %v930_v25 = vrot.slane %v928_v16, 4  ;;  %v6381_v26 = vrot.slane %v7432_v18, 9  ;;  %v315_v35 = vld [vmem:[%s7403_s8 + $0x20] sm:$0x1] }
  0x18   : > { %v921_v27 = vrot.slane %v7437_v21, 5  ;;  %v924_v28 = vrot.slane %v309_v22, 5  ;;  %v377_v29 = vshrl.u32 %v7432_v18, 16  ;;  %v380_v30 = vshll.u32 %v7432_v18, 16  ;;  %v7474_v7 = vld [vmem:[%s7403_s8 + $0x24] sm:$0xf] }
  0x19   : > { %v932_v31 = vsel %vm7425_vm4, %v930_v25, %v931_v17  ;;  %v386_v32 = vshll.u32 %v7437_v21, 16  ;;  %v390_v33 = vshrl.u32 %v7437_v21, 16  ;;  %v396_v34 = vshll.u32 %v309_v22, 16 }
  0x1a   : > { %v6444_v36 = vcombine.low %v929_v24, %v932_v31  ;;  %v922_v37 = vsel %vm7425_vm4, %v6381_v26, %v921_v27  ;;  %v923_v38 = vrot.slane %v921_v27, 4  ;;  %v379_v39 = vrot.slane %v377_v29, 4  ;;  %v318_v26 = vld [vmem:[%s7403_s8 + $0x2c] sm:$0x1] }
  0x1b   : > { %v382_v40 = vrot.slane %v380_v30, 5  ;;  %v388_v41 = vrot.slane %v386_v32, 5  ;;  %v392_v42 = vrot.slane %v390_v33, 4  ;;  %v398_v43 = vrot.slane %v396_v34, 5 }
  0x1c   : > { %1476 = vrot.lane.b32.xlu0 %v6444_v36, %s7330_s10  ;;  %v925_v44 = vsel %vm7425_vm4, %v923_v38, %v924_v28  ;;  %v6383_v45 = vrot.slane %v7406_v0, 9  ;;  %v935_v46 = vrot.slane %v7409_v1, 5  ;;  %v938_v47 = vrot.slane %v315_v35, 5  ;;  %v7502_v31 = vld [vmem:[%s10833_s1 + $0x18] ss:$0 sps:$4 sm:$0x77]  }
  0x1d   : > { %v6443_v48 = vcombine.low %v922_v37, %v925_v44  ;;  %v383_v49 = vor.u32 %v382_v40, %v379_v39  ;;  %v393_v50 = vor.u32 %v392_v42, %v388_v41  ;;  %v407_v51 = vor.u32 %v406_v23, %v403_v20  ;;  %7035 = vmatprep.subr.msk.bf16.mxu0 %vm916_vm0, %v7502_v31 }
  0x1e   : > { %v936_v53 = vsel %vm7425_vm4, %v6383_v45, %v935_v46  ;;  %v937_v54 = vrot.slane %v935_v46, 4  ;;  %v412_v55 = vrot.slane %v410_v8, 5  ;;  %v420_v56 = vshll.u32 %v312_v12, 16  ;;  %v7485_v12 = vld [vmem:[%s7403_s8 + $0x28] sm:$0xf]  ;;  %7036 = vmatprep.subr.msk.bf16.mxu1 %vm916_vm0, %v7502_v31 }
  0x1f   : > { %1347 = vrot.lane.b32.xlu1 %v6443_v48, %s7331_s11  ;;  %v384_v57 = vrot.slane %v383_v49, 4  ;;  %v394_v58 = vrot.slane %v393_v50, 4  ;;  %v408_v59 = vrot.slane %v407_v51, 4  ;;  %v427_v60 = vrot.slane %v425_v5, 4  ;;  %v319_v48 = vld [vmem:[%s7403_s8 + $0x30] sm:$0xf] }
  0x20   : > { %v939_v61 = vsel %vm7425_vm4, %v937_v54, %v938_v47  ;;  %v417_v62 = vor.u32 %v416_v19, %v412_v55  ;;  %v422_v63 = vrot.slane %v420_v56, 5  ;;  %v430_v2 = vrot.slane %v428_v6, 5  ;;  %v320_v49 = vld [vmem:[%s7403_s8 + $0x34] sm:$0xf] }
  0x21   : > { %v389_v8 = vsel %vm7460_vm5, %v384_v57, %v388_v41  ;;  %v399_v9 = vsel %vm7460_vm5, %v394_v58, %v398_v43  ;;  %v7480_v11 = vcombine.low %v936_v53, %v939_v61  ;;  %v413_v5 = vsel %vm7460_vm5, %v408_v59, %v412_v55  ;;  %v321_v61 = vld [vmem:[%s7403_s8 + $0x38] sm:$0x1] }
  0x22   : > { %v6423_v14 = vcombine.low %v389_v8, %v399_v9  ;;  %v418_v15 = vrot.slane %v417_v62, 4  ;;  %v431_v0 = vor.u32 %v430_v2, %v427_v60  ;;  %v434_v6 = vshll.u32 %v7409_v1, 16 }
  0x23   : > { %1349 = vrot.lane.b32.xlu1 %v6444_v36, %s7331_s11  ;;  %v440_v16 = vrot.slane %v438_v3, 4  ;;  %v444_v17 = vshll.u32 %v315_v35, 16  ;;  %v449_v19 = vshrl.u32 %v7474_v7, 16  ;;  %v452_v20 = vshll.u32 %v7474_v7, 16 }
  0x24   : > { %1247 = vrot.lane.b32.xlu0 %v6423_v14, %s7332_s12  ;;  %v423_v22 = vsel %vm7460_vm5, %v418_v15, %v422_v63  ;;  %v432_v23 = vrot.slane %v431_v0, 4  ;;  %v436_v24 = vrot.slane %v434_v6, 5  ;;  %v462_v25 = vshrl.u32 %v7485_v12, 16  ;;  %v322_v14 = vld [vmem:[%s7403_s8 + $0x3c] sm:$0xf] }
  0x25   : > { %v6424_v27 = vcombine.low %v413_v5, %v423_v22  ;;  %v451_v28 = vrot.slane %v449_v19, 4  ;;  %v446_v3 = vrot.slane %v444_v17, 5  ;;  %v454_v29 = vrot.slane %v452_v20, 5  ;;  %v323_v15 = vld [vmem:[%s7403_s8 + $0x40] sm:$0xf] }
  0x26   : > { %v441_v1 = vor.u32 %v440_v16, %v436_v24  ;;  %v458_v30 = vshll.u32 %v7485_v12, 16  ;;  %v464_v32 = vrot.slane %v462_v25, 4  ;;  %v468_v33 = vshll.u32 %v318_v26, 16 }
  0x27   : > { %1478 = vrot.lane.b32.xlu1 %v7480_v11, %s7330_s10  ;;  %v437_v34 = vsel %vm7460_vm5, %v432_v23, %v436_v24  ;;  %v455_v36 = vor.u32 %v454_v29, %v451_v28  ;;  %v942_v44 = vrot.slane %v7485_v12, 5  ;;  %v7520_v45 = vcombine.low %v7474_v7, %v7485_v12 }
  0x28   : > { %1249 = vrot.lane.b32.xlu0 %v6424_v27, %s7332_s12  ;;  %v442_v35 = vrot.slane %v441_v1, 4  ;;  %v460_v37 = vrot.slane %v458_v30, 5  ;;  %v470_v41 = vrot.slane %v468_v33, 5  ;;  %v6384_v50 = vrot.slane %v7474_v7, 9  ;;  %v324_v33 = vld [vmem:[%s7403_s8 + $0x44] sm:$0x1] }
  0x29   : > { %v456_v39 = vrot.slane %v455_v36, 4  ;;  %v944_v51 = vrot.slane %v942_v44, 4  ;;  %v945_v53 = vrot.slane %v318_v26, 5  ;;  %v473_v55 = vshrl.u32 %v319_v48, 16 }
  0x2a   : > { %v447_v38 = vsel %vm7460_vm5, %v442_v35, %v446_v3  ;;  %v465_v40 = vor.u32 %v464_v32, %v460_v37  ;;  %v476_v56 = vshll.u32 %v319_v48, 16  ;;  %v486_v57 = vshrl.u32 %v320_v49, 16 }
  0x2b   : > { %v6425_v42 = vcombine.low %v437_v34, %v447_v38  ;;  %v461_v46 = vsel %vm7460_vm5, %v456_v39, %v460_v37  ;;  %v482_v58 = vshll.u32 %v320_v49, 16  ;;  %v943_v59 = vsel %vm7425_vm4, %v6384_v50, %v942_v44 }
  0x2c   : > { %1433 = vrot.lane.b32.xlu0 %v6424_v27, %s7333_s15  ;;  %v466_v43 = vrot.slane %v465_v40, 4  ;;  %v946_v60 = vsel %vm7425_vm4, %v944_v51, %v945_v53  ;;  %v475_v62 = vrot.slane %v473_v55, 4  ;;  %v478_v63 = vrot.slane %v476_v56, 5  ;;  %v7088_v55 = vld [vmem:[%s10833_s1 + $0x10] sm:$0xff]  }
  0x2d   : > { %1435 = vrot.lane.b32.xlu1 %v6425_v42, %s7333_s15  ;;  %v484_v2 = vrot.slane %v482_v58, 5  ;;  %v488_v7 = vrot.slane %v486_v57, 4  ;;  %v6446_v8 = vcombine.low %v943_v59, %v946_v60  ;;  %v492_v9 = vshll.u32 %v321_v61, 16 }
  0x2e   : > { %v471_v47 = vsel %vm7460_vm5, %v466_v43, %v470_v41  ;;  %v479_v5 = vor.u32 %v478_v63, %v475_v62  ;;  %v949_v6 = vrot.slane %v320_v49, 5  ;;  %v497_v16 = vshrl.u32 %v322_v14, 16 }
  0x2f   : > { %v6426_v54 = vcombine.low %v461_v46, %v471_v47  ;;  %v489_v12 = vor.u32 %v488_v7, %v484_v2  ;;  %v494_v0 = vrot.slane %v492_v9, 5  ;;  %v500_v17 = vshll.u32 %v322_v14, 16  ;;  %v7578_v47 = vld [vmem:[%s7403_s8 + $0x48] sm:$0xf]  ;;  %v327_v7 = vld [vmem:[%s7403_s8 + $0x50] sm:$0x1] }
  0x30   : > { %1519 = vrot.lane.b32.xlu0 %v7415_v4, %s7334_s16  ;;  %v480_v19 = vrot.slane %v479_v5, 4  ;;  %v510_v22 = vshrl.u32 %v323_v15, 16  ;;  %v506_v23 = vshll.u32 %v323_v15, 16  ;;  %v7549_v24 = vcombine.low %v319_v48, %v320_v49 }
  0x31   : > { %1521 = vrot.lane.b32.xlu1 %v7520_v45, %s7334_s16  ;;  %v490_v20 = vrot.slane %v489_v12, 4  ;;  %v6385_v25 = vrot.slane %v319_v48, 9  ;;  %v951_v26 = vrot.slane %v949_v6, 4  ;;  %v952_v27 = vrot.slane %v321_v61, 5 }
  0x32   : > { %v499_v28 = vrot.slane %v497_v16, 4  ;;  %v502_v1 = vrot.slane %v500_v17, 5  ;;  %v485_v3 = vsel %vm7460_vm5, %v480_v19, %v484_v2  ;;  %v508_v30 = vrot.slane %v506_v23, 5  ;;  %v7090_v2 = vld [vmem:[%s10833_s1 + $0x8] sm:$0xff]   ;;  %v329_v17 = vld [vmem:[%s7403_s8 + $0x58] sm:$0xf] }
  0x33   : > { %v495_v29 = vsel %vm7460_vm5, %v490_v20, %v494_v0  ;;  %v512_v32 = vrot.slane %v510_v22, 4  ;;  %v950_v34 = vsel %vm7425_vm4, %v6385_v25, %v949_v6  ;;  %v953_v35 = vsel %vm7425_vm4, %v951_v26, %v952_v27  ;;  %v7623_v6 = vld [vmem:[%s7403_s8 + $0x54] sm:$0xf] }
  0x34   : > { %1562 = vrot.lane.b32.xlu0 %v6425_v42, %s7335_s17  ;;  %v503_v36 = vor.u32 %v502_v1, %v499_v28  ;;  %v516_v38 = vshll.u32 %v324_v33, 16  ;;  %v7570_v39 = vcombine.low %v950_v34, %v953_v35  ;;  %v956_v43 = vrot.slane %v323_v15, 5 }
  0x35   : > { %1564 = vrot.lane.b32.xlu1 %v6426_v54, %s7335_s17  ;;  %v513_v37 = vor.u32 %v512_v32, %v508_v30  ;;  %v7575_v44 = vcombine.low %v322_v14, %v323_v15  ;;  %v6386_v46 = vrot.slane %v322_v14, 9  ;;  %v6403_v48 = vcombine.low %v7432_v18, %v7437_v21  ;;  %v7091_v14 = vld [vmem:[%s10833_s1] sm:$0xff]  }
  0x36   : > { %v504_v40 = vrot.slane %v503_v36, 4  ;;  %v958_v51 = vrot.slane %v956_v43, 4  ;;  %v959_v53 = vrot.slane %v324_v33, 5  ;;  %v521_v57 = vshrl.u32 %v7578_v47, 16 }
  0x37   : > { %v514_v41 = vrot.slane %v513_v37, 4  ;;  %v524_v58 = vshll.u32 %v7578_v47, 16  ;;  %v2071_v59 = vsel %vm916_vm0, %v7502_v31, 0  ;;  %v957_v60 = vsel %vm7425_vm4, %v6386_v46, %v956_v43  ;;  %v330_v37 = vld [vmem:[%s7403_s8 + $0x5c] sm:$0x1] }
  0x38   : > { %1605 = vrot.lane.b32.xlu0 %v7480_v11, %s7336_s18  ;;  %v509_v49 = vsel %vm7460_vm5, %v504_v40, %v508_v30  ;;  %v960_v61 = vsel %vm7425_vm4, %v958_v51, %v959_v53  ;;  %6896 = vmatpush3.bf16.msra.mxu0 %v2071_v59  ;;  %v540_v15 = vshll.u32 %v327_v7, 16  ;;  %v545_v23 = vshrl.u32 %v7623_v6, 16 }
  0x39   : > { %1251 = vrot.lane.b32.xlu1 %v6425_v42, %s7332_s12  ;;  %v518_v42 = vrot.slane %v516_v38, 5  ;;  %7031 = vmatpush3.bf16.msra.mxu1 %v2071_v59  ;;  %v6448_v31 = vcombine.low %v957_v60, %v960_v61  ;;  %v526_v9 = vrot.slane %v524_v58, 5  ;;  %v548_v25 = vshll.u32 %v7623_v6, 16  ;;  %v331_v59 = vld [vmem:[%s7403_s8 + $0x60] sm:$0xf] }
  0x3a   : > { %6897 = vmatprep.subr.bf16.mxu0 %v7088_v55  ;;  %7028 = vmatprep.subr.bf16.mxu1 %v7088_v55  ;;  %v542_v19 = vrot.slane %v540_v15, 5  ;;  %v558_v26 = vshrl.u32 %v329_v17, 16  ;;  %v554_v28 = vshll.u32 %v329_v17, 16  ;;  %v966_v30 = vrot.slane %v327_v7, 5  ;;  %v332_v60 = vld [vmem:[%s7403_s8 + $0x64] sm:$0xf] }
  0x3b   : > { %v519_v50 = vsel %vm7460_vm5, %v514_v41, %v518_v42  ;;  %v547_v32 = vrot.slane %v545_v23, 4  ;;  %v550_v33 = vrot.slane %v548_v25, 5  ;;  %v564_v43 = vshll.u32 %v330_v37, 16 }
  0x3c   : > { %1607 = vrot.lane.b32.xlu0 %v6446_v8, %s7336_s18  ;;  %v7596_v56 = vcombine.low %v509_v49, %v519_v50  ;;  %6898 = vmatpush3.bf16.msra.mxu0 %v7088_v55  ;;  %v556_v35 = vrot.slane %v554_v28, 5  ;;  %v560_v36 = vrot.slane %v558_v26, 4  ;;  %v970_v51 = vrot.slane %v329_v17, 5 }
  0x3d   : > { %1253 = vrot.lane.b32.xlu1 %v6426_v54, %s7332_s12  ;;  %7032 = vmatpush3.bf16.msra.mxu1 %v7088_v55  ;;  %v551_v41 = vor.u32 %v550_v33, %v547_v32  ;;  %v566_v50 = vrot.slane %v564_v43, 5  ;;  %v7660_v53 = vcombine.low %v7623_v6, %v329_v17  ;;  %v973_v58 = vrot.slane %v330_v37, 5  ;;  %v335_v17 = vld [vmem:[%s7403_s8 + $0x70] sm:$0xf] }
  0x3e   : > { %6899 = vmatprep.subr.bf16.mxu0 %v7090_v2  ;;  %7029 = vmatprep.subr.bf16.mxu1 %v7090_v2  ;;  %v561_v42 = vor.u32 %v560_v36, %v556_v35  ;;  %v582_v7 = vshrl.u32 %v332_v60, 16  ;;  %vm2668_vm0 = vsmask.f32 256 }
  0x3f   : > { %vm8406_vm1 = vmand %vm2667_vm15, %vm2668_vm0 }
  0x40   : > { %1351 = vrot.lane.b32.xlu0 %v7480_v11, %s7331_s11  ;;  %v7561_v11 = vcombine.low %v485_v3, %v495_v29  ;;  %6900 = vmatpush3.bf16.msra.mxu0 %v7090_v2  ;;  %v6387_v3 = vrot.slane %v7578_v47, 9  ;;  %v562_v49 = vrot.slane %v561_v42, 4 }
  0x41   : > { %1353 = vrot.lane.b32.xlu1 %v6446_v8, %s7331_s11  ;;  %7033 = vmatpush3.bf16.msra.mxu1 %v7090_v2 }
  0x42   : > { %6901 = vmatprep.subr.bf16.mxu0 %v7091_v14  ;;  %7030 = vmatprep.subr.bf16.mxu1 %v7091_v14 }
  0x44   : > { %1394 = vrot.lane.b32.xlu0 %v7520_v45, %s7329_s9  ;;  %6902 = vmatpush3.bf16.msra.mxu0 %v7091_v14 }
  0x45   : > { %1396 = vrot.lane.b32.xlu1 %v7549_v24, %s7329_s9  ;;  %7034 = vmatpush3.bf16.msra.mxu1 %v7091_v14 }
  0x48   : > { %1437 = vrot.lane.b32.xlu0 %v6426_v54, %s7333_s15  ;;  %v7587_v54 = vld [vmem:[%s7403_s8 + $0x4c] sm:$0xf] }
  0x49   : > { %1439 = vrot.lane.b32.xlu1 %v7561_v11, %s7333_s15  ;;  %v534_v62 = vshrl.u32 %v7587_v54, 16  ;;  %v530_v63 = vshll.u32 %v7587_v54, 16  ;;  %v963_v20 = vrot.slane %v7587_v54, 5  ;;  %v7637_v1 = vcombine.low %v7578_v47, %v7587_v54 }
  0x4a   : > { %v552_v47 = vrot.slane %v551_v41, 4  ;;  %v6388_v54 = vrot.slane %v7623_v6, 9 }
  0x4b   : > { %v532_v5 = vrot.slane %v530_v63, 5  ;;  %v536_v12 = vrot.slane %v534_v62, 4  ;;  %v965_v29 = vrot.slane %v963_v20, 4  ;;  %v569_v62 = vshrl.u32 %v331_v59, 16 }
  0x4c   : > { %1480 = vrot.lane.b32.xlu0 %v6446_v8, %s7330_s10  ;;  %v523_v8 = vrot.slane %v521_v57, 4  ;;  %v557_v55 = vsel %vm7460_vm5, %v552_v47, %v556_v35  ;;  %v972_v57 = vrot.slane %v970_v51, 4  ;;  %v572_v63 = vshll.u32 %v331_v59, 16 }
  0x4d   : > { %1482 = vrot.lane.b32.xlu1 %v7570_v39, %s7330_s10  ;;  %v537_v16 = vor.u32 %v536_v12, %v532_v5  ;;  %v967_v40 = vsel %vm7425_vm4, %v965_v29, %v966_v30  ;;  %v971_v2 = vsel %vm7425_vm4, %v6388_v54, %v970_v51  ;;  %v571_v12 = vrot.slane %v569_v62, 4 }
  0x4e   : > { %v527_v0 = vor.u32 %v526_v9, %v523_v8  ;;  %v578_v8 = vshll.u32 %v332_v60, 16  ;;  %v574_v14 = vrot.slane %v572_v63, 5  ;;  %v602_v29 = vshll.u32 %v335_v17, 16 }
  0x4f   : > { %v538_v27 = vrot.slane %v537_v16, 4  ;;  %v7682_v16 = vld [vmem:[%s7403_s8 + $0x6c] sm:$0xf]  ;;  %v6389_v30 = vrot.slane %v331_v59, 9 }
  0x50   : > { %1523 = vrot.lane.b32.xlu0 %v7549_v24, %s7334_s16  ;;  %v528_v22 = vrot.slane %v527_v0, 4  ;;  %v580_v15 = vrot.slane %v578_v8, 5  ;;  %v584_v0 = vrot.slane %v582_v7, 4  ;;  %v593_v25 = vshrl.u32 %v7682_v16, 16  ;;  %v7730_v7 = vld [vmem:[%s7403_s8 + $0x7c] sm:$0xf] }
  0x51   : > { %1525 = vrot.lane.b32.xlu1 %v7575_v44, %s7334_s16  ;;  %v543_v34 = vsel %vm7460_vm5, %v538_v27, %v542_v19  ;;  %v575_v19 = vor.u32 %v574_v14, %v571_v12  ;;  %v596_v26 = vshll.u32 %v7682_v16, 16 }
  0x52   : > { %v595_v35 = vrot.slane %v593_v25, 4  ;;  %v339_v25 = vld [vmem:[%s7403_s8 + $0x80] sm:$0x1] }
  0x53   : > { %v576_v27 = vrot.slane %v575_v19, 4  ;;  %v598_v36 = vrot.slane %v596_v26, 5 }
  0x54   : > { %1566 = vrot.lane.b32.xlu0 %v7561_v11, %s7335_s17 }
  0x55   : > { %1568 = vrot.lane.b32.xlu1 %v7596_v56, %s7335_s17  ;;  %v581_v37 = vsel %vm7460_vm5, %v576_v27, %v580_v15 }
  0x58   : > { %1609 = vrot.lane.b32.xlu0 %v7570_v39, %s7336_s18 }
  0x59   : > { %1611 = vrot.lane.b32.xlu1 %v6448_v31, %s7336_s18 }
  0x5c   : > { %1255 = vrot.lane.b32.xlu0 %v7561_v11, %s7332_s12  ;;  %v533_v11 = vsel %vm7460_vm5, %v528_v22, %v532_v5  ;;  %v333_v5 = vld [vmem:[%s7403_s8 + $0x68] sm:$0x1]  ;;  %v977_v22 = vrot.slane %v332_v60, 5 }
  0x5d   : > { %1257 = vrot.lane.b32.xlu1 %v7596_v56, %s7332_s12  ;;  %v6429_v38 = vcombine.low %v533_v11, %v543_v34  ;;  %v588_v6 = vshll.u32 %v333_v5, 16  ;;  %v980_v33 = vrot.slane %v333_v5, 5  ;;  %v7692_v11 = vcombine.low %v331_v59, %v332_v60  ;;  %v336_v34 = vld [vmem:[%s7403_s8 + $0x74] sm:$0x1] }
  0x5e   : > { %v979_v32 = vrot.slane %v977_v22, 4  ;;  %v978_v42 = vsel %vm7425_vm4, %v6389_v30, %v977_v22  ;;  %v7719_v59 = vcombine.low %v7682_v16, %v335_v17  ;;  %v6390_v60 = vrot.slane %v7682_v16, 9 }
  0x5f   : > { %v590_v23 = vrot.slane %v588_v6, 5  ;;  %v630_v6 = vshrl.u32 %v7730_v7, 16  ;;  %v626_v16 = vshll.u32 %v7730_v7, 16 }
  0x60   : > { %1355 = vrot.lane.b32.xlu0 %v7570_v39, %s7331_s11  ;;  %v964_v39 = vsel %vm7425_vm4, %v6387_v3, %v963_v20  ;;  %v585_v20 = vor.u32 %v584_v0, %v580_v15  ;;  %v606_v3 = vshrl.u32 %v335_v17, 16  ;;  %v981_v43 = vsel %vm7425_vm4, %v979_v32, %v980_v33  ;;  %v7761_v33 = vld [vmem:[%s7403_s8 + $0x84] sm:$0xf] }
  0x61   : > { %1357 = vrot.lane.b32.xlu1 %v6448_v31, %s7331_s11  ;;  %v6449_v46 = vcombine.low %v964_v39, %v967_v40  ;;  %v604_v39 = vrot.slane %v602_v29, 5  ;;  %v628_v26 = vrot.slane %v626_v16, 5  ;;  %v632_v27 = vrot.slane %v630_v6, 4 }
  0x62   : > { %v586_v28 = vrot.slane %v585_v20, 4  ;;  %v608_v40 = vrot.slane %v606_v3, 4  ;;  %v636_v29 = vshll.u32 %v339_v25, 16 }
  0x63   : > { %v633_v32 = vor.u32 %v632_v27, %v628_v26 }
  0x64   : > { %1398 = vrot.lane.b32.xlu0 %v7575_v44, %s7329_s9  ;;  %v609_v47 = vor.u32 %v608_v40, %v604_v39 }
  0x65   : > { %1400 = vrot.lane.b32.xlu1 %v7637_v1, %s7329_s9 }
  0x68   : > { %1441 = vrot.lane.b32.xlu0 %v7596_v56, %s7333_s15  ;;  %v567_v56 = vsel %vm7460_vm5, %v562_v49, %v566_v50  ;;  %v612_v49 = vshll.u32 %v336_v34, 16  ;;  %v7709_v50 = vcombine.low %v978_v42, %v981_v43  ;;  %v634_v43 = vrot.slane %v633_v32, 4 }
  0x69   : > { %1443 = vrot.lane.b32.xlu1 %v6429_v38, %s7333_s15  ;;  %v6430_v61 = vcombine.low %v557_v55, %v567_v56  ;;  %v610_v55 = vrot.slane %v609_v47, 4 }
  0x6a   : > { %v614_v56 = vrot.slane %v612_v49, 5 }
  0x6c   : > { %1484 = vrot.lane.b32.xlu0 %v6448_v31, %s7330_s10  ;;  %v974_v31 = vsel %vm7425_vm4, %v972_v57, %v973_v58  ;;  %v984_v57 = vrot.slane %v335_v17, 5  ;;  %v615_v62 = vsel %vm7460_vm5, %v610_v55, %v614_v56 }
  0x6d   : > { %1486 = vrot.lane.b32.xlu1 %v6449_v46, %s7330_s10  ;;  %v6450_v9 = vcombine.low %v971_v2, %v974_v31  ;;  %v987_v2 = vrot.slane %v336_v34, 5  ;;  %v7727_v31 = vld [vmem:[%s7403_s8 + $0x78] sm:$0xf]  ;;  %v7764_v34 = vld [vmem:[%s7403_s8 + $0x88] sm:$0xf] }
  0x6e   : > { %v986_v63 = vrot.slane %v984_v57, 4  ;;  %v617_v12 = vshrl.u32 %v7727_v31, 16  ;;  %v620_v14 = vshll.u32 %v7727_v31, 16  ;;  %v985_v15 = vsel %vm7425_vm4, %v6390_v60, %v984_v57 }
  0x6f   : > { %v7784_v18 = vcombine.low %v7727_v31, %v7730_v7  ;;  %v6391_v21 = vrot.slane %v7727_v31, 9  ;;  %v342_v31 = vld [vmem:[%s7403_s8 + $0x8c] sm:$0x1] }
  0x70   : > { %1527 = vrot.lane.b32.xlu0 %v7637_v1, %s7334_s16  ;;  %v988_v0 = vsel %vm7425_vm4, %v986_v63, %v987_v2  ;;  %v619_v20 = vrot.slane %v617_v12, 4  ;;  %v622_v22 = vrot.slane %v620_v14, 5 }
  0x71   : > { %1529 = vrot.lane.b32.xlu1 %v7660_v53, %s7334_s16  ;;  %v7751_v19 = vcombine.low %v985_v15, %v988_v0 }
  0x72   : > { %v623_v3 = vor.u32 %v622_v22, %v619_v20 }
  0x74   : > { %1570 = vrot.lane.b32.xlu0 %v6429_v38, %s7335_s17 }
  0x75   : > { %1572 = vrot.lane.b32.xlu1 %v6430_v61, %s7335_s17 }
  0x78   : > { %1613 = vrot.lane.b32.xlu0 %v6449_v46, %s7336_s18 }
  0x79   : > { %1615 = vrot.lane.b32.xlu1 %v6450_v9, %s7336_s18 }
  0x7c   : > { %1259 = vrot.lane.b32.xlu0 %v6429_v38, %s7332_s12  ;;  %v591_v38 = vsel %vm7460_vm5, %v586_v28, %v590_v23 }
  0x7d   : > { %1261 = vrot.lane.b32.xlu1 %v6430_v61, %s7332_s12  ;;  %v6431_v41 = vcombine.low %v581_v37, %v591_v38  ;;  %v638_v37 = vrot.slane %v636_v29, 5  ;;  %v641_v38 = vshrl.u32 %v7761_v33, 16 }
  0x7f   : > { %v643_v56 = vrot.slane %v641_v38, 4  ;;  %v6392_v38 = vrot.slane %v7761_v33, 9 }
  0x80   : > { %1359 = vrot.lane.b32.xlu0 %v6449_v46, %s7331_s11  ;;  %v599_v46 = vor.u32 %v598_v36, %v595_v35  ;;  %v991_v35 = vrot.slane %v7730_v7, 5  ;;  %v624_v36 = vrot.slane %v623_v3, 4 }
  0x81   : > { %1361 = vrot.lane.b32.xlu1 %v6450_v9, %s7331_s11 }
  0x82   : > { %v600_v54 = vrot.slane %v599_v46, 4  ;;  %v650_v46 = vshll.u32 %v7764_v34, 16  ;;  %v629_v55 = vsel %vm7460_vm5, %v624_v36, %v628_v26  ;;  %v992_v14 = vsel %vm7425_vm4, %v6391_v21, %v991_v35 }
  0x83   : > { %v998_v26 = vrot.slane %v7764_v34, 5 }
  0x84   : > { %1402 = vrot.lane.b32.xlu0 %v7660_v53, %s7329_s9 }
  0x85   : > { %1404 = vrot.lane.b32.xlu1 %v7692_v11, %s7329_s9 }
  0x87   : > { %v7713_v58 = vpop.permute.xlu1 %1392 }
  0x88   : > { %1445 = vrot.lane.b32.xlu0 %v6430_v61, %s7333_s15  ;;  %v7711_v51 = vpop.permute.xlu0 %1390  ;;  %v605_v61 = vsel %vm7460_vm5, %v600_v54, %v604_v39  ;;  %v644_v39 = vshll.u32 %v7761_v33, 16 }
  0x89   : > { %1447 = vrot.lane.b32.xlu1 %v6431_v41, %s7333_s15  ;;  %v7738_v5 = vcombine.low %v605_v61, %v615_v62  ;;  %v652_v61 = vrot.slane %v650_v46, 5 }
  0x8a   : > { %v646_v60 = vrot.slane %v644_v39, 5  ;;  %v1001_v39 = vrot.slane %v342_v31, 5 }
  0x8c   : > { %1488 = vrot.lane.b32.xlu0 %v6450_v9, %s7330_s10  ;;  %v647_v6 = vor.u32 %v646_v60, %v643_v56 }
  0x8d   : > { %1490 = vrot.lane.b32.xlu1 %v7709_v50, %s7330_s10 }
  0x8e   : > { %v7734_v8 = vpop.permute.xlu0 %1476 }
  0x90   : > { %1531 = vrot.lane.b32.xlu0 %v7692_v11, %s7334_s16 }
  0x91   : > { %1533 = vrot.lane.b32.xlu1 %v7719_v59, %s7334_s16  ;;  %v1348_v9 = vpop.permute.xlu1 %1347 }
  0x94   : > { %1574 = vrot.lane.b32.xlu0 %v6431_v41, %s7335_s17 }
  0x95   : > { %1576 = vrot.lane.b32.xlu1 %v7738_v5, %s7335_s17  ;;  %v1350_v17 = vpop.permute.xlu1 %1349 }
  0x96   : > { %v1248_v23 = vpop.permute.xlu0 %1247 }
  0x97   : > { %v1648_v40 = vsel %vm1645_vm6, %v6403_v48, %v1248_v23  ;;  %v994_v48 = vrot.slane %v339_v25, 5 }
  0x98   : > { %1617 = vrot.lane.b32.xlu0 %v7709_v50, %s7336_s18  ;;  %v1708_v54 = vsel %vm1706_vm7, %v1648_v40, %v1348_v9 }
  0x99   : > { %1619 = vrot.lane.b32.xlu1 %v7751_v19, %s7336_s18  ;;  %v7758_v28 = vpop.permute.xlu1 %1478  ;;  %v1749_v7 = vsel %vm1747_vm8, %v1708_v54, %v7711_v51  ;;  %v999_v54 = vsel %vm7425_vm4, %v6392_v38, %v998_v26 }
  0x9a   : > { %v1250_v30 = vpop.permute.xlu0 %1249 }
  0x9b   : > { %v1651_v49 = vsel %vm1645_vm6, %v7420_v10, %v1250_v30  ;;  %v993_v10 = vrot.slane %v991_v35, 4 }
  0x9c   : > { %1263 = vrot.lane.b32.xlu0 %v6431_v41, %s7332_s12  ;;  %v654_v41 = vshrl.u32 %v7764_v34, 16  ;;  %v1710_v63 = vsel %vm1706_vm7, %v1651_v49, %v1350_v17  ;;  %v660_v17 = vshll.u32 %v342_v31, 16 }
  0x9d   : > { %1265 = vrot.lane.b32.xlu1 %v7738_v5, %s7332_s12  ;;  %v995_v15 = vsel %vm7425_vm4, %v993_v10, %v994_v48  ;;  %v1751_v51 = vsel %vm1747_vm8, %v1710_v63, %v7713_v58  ;;  %v345_v63 = vld [vmem:[%s7403_s8 + $0x98] sm:$0x1] }
  0x9e   : > { %v1434_v42 = vpop.permute.xlu0 %1433  ;;  %v656_v62 = vrot.slane %v654_v41, 4  ;;  %v7819_v58 = vcombine.low %v992_v14, %v995_v15  ;;  %v662_v30 = vrot.slane %v660_v17, 5  ;;  %v7845_v41 = vld [vmem:[%s7403_s8 + $0x90] sm:$0xf]  ;;  %v684_v14 = vshll.u32 %v345_v63, 16 }
  0x9f   : > { %v1436_v47 = vpop.permute.xlu1 %1435  ;;  %v1790_v9 = vsel %vm1788_vm9, %v1749_v7, %v1434_v42  ;;  %v665_v49 = vshrl.u32 %v7845_v41, 16  ;;  %v668_v21 = vshll.u32 %v7845_v41, 16 }
  0xa0   : > { %1363 = vrot.lane.b32.xlu0 %v7709_v50, %s7331_s11  ;;  %v639_v50 = vsel %vm7460_vm5, %v634_v43, %v638_v37  ;;  %v657_v16 = vor.u32 %v656_v62, %v652_v61  ;;  %v1831_v22 = vsel %vm1829_vm10, %v1790_v9, %v7734_v8  ;;  %v1792_v23 = vsel %vm1788_vm9, %v1751_v51, %v1436_v47  ;;  %v7851_v47 = vld [vmem:[%s7403_s8 + $0x94] sm:$0xf] }
  0xa1   : > { %1365 = vrot.lane.b32.xlu1 %v7751_v19, %s7331_s11  ;;  %v7803_v12 = vcombine.low %v629_v55, %v639_v50  ;;  %v648_v8 = vrot.slane %v647_v6, 4  ;;  %v1833_v35 = vsel %vm1829_vm10, %v1792_v23, %v7758_v28  ;;  %v7836_v37 = vcombine.low %v7761_v33, %v7764_v34 }
  0xa2   : > { %v1520_v57 = vpop.permute.xlu0 %1519  ;;  %v658_v29 = vrot.slane %v657_v16, 4  ;;  %v1000_v43 = vrot.slane %v998_v26, 4  ;;  %v678_v10 = vshrl.u32 %v7851_v47, 16  ;;  %v674_v56 = vshll.u32 %v7851_v47, 16  ;;  %v7883_v16 = vld [vmem:[%s7403_s8 + $0xa0] sm:$0xf] }
  0xa3   : > { %v1522_v2 = vpop.permute.xlu1 %1521  ;;  %v1872_v25 = vsel %vm1870_vm11, %v1831_v22, %v1520_v57  ;;  %v667_v60 = vrot.slane %v665_v49, 4  ;;  %v1005_v17 = vrot.slane %v7851_v47, 5  ;;  %v686_v22 = vrot.slane %v684_v14, 5 }
  0xa4   : > { %1406 = vrot.lane.b32.xlu0 %v7719_v59, %s7329_s9  ;;  %v1874_v36 = vsel %vm1870_vm11, %v1833_v35, %v1522_v2  ;;  %v663_v42 = vsel %vm7460_vm5, %v658_v29, %v662_v30  ;;  %v1002_v55 = vsel %vm7425_vm4, %v1000_v43, %v1001_v39  ;;  %v676_v2 = vrot.slane %v674_v56, 5 }
  0xa5   : > { %1408 = vrot.lane.b32.xlu1 %v7784_v18, %s7329_s9  ;;  %v7872_v50 = vcombine.low %v999_v54, %v1002_v55  ;;  %v680_v31 = vrot.slane %v678_v10, 4  ;;  %v1007_v30 = vrot.slane %v1005_v17, 4  ;;  %v7901_v35 = vcombine.low %v7845_v41, %v7851_v47 }
  0xa6   : > { %v1563_v0 = vpop.permute.xlu0 %1562 }
  0xa7   : > { %v1565_v20 = vpop.permute.xlu1 %1564  ;;  %v1913_v27 = vsel %vm1911_vm12, %v1872_v25, %v1563_v0  ;;  %v681_v51 = vor.u32 %v680_v31, %v676_v2  ;;  %v7880_v0 = vld [vmem:[%s7403_s8 + $0x9c] sm:$0xf] }
  0xa8   : > { %1449 = vrot.lane.b32.xlu0 %v7738_v5, %s7333_s15  ;;  %v1915_v28 = vsel %vm1911_vm12, %v1874_v36, %v1565_v20  ;;  %v689_v23 = vshrl.u32 %v7880_v0, 16 }
  0xa9   : > { %1451 = vrot.lane.b32.xlu1 %v7803_v12, %s7333_s15  ;;  %v682_v26 = vrot.slane %v681_v51, 4 }
  0xaa   : > { %v1606_v3 = vpop.permute.xlu0 %1605  ;;  %v691_v38 = vrot.slane %v689_v23, 4  ;;  %v7956_v23 = vcombine.low %v7880_v0, %v7883_v16 }
  0xab   : > { %v7823_v5 = vpop.permute.xlu1 %1251  ;;  %v1954_v32 = vsel %vm1952_vm13, %v1913_v27, %v1606_v3  ;;  %v692_v27 = vshll.u32 %v7880_v0, 16  ;;  %v702_v3 = vshrl.u32 %v7883_v16, 16 }
  0xac   : > { %1492 = vrot.lane.b32.xlu0 %v7751_v19, %s7330_s10  ;;  %6903 = vmatprep.mubr.msk.bf16.mxu0 %vm2028_vm14, %v1954_v32  ;;  %v653_v19 = vsel %vm7460_vm5, %v648_v8, %v652_v61  ;;  %v670_v61 = vrot.slane %v668_v21, 5  ;;  %v698_v8 = vshll.u32 %v7883_v16, 16  ;;  %v1008_v32 = vrot.slane %v345_v63, 5 }
  0xad   : > { %1494 = vrot.lane.b32.xlu1 %v7819_v58, %s7330_s10  ;;  %v7858_v33 = vcombine.low %v653_v19, %v663_v42  ;;  %v704_v42 = vrot.slane %v702_v3, 4 }
  0xae   : > { %v1608_v40 = vpop.permute.xlu0 %1607  ;;  %v671_v9 = vor.u32 %v670_v61, %v667_v60  ;;  %v700_v19 = vrot.slane %v698_v8, 5  ;;  %v1009_v47 = vsel %vm7425_vm4, %v1007_v30, %v1008_v32  ;;  %v350_v30 = vld [vmem:[%s7403_s8 + $0xac] sm:$0xf] }
  0xaf   : > { %v7847_v46 = vpop.permute.xlu1 %1253  ;;  %v1956_v34 = vsel %vm1952_vm13, %v1915_v28, %v1608_v40  ;;  %v687_v28 = vsel %vm7460_vm5, %v682_v26, %v686_v22  ;;  %v694_v40 = vrot.slane %v692_v27, 5 }
  0xb0   : > { %1535 = vrot.lane.b32.xlu0 %v7784_v18, %s7334_s16  ;;  %6904 = vmatmul.mubr.msk.bf16.vlgmr.msra.gmra.mxu0 %vm2028_vm14, %v1956_v34  ;;  %v672_v20 = vrot.slane %v671_v9, 4  ;;  %v1654_v34 = vsel %vm1645_vm6, %v7415_v4, %v7823_v5  ;;  %v1657_v49 = vsel %vm1645_vm6, %v7520_v45, %v7847_v46  ;;  %v705_v60 = vor.u32 %v704_v42, %v700_v19 }
  0xb1   : > { %1537 = vrot.lane.b32.xlu1 %v7836_v37, %s7334_s16  ;;  %v695_v56 = vor.u32 %v694_v40, %v691_v38 }
  0xb2   : > { %v1352_v48 = vpop.permute.xlu0 %1351  ;;  %v677_v36 = vsel %vm7460_vm5, %v672_v20, %v676_v2 }
  0xb3   : > { %v1354_v57 = vpop.permute.xlu1 %1353  ;;  %v1712_v21 = vsel %vm1706_vm7, %v1654_v34, %v1352_v48  ;;  %v7925_v54 = vcombine.low %v677_v36, %v687_v28  ;;  %v696_v51 = vrot.slane %v695_v56, 4  ;;  %v726_v28 = vshrl.u32 %v350_v30, 16  ;;  %v7996_v56 = vld [vmem:[%s7403_s8 + $0xb4] sm:$0xf] }
  0xb4   : > { %1578 = vrot.lane.b32.xlu0 %v7803_v12, %s7335_s17  ;;  %v1714_v5 = vsel %vm1706_vm7, %v1657_v49, %v1354_v57 }
  0xb5   : > { %1580 = vrot.lane.b32.xlu1 %v7858_v33, %s7335_s17  ;;  %v701_v27 = vsel %vm7460_vm5, %v696_v51, %v700_v19  ;;  %v728_v49 = vrot.slane %v726_v28, 4 }
  0xb6   : > { %v1395_v62 = vpop.permute.xlu0 %1394 }
  0xb7   : > { %v1397_v7 = vpop.permute.xlu1 %1396  ;;  %v1753_v55 = vsel %vm1747_vm8, %v1712_v21, %v1395_v62 }
  0xb8   : > { %1621 = vrot.lane.b32.xlu0 %v7819_v58, %s7336_s18  ;;  %v1755_v61 = vsel %vm1747_vm8, %v1714_v5, %v1397_v7  ;;  %v1012_v7 = vrot.slane %v7883_v16, 5 }
  0xb9   : > { %1623 = vrot.lane.b32.xlu1 %v7872_v50, %s7336_s18 }
  0xba   : > { %v1438_v15 = vpop.permute.xlu0 %1437  ;;  %v1014_v3 = vrot.slane %v1012_v7, 4 }
  0xbb   : > { %v1440_v6 = vpop.permute.xlu1 %1439  ;;  %v1794_v45 = vsel %vm1788_vm9, %v1753_v55, %v1438_v15 }
  0xbc   : > { %1267 = vrot.lane.b32.xlu0 %v7803_v12, %s7332_s12  ;;  %v6393_v12 = vrot.slane %v7845_v41, 9  ;;  %v1796_v48 = vsel %vm1788_vm9, %v1755_v61, %v1440_v6  ;;  %v706_v6 = vrot.slane %v705_v60, 4  ;;  %v7999_v61 = vld [vmem:[%s7403_s8 + $0xb8] sm:$0xf] }
  0xbd   : > { %1269 = vrot.lane.b32.xlu1 %v7858_v33, %s7332_s12 }
  0xbe   : > { %v1481_v25 = vpop.permute.xlu0 %1480  ;;  %v1006_v41 = vsel %vm7425_vm4, %v6393_v12, %v1005_v17 }
  0xbf   : > { %v1483_v29 = vpop.permute.xlu1 %1482  ;;  %v1835_v63 = vsel %vm1829_vm10, %v1794_v45, %v1481_v25  ;;  %v7936_v2 = vcombine.low %v1006_v41, %v1009_v47  ;;  %v6394_v25 = vrot.slane %v7880_v0, 9  ;;  %v1019_v45 = vrot.slane %v350_v30, 5 }
  0xc0   : > { %1367 = vrot.lane.b32.xlu0 %v7819_v58, %s7331_s11  ;;  %v7908_v58 = vld [vmem:[%s7403_s8 + $0xa4] sm:$0x1]  ;;  %v1837_v57 = vsel %vm1829_vm10, %v1796_v48, %v1483_v29  ;;  %v7967_v29 = vld [vmem:[%s7403_s8 + $0xa8] sm:$0xf]  ;;  %v737_v48 = vshrl.u32 %v7996_v56, 16 }
  0xc1   : > { %1369 = vrot.lane.b32.xlu1 %v7872_v50, %s7331_s11  ;;  %v708_v4 = vshll.u32 %v7908_v58, 16  ;;  %v1015_v8 = vrot.slane %v7908_v58, 5  ;;  %v713_v16 = vshrl.u32 %v7967_v29, 16  ;;  %v716_v32 = vshll.u32 %v7967_v29, 16 }
  0xc2   : > { %v1524_v39 = vpop.permute.xlu0 %1523  ;;  %v1013_v38 = vsel %vm7425_vm4, %v6394_v25, %v1012_v7  ;;  %v722_v58 = vshll.u32 %v350_v30, 16  ;;  %v750_v7 = vshrl.u32 %v7999_v61, 16 }
  0xc3   : > { %v1526_v43 = vpop.permute.xlu1 %1525  ;;  %v1876_v62 = vsel %vm1870_vm11, %v1835_v63, %v1524_v39  ;;  %v710_v31 = vrot.slane %v708_v4, 5  ;;  %v1016_v39 = vsel %vm7425_vm4, %v1014_v3, %v1015_v8  ;;  %v715_v34 = vrot.slane %v713_v16, 4  ;;  %v354_v3 = vld [vmem:[%s7403_s8 + $0xbc] sm:$0x1] }
  0xc4   : > { %1410 = vrot.lane.b32.xlu0 %v7836_v37, %s7329_s9  ;;  %v1878_v9 = vsel %vm1870_vm11, %v1837_v57, %v1526_v43  ;;  %v7988_v19 = vcombine.low %v1013_v38, %v1016_v39  ;;  %v351_v43 = vld [vmem:[%s7403_s8 + $0xb0] sm:$0x1]  ;;  %v718_v41 = vrot.slane %v716_v32, 5  ;;  %v724_v47 = vrot.slane %v722_v58, 5 }
  0xc5   : > { %1412 = vrot.lane.b32.xlu1 %v7901_v35, %s7329_s9  ;;  %v732_v4 = vshll.u32 %v351_v43, 16  ;;  %v740_v63 = vshll.u32 %v7996_v56, 16  ;;  %v1022_v51 = vrot.slane %v351_v43, 5  ;;  %v756_v43 = vshll.u32 %v354_v3, 16 }
  0xc6   : > { %v1567_v10 = vpop.permute.xlu0 %1566  ;;  %v719_v55 = vor.u32 %v718_v41, %v715_v34 }
  0xc7   : > { %v1569_v46 = vpop.permute.xlu1 %1568  ;;  %v1917_v14 = vsel %vm1911_vm12, %v1876_v62, %v1567_v10  ;;  %v729_v10 = vor.u32 %v728_v49, %v724_v47 }
  0xc8   : > { %1453 = vrot.lane.b32.xlu0 %v7858_v33, %s7333_s15  ;;  %v1919_v33 = vsel %vm1911_vm12, %v1878_v9, %v1569_v46  ;;  %v734_v46 = vrot.slane %v732_v4, 5  ;;  %v720_v62 = vrot.slane %v719_v55, 4  ;;  %v746_v9 = vshll.u32 %v7999_v61, 16 }
  0xc9   : > { %1455 = vrot.lane.b32.xlu1 %v7925_v54, %s7333_s15 }
  0xca   : > { %v1610_v15 = vpop.permute.xlu0 %1609 }
  0xcb   : > { %v1612_v17 = vpop.permute.xlu1 %1611  ;;  %v1958_v20 = vsel %vm1952_vm13, %v1917_v14, %v1610_v15  ;;  %v1021_v15 = vrot.slane %v1019_v45, 4 }
  0xcc   : > { %v1960_v22 = vsel %vm1952_vm13, %v1919_v33, %v1612_v17  ;;  %1496 = vrot.lane.b32.xlu0 %v7872_v50, %s7330_s10  ;;  %6907 = vmatprep.mubr.msk.bf16.mxu0 %vm2028_vm14, %v1958_v20  ;;  %v711_v50 = vsel %vm7460_vm5, %v706_v6, %v710_v31  ;;  %v730_v31 = vrot.slane %v729_v10, 4  ;;  %v8015_v6 = vcombine.low %v7967_v29, %v350_v30 }
  0xcd   : > { %1498 = vrot.lane.b32.xlu1 %v7936_v2, %s7330_s10  ;;  %6908 = vmatmul.mubr.msk.bf16.gmra.mxu0 %vm2028_vm14, %v1960_v22  ;;  %v7976_v0 = vcombine.low %v701_v27, %v711_v50  ;;  %v739_v33 = vrot.slane %v737_v48, 4  ;;  %v742_v17 = vrot.slane %v740_v63, 5  ;;  %v725_v22 = vsel %vm7460_vm5, %v720_v62, %v724_v47  ;;  %v8071_v62 = vld [vmem:[%s7403_s8 + $0xc0] sm:$0xf] }
  0xce   : > { %v7959_v26 = vpop.permute.xlu0 %1255  ;;  %v735_v25 = vsel %vm7460_vm5, %v730_v31, %v734_v46  ;;  %v752_v27 = vrot.slane %v750_v7, 4  ;;  %v1023_v30 = vsel %vm7425_vm4, %v1021_v15, %v1022_v51  ;;  %v8067_v63 = vcombine.low %v7996_v56, %v7999_v61 }
  0xcf   : > { %v7969_v12 = vpop.permute.xlu1 %1257  ;;  %v1660_v8 = vsel %vm1645_vm6, %v7549_v24, %v7959_v26  ;;  %v8037_v38 = vcombine.low %v725_v22, %v735_v25  ;;  %v743_v24 = vor.u32 %v742_v17, %v739_v33 }
  0xd0   : > { %1539 = vrot.lane.b32.xlu0 %v7901_v35, %s7334_s16  ;;  %v1663_v16 = vsel %vm1645_vm6, %v7575_v44, %v7969_v12 }
  0xd1   : > { %1541 = vrot.lane.b32.xlu1 %v7956_v23, %s7334_s16  ;;  %v744_v49 = vrot.slane %v743_v24, 4 }
  0xd2   : > { %v1356_v36 = vpop.permute.xlu0 %1355 }
  0xd3   : > { %v1358_v40 = vpop.permute.xlu1 %1357  ;;  %v1716_v32 = vsel %vm1706_vm7, %v1660_v8, %v1356_v36 }
  0xd4   : > { %1582 = vrot.lane.b32.xlu0 %v7925_v54, %s7335_s17  ;;  %v1718_v26 = vsel %vm1706_vm7, %v1663_v16, %v1358_v40  ;;  %v357_v16 = vld [vmem:[%s7403_s8 + $0xc8] sm:$0x1] }
  0xd5   : > { %1584 = vrot.lane.b32.xlu1 %v7976_v0, %s7335_s17 }
  0xd6   : > { %v1399_v42 = vpop.permute.xlu0 %1398 }
  0xd7   : > { %v1401_v21 = vpop.permute.xlu1 %1400  ;;  %v1757_v39 = vsel %vm1747_vm8, %v1716_v32, %v1399_v42 }
  0xd8   : > { %1625 = vrot.lane.b32.xlu0 %v7936_v2, %s7336_s18  ;;  %v1759_v34 = vsel %vm1747_vm8, %v1718_v26, %v1401_v21  ;;  %v1026_v21 = vrot.slane %v7999_v61, 5  ;;  %v764_v61 = vshll.u32 %v8071_v62, 16 }
  0xd9   : > { %1627 = vrot.lane.b32.xlu1 %v7988_v19, %s7336_s18 }
  0xda   : > { %v1442_v5 = vpop.permute.xlu0 %1441 }
  0xdb   : > { %v1444_v60 = vpop.permute.xlu1 %1443  ;;  %v1798_v41 = vsel %vm1788_vm9, %v1757_v39, %v1442_v5  ;;  %v780_v39 = vshll.u32 %v357_v16, 16 }
  0xdc   : > { %1271 = vrot.lane.b32.xlu0 %v7925_v54, %s7332_s12  ;;  %v6395_v54 = vrot.slane %v7967_v29, 9  ;;  %v1800_v12 = vsel %vm1788_vm9, %v1759_v34, %v1444_v60  ;;  %v8113_v34 = vld [vmem:[%s7403_s8 + $0xd0] sm:$0xf] }
  0xdd   : > { %1273 = vrot.lane.b32.xlu1 %v7976_v0, %s7332_s12 }
  0xde   : > { %v1485_v57 = vpop.permute.xlu0 %1484  ;;  %v1020_v29 = vsel %vm7425_vm4, %v6395_v54, %v1019_v45  ;;  %v8080_v54 = vld [vmem:[%s7403_s8 + $0xc4] sm:$0xf] }
  0xdf   : > { %v1487_v14 = vpop.permute.xlu1 %1486  ;;  %v1839_v36 = vsel %vm1829_vm10, %v1798_v41, %v1485_v57  ;;  %v8047_v47 = vcombine.low %v1020_v29, %v1023_v30  ;;  %v6396_v57 = vrot.slane %v7996_v56, 9  ;;  %v761_v56 = vshrl.u32 %v8071_v62, 16 }
  0xe0   : > { %1371 = vrot.lane.b32.xlu0 %v7936_v2, %s7331_s11  ;;  %v748_v2 = vrot.slane %v746_v9, 5  ;;  %v1841_v40 = vsel %vm1829_vm10, %v1800_v12, %v1487_v14  ;;  %v1028_v9 = vrot.slane %v1026_v21, 4  ;;  %v1029_v14 = vrot.slane %v354_v3, 5 }
  0xe1   : > { %1373 = vrot.lane.b32.xlu1 %v7988_v19, %s7331_s11  ;;  %v774_v33 = vshrl.u32 %v8080_v54, 16  ;;  %v770_v17 = vshll.u32 %v8080_v54, 16  ;;  %v1027_v22 = vsel %vm7425_vm4, %v6396_v57, %v1026_v21  ;;  %v798_v21 = vshrl.u32 %v8113_v34, 16  ;;  %v8138_v57 = vld [vmem:[%s7403_s8 + $0xd4] sm:$0x1] }
  0xe2   : > { %v1528_v20 = vpop.permute.xlu0 %1527  ;;  %v753_v58 = vor.u32 %v752_v27, %v748_v2  ;;  %v1030_v25 = vsel %vm7425_vm4, %v1028_v9, %v1029_v14  ;;  %v763_v27 = vrot.slane %v761_v56, 4 }
  0xe3   : > { %v1530_v50 = vpop.permute.xlu1 %1529  ;;  %v1880_v42 = vsel %vm1870_vm11, %v1839_v36, %v1528_v20  ;;  %v8102_v3 = vcombine.low %v1027_v22, %v1030_v25  ;;  %v772_v8 = vrot.slane %v770_v17, 5  ;;  %v776_v29 = vrot.slane %v774_v33, 4 }
  0xe4   : > { %1414 = vrot.lane.b32.xlu0 %v7956_v23, %s7329_s9  ;;  %v1882_v4 = vsel %vm1870_vm11, %v1841_v40, %v1530_v50  ;;  %v754_v10 = vrot.slane %v753_v58, 4  ;;  %v766_v50 = vrot.slane %v764_v61, 5  ;;  %v8110_v58 = vld [vmem:[%s7403_s8 + $0xcc] sm:$0xf]  ;;  %v782_v36 = vrot.slane %v780_v39, 5 }
  0xe5   : > { %1416 = vrot.lane.b32.xlu1 %v8015_v6, %s7329_s9  ;;  %v777_v26 = vor.u32 %v776_v29, %v772_v8  ;;  %v785_v40 = vshrl.u32 %v8110_v58, 16 }
  0xe6   : > { %v1571_v28 = vpop.permute.xlu0 %1570  ;;  %v767_v24 = vor.u32 %v766_v50, %v763_v27 }
  0xe7   : > { %v1573_v44 = vpop.permute.xlu1 %1572  ;;  %v1921_v5 = vsel %vm1911_vm12, %v1880_v42, %v1571_v28  ;;  %v778_v12 = vrot.slane %v777_v26, 4  ;;  %v788_v42 = vshll.u32 %v8110_v58, 16 }
  0xe8   : > { %1457 = vrot.lane.b32.xlu0 %v7976_v0, %s7333_s15  ;;  %v758_v0 = vrot.slane %v756_v43, 5  ;;  %v1923_v60 = vsel %vm1911_vm12, %v1882_v4, %v1573_v44  ;;  %v768_v41 = vrot.slane %v767_v24, 4  ;;  %v1033_v44 = vrot.slane %v8080_v54, 5 }
  0xe9   : > { %1459 = vrot.lane.b32.xlu1 %v8037_v38, %s7333_s15  ;;  %v794_v4 = vshll.u32 %v8113_v34, 16 }
  0xea   : > { %v1614_v55 = vpop.permute.xlu0 %1613  ;;  %v759_v7 = vsel %vm7460_vm5, %v754_v10, %v758_v0  ;;  %v1035_v10 = vrot.slane %v1033_v44, 4  ;;  %v1036_v0 = vrot.slane %v357_v16, 5 }
  0xeb   : > { %v1616_v45 = vpop.permute.xlu1 %1615  ;;  %v1962_v46 = vsel %vm1952_vm13, %v1921_v5, %v1614_v55  ;;  %v6397_v55 = vrot.slane %v8071_v62, 9 }
  0xec   : > { %v1964_v48 = vsel %vm1952_vm13, %v1923_v60, %v1616_v45  ;;  %1500 = vrot.lane.b32.xlu0 %v7988_v19, %s7330_s10  ;;  %6911 = vmatprep.mubr.msk.bf16.mxu0 %vm2028_vm14, %v1962_v46  ;;  %v749_v19 = vsel %vm7460_vm5, %v744_v49, %v748_v2  ;;  %v773_v60 = vsel %vm7460_vm5, %v768_v41, %v772_v8  ;;  %v787_v46 = vrot.slane %v785_v40, 4 }
  0xed   : > { %1502 = vrot.lane.b32.xlu1 %v8047_v47, %s7330_s10  ;;  %6912 = vmatmul.mubr.msk.bf16.gmra.mxu0 %vm2028_vm14, %v1964_v48  ;;  %v8090_v51 = vcombine.low %v749_v19, %v759_v7  ;;  %v783_v45 = vsel %vm7460_vm5, %v778_v12, %v782_v36  ;;  %v790_v48 = vrot.slane %v788_v42, 5  ;;  %v796_v19 = vrot.slane %v794_v4, 5  ;;  %v8191_v42 = vld [vmem:[%s7403_s8 + $0xd8] sm:$0xf] }
  0xee   : > { %v8073_v31 = vpop.permute.xlu0 %1259  ;;  %v800_v7 = vrot.slane %v798_v21, 4  ;;  %v8145_v14 = vcombine.low %v773_v60, %v783_v45  ;;  %v1037_v56 = vsel %vm7425_vm4, %v1035_v10, %v1036_v0  ;;  %v8186_v36 = vcombine.low %v8110_v58, %v8113_v34 }
  0xef   : > { %v8082_v15 = vpop.permute.xlu1 %1261  ;;  %v6398_v21 = vrot.slane %v8110_v58, 9  ;;  %v812_v0 = vshll.u32 %v8191_v42, 16 }
  0xf0   : > { %1543 = vrot.lane.b32.xlu0 %v8015_v6, %s7334_s16  ;;  %v1669_v61 = vsel %vm1645_vm6, %v7660_v53, %v8082_v15  ;;  %v801_v27 = vor.u32 %v800_v7, %v796_v19 }
  0xf1   : > { %1545 = vrot.lane.b32.xlu1 %v8067_v63, %s7334_s16 }
  0xf2   : > { %v1360_v20 = vpop.permute.xlu0 %1359 }
  0xf3   : > { %v1362_v2 = vpop.permute.xlu1 %1361 }
  0xf4   : > { %1586 = vrot.lane.b32.xlu0 %v8037_v38, %s7335_s17  ;;  %v1722_v17 = vsel %vm1706_vm7, %v1669_v61, %v1362_v2 }
  0xf5   : > { %1588 = vrot.lane.b32.xlu1 %v8090_v51, %s7335_s17 }
  0xf6   : > { %v1403_v30 = vpop.permute.xlu0 %1402 }
  0xf7   : > { %v1405_v32 = vpop.permute.xlu1 %1404 }
  0xf8   : > { %1629 = vrot.lane.b32.xlu0 %v8047_v47, %s7336_s18  ;;  %v1763_v50 = vsel %vm1747_vm8, %v1722_v17, %v1405_v32 }
  0xf9   : > { %1631 = vrot.lane.b32.xlu1 %v8102_v3, %s7336_s18 }
  0xfa   : > { %v1446_v28 = vpop.permute.xlu0 %1445 }
  0xfb   : > { %v1448_v43 = vpop.permute.xlu1 %1447 }
  0xfc   : > { %1275 = vrot.lane.b32.xlu0 %v8037_v38, %s7332_s12  ;;  %v8128_v38 = vcombine.low %v8071_v62, %v8080_v54  ;;  %v1666_v62 = vsel %vm1645_vm6, %v7637_v1, %v8073_v31  ;;  %v1034_v54 = vsel %vm7425_vm4, %v6397_v55, %v1033_v44  ;;  %v791_v1 = vor.u32 %v790_v48, %v787_v46  ;;  %v8200_v55 = vld [vmem:[%s7403_s8 + $0xdc] sm:$0xf] }
  0xfd   : > { %1277 = vrot.lane.b32.xlu1 %v8090_v51, %s7332_s12  ;;  %v1720_v33 = vsel %vm1706_vm7, %v1666_v62, %v1360_v20  ;;  %v804_v31 = vshll.u32 %v8138_v57, 16  ;;  %v1804_v53 = vsel %vm1788_vm9, %v1763_v50, %v1448_v43  ;;  %v8166_v20 = vcombine.low %v1034_v54, %v1037_v56 }
  0xfe   : > { %v1489_v49 = vpop.permute.xlu0 %1488  ;;  %v1761_v22 = vsel %vm1747_vm8, %v1720_v33, %v1403_v30  ;;  %v792_v16 = vrot.slane %v791_v1, 4  ;;  %v822_v58 = vshrl.u32 %v8200_v55, 16  ;;  %v818_v45 = vshll.u32 %v8200_v55, 16  ;;  %v363_v33 = vld [vmem:[%s7403_s8 + $0xe0] sm:$0x1] }
  0xff   : > { %v1491_v5 = vpop.permute.xlu1 %1490  ;;  %v1802_v8 = vsel %vm1788_vm9, %v1761_v22, %v1446_v28  ;;  %v806_v32 = vrot.slane %v804_v31, 5  ;;  %v802_v28 = vrot.slane %v801_v27, 4  ;;  %v10840_v46 = vmov 0   ;;  %v8232_v27 = vld [vmem:[%s7403_s8 + $0xe4] sm:$0xf] }
 0x100   : > { %1375 = vrot.lane.b32.xlu0 %v8047_v47, %s7331_s11  ;;  %v1843_v15 = vsel %vm1829_vm10, %v1802_v8, %v1489_v49  ;;  %v1845_v2 = vsel %vm1829_vm10, %v1804_v53, %v1491_v5  ;;  %v797_v40 = vsel %vm7460_vm5, %v792_v16, %v796_v19  ;;  %v1043_v5 = vrot.slane %v8138_v57, 5  ;;  %3702 = vmatprep.subr.bf16.mxu1 %v10840_v46  ;;  %v8235_v8 = vld [vmem:[%s7403_s8 + $0xe8] sm:$0xf] }
 0x101   : > { %1377 = vrot.lane.b32.xlu1 %v8102_v3, %s7331_s11  ;;  %3879 = vmatprep.subr.bf16.mxu0 %v10840_v46  ;;  %v820_v54 = vrot.slane %v818_v45, 5  ;;  %v824_v56 = vrot.slane %v822_v58, 4  ;;  %v828_v22 = vshll.u32 %v363_v33, 16  ;;  %v1047_v53 = vrot.slane %v8200_v55, 5 }
 0x102   : > { %v1532_v47 = vpop.permute.xlu0 %1531  ;;  %v836_v16 = vshll.u32 %v8232_v27, 16 }
 0x103   : > { %v1534_v9 = vpop.permute.xlu1 %1533  ;;  %v1884_v30 = vsel %vm1870_vm11, %v1843_v15, %v1532_v47  ;;  %v825_v17 = vor.u32 %v824_v56, %v820_v54 }
 0x104   : > { %1418 = vrot.lane.b32.xlu0 %v8067_v63, %s7329_s9  ;;  %v1886_v24 = vsel %vm1870_vm11, %v1845_v2, %v1534_v9  ;;  %v814_v9 = vrot.slane %v812_v0, 5  ;;  %v830_v2 = vrot.slane %v828_v22, 5 }
 0x105   : > { %1420 = vrot.lane.b32.xlu1 %v8128_v38, %s7329_s9  ;;  %v826_v15 = vrot.slane %v825_v17, 4 }
 0x106   : > { %v1575_v25 = vpop.permute.xlu0 %1574 }
 0x107   : > { %v1577_v29 = vpop.permute.xlu1 %1576  ;;  %v1925_v26 = vsel %vm1911_vm12, %v1884_v30, %v1575_v25  ;;  %v833_v30 = vshrl.u32 %v8232_v27, 16 }
 0x108   : > { %1461 = vrot.lane.b32.xlu0 %v8090_v51, %s7333_s15  ;;  %v1040_v51 = vrot.slane %v8113_v34, 5  ;;  %v1927_v43 = vsel %vm1911_vm12, %v1886_v24, %v1577_v29  ;;  %v809_v34 = vshrl.u32 %v8191_v42, 16  ;;  %v846_v24 = vshrl.u32 %v8235_v8, 16 }
 0x109   : > { %1463 = vrot.lane.b32.xlu1 %v8145_v14, %s7333_s15 }
 0x10a   : > { %v1618_v39 = vpop.permute.xlu0 %1617  ;;  %v1042_v4 = vrot.slane %v1040_v51, 4  ;;  %v1041_v47 = vsel %vm7425_vm4, %v6398_v21, %v1040_v51  ;;  %v811_v7 = vrot.slane %v809_v34, 4  ;;  %v1049_v51 = vrot.slane %v1047_v53, 4 }
 0x10b   : > { %v1620_v41 = vpop.permute.xlu1 %1619  ;;  %v1966_v44 = vsel %vm1952_vm13, %v1925_v26, %v1618_v39  ;;  %v842_v26 = vshll.u32 %v8235_v8, 16 }
 0x10c   : > { %v1968_v12 = vsel %vm1952_vm13, %v1927_v43, %v1620_v41  ;;  %1504 = vrot.lane.b32.xlu0 %v8102_v3, %s7330_s10  ;;  %6915 = vmatprep.mubr.msk.bf16.mxu0 %vm2028_vm14, %v1966_v44  ;;  %v807_v3 = vsel %vm7460_vm5, %v802_v28, %v806_v32  ;;  %v1044_v57 = vsel %vm7425_vm4, %v1042_v4, %v1043_v5  ;;  %v6399_v28 = vrot.slane %v8191_v42, 9 }
 0x10d   : > { %1506 = vrot.lane.b32.xlu1 %v8166_v20, %s7330_s10  ;;  %6916 = vmatmul.mubr.msk.bf16.gmra.mxu0 %vm2028_vm14, %v1968_v12  ;;  %v8210_v60 = vcombine.low %v797_v40, %v807_v3  ;;  %v8224_v62 = vcombine.low %v1041_v47, %v1044_v57  ;;  %v815_v31 = vor.u32 %v814_v9, %v811_v7  ;;  %v1050_v43 = vrot.slane %v363_v33, 5  ;;  %v8260_v3 = vld [vmem:[%s7403_s8 + $0xec] sm:$0x1] }
 0x10e   : > { %v8193_v49 = vpop.permute.xlu0 %1263  ;;  %v831_v44 = vsel %vm7460_vm5, %v826_v15, %v830_v2  ;;  %v835_v12 = vrot.slane %v833_v30, 4  ;;  %v838_v40 = vrot.slane %v836_v16, 5  ;;  %v844_v21 = vrot.slane %v842_v26, 5  ;;  %v8304_v30 = vld [vmem:[%s7403_s8 + $0xf0] sm:$0xf] }
 0x10f   : > { %v8202_v10 = vpop.permute.xlu1 %1265  ;;  %v816_v29 = vrot.slane %v815_v31, 4  ;;  %v848_v4 = vrot.slane %v846_v24, 4  ;;  %v1048_v34 = vsel %vm7425_vm4, %v6399_v28, %v1047_v53  ;;  %v1051_v0 = vsel %vm7425_vm4, %v1049_v51, %v1050_v43  ;;  %v8307_v16 = vld [vmem:[%s7403_s8 + $0xf4] sm:$0xf] }
 0x110   : > { %1547 = vrot.lane.b32.xlu0 %v8128_v38, %s7334_s16  ;;  %v1675_v58 = vsel %vm1645_vm6, %v7719_v59, %v8202_v10  ;;  %v1057_v51 = vrot.slane %v8260_v3, 5 }
 0x111   : > { %1549 = vrot.lane.b32.xlu1 %v8186_v36, %s7334_s16  ;;  %v821_v41 = vsel %vm7460_vm5, %v816_v29, %v820_v54  ;;  %v849_v9 = vor.u32 %v848_v4, %v844_v21 }
 0x112   : > { %v1364_v48 = vpop.permute.xlu0 %1363 }
 0x113   : > { %v1366_v19 = vpop.permute.xlu1 %1365 }
 0x114   : > { %1590 = vrot.lane.b32.xlu0 %v8145_v14, %s7335_s17  ;;  %v1726_v47 = vsel %vm1706_vm7, %v1675_v58, %v1366_v19 }
 0x115   : > { %1592 = vrot.lane.b32.xlu1 %v8210_v60, %s7335_s17 }
 0x116   : > { %v1407_v61 = vpop.permute.xlu0 %1406 }
 0x117   : > { %v1409_v1 = vpop.permute.xlu1 %1408 }
 0x118   : > { %1633 = vrot.lane.b32.xlu0 %v8166_v20, %s7336_s18  ;;  %v1767_v54 = vsel %vm1747_vm8, %v1726_v47, %v1409_v1 }
 0x119   : > { %1635 = vrot.lane.b32.xlu1 %v8224_v62, %s7336_s18 }
 0x11a   : > { %v1450_v25 = vpop.permute.xlu0 %1449 }
 0x11b   : > { %v1452_v50 = vpop.permute.xlu1 %1451 }
 0x11c   : > { %1279 = vrot.lane.b32.xlu0 %v8145_v14, %s7332_s12  ;;  %v8250_v14 = vcombine.low %v8191_v42, %v8200_v55  ;;  %v1672_v42 = vsel %vm1645_vm6, %v7692_v11, %v8193_v49  ;;  %v8267_v55 = vcombine.low %v821_v41, %v831_v44  ;;  %v839_v11 = vor.u32 %v838_v40, %v835_v12 }
 0x11d   : > { %1281 = vrot.lane.b32.xlu1 %v8210_v60, %s7332_s12  ;;  %v1724_v45 = vsel %vm1706_vm7, %v1672_v42, %v1364_v48  ;;  %v852_v49 = vshll.u32 %v8260_v3, 16  ;;  %v1808_v59 = vsel %vm1788_vm9, %v1767_v54, %v1452_v50  ;;  %v8288_v48 = vcombine.low %v1048_v34, %v1051_v0  ;;  %v369_v0 = vld [vmem:[%s7403_s8 + $0xf8] sm:$0x1] }
 0x11e   : > { %v1493_v32 = vpop.permute.xlu0 %1492  ;;  %v1765_v57 = vsel %vm1747_vm8, %v1724_v45, %v1407_v61  ;;  %v840_v1 = vrot.slane %v839_v11, 4  ;;  %v850_v50 = vrot.slane %v849_v9, 4  ;;  %v1060_v41 = vshrl.u32 %v8304_v30, 16 }
 0x11f   : > { %v1495_v39 = vpop.permute.xlu1 %1494  ;;  %v1806_v56 = vsel %vm1788_vm9, %v1765_v57, %v1450_v25  ;;  %v854_v31 = vrot.slane %v852_v49, 5  ;;  %v1073_v44 = vshrl.u32 %v8307_v16, 16  ;;  %v1069_v12 = vshll.u32 %v8307_v16, 16 }
 0x120   : > { %1379 = vrot.lane.b32.xlu0 %v8166_v20, %s7331_s11  ;;  %v1847_v10 = vsel %vm1829_vm10, %v1806_v56, %v1493_v32  ;;  %v1849_v19 = vsel %vm1829_vm10, %v1808_v59, %v1495_v39  ;;  %v8314_v32 = vcombine.low %v8232_v27, %v8235_v8  ;;  %v845_v24 = vsel %vm7460_vm5, %v840_v1, %v844_v21 }
 0x121   : > { %1381 = vrot.lane.b32.xlu1 %v8224_v62, %s7331_s11  ;;  %v6400_v39 = vrot.slane %v8232_v27, 9  ;;  %v1062_v4 = vrot.slane %v1060_v41, 4  ;;  %v1071_v42 = vrot.slane %v1069_v12, 5  ;;  %v1075_v34 = vrot.slane %v1073_v44, 4 }
 0x122   : > { %v1536_v20 = vpop.permute.xlu0 %1535  ;;  %v1079_v57 = vshll.u32 %v369_v0, 16 }
 0x123   : > { %v1538_v5 = vpop.permute.xlu1 %1537  ;;  %v1888_v61 = vsel %vm1870_vm11, %v1847_v10, %v1536_v20  ;;  %v1076_v47 = vor.u32 %v1075_v34, %v1071_v42  ;;  %v8355_v10 = vld [vmem:[%s7403_s8 + $0x100] sm:$0xf] }
 0x124   : > { %1422 = vrot.lane.b32.xlu0 %v8186_v36, %s7329_s9  ;;  %v1890_v17 = vsel %vm1870_vm11, %v1849_v19, %v1538_v5  ;;  %v1081_v59 = vrot.slane %v1079_v57, 5  ;;  %v1088_v19 = vrot.slane %v8307_v16, 5 }
 0x125   : > { %1424 = vrot.lane.b32.xlu1 %v8250_v14, %s7329_s9 }
 0x126   : > { %v1579_v7 = vpop.permute.xlu0 %1578 }
 0x127   : > { %v1581_v33 = vpop.permute.xlu1 %1580  ;;  %v1929_v22 = vsel %vm1911_vm12, %v1888_v61, %v1579_v7  ;;  %v8352_v7 = vld [vmem:[%s7403_s8 + $0xfc] sm:$0xf] }
 0x128   : > { %1465 = vrot.lane.b32.xlu0 %v8210_v60, %s7333_s15  ;;  %v1054_v60 = vrot.slane %v8235_v8, 5  ;;  %v1931_v29 = vsel %vm1911_vm12, %v1890_v17, %v1581_v33  ;;  %v1063_v8 = vshll.u32 %v8304_v30, 16  ;;  %v1077_v33 = vrot.slane %v1076_v47, 4 }
 0x129   : > { %1467 = vrot.lane.b32.xlu1 %v8267_v55, %s7333_s15  ;;  %v1094_v61 = vshrl.u32 %v8352_v7, 16  ;;  %v1097_v1 = vshll.u32 %v8352_v7, 16  ;;  %v1107_v17 = vshrl.u32 %v8355_v10, 16 }
 0x12a   : > { %v1622_v25 = vpop.permute.xlu0 %1621  ;;  %v1056_v28 = vrot.slane %v1054_v60, 4  ;;  %v1055_v20 = vsel %vm7425_vm4, %v6400_v39, %v1054_v60  ;;  %v1065_v5 = vrot.slane %v1063_v8, 5  ;;  %v6401_v60 = vrot.slane %v8304_v30, 9 }
 0x12b   : > { %v1624_v53 = vpop.permute.xlu1 %1623  ;;  %v1970_v15 = vsel %vm1952_vm13, %v1929_v22, %v1622_v25  ;;  %v1103_v22 = vshll.u32 %v8355_v10, 16 }
 0x12c   : > { %v1972_v2 = vsel %vm1952_vm13, %v1931_v29, %v1624_v53  ;;  %1508 = vrot.lane.b32.xlu0 %v8224_v62, %s7330_s10  ;;  %6919 = vmatprep.mubr.msk.bf16.mxu0 %vm2028_vm14, %v1970_v15  ;;  %v855_v62 = vsel %vm7460_vm5, %v850_v50, %v854_v31  ;;  %v1058_v3 = vsel %vm7425_vm4, %v1056_v28, %v1057_v51  ;;  %v1090_v29 = vrot.slane %v1088_v19, 4 }
 0x12d   : > { %1510 = vrot.lane.b32.xlu1 %v8288_v48, %s7330_s10  ;;  %6920 = vmatmul.mubr.msk.bf16.gmra.mxu0 %vm2028_vm14, %v1972_v2  ;;  %v8334_v27 = vcombine.low %v845_v24, %v855_v62  ;;  %v8345_v58 = vcombine.low %v1055_v20, %v1058_v3  ;;  %v1066_v49 = vor.u32 %v1065_v5, %v1062_v4  ;;  %v1091_v53 = vrot.slane %v369_v0, 5  ;;  %v8378_v62 = vld [vmem:[%s7403_s8 + $0x104] sm:$0x1] }
 0x12e   : > { %v8318_v26 = vpop.permute.xlu0 %1267  ;;  %v1096_v15 = vrot.slane %v1094_v61, 4  ;;  %v1099_v2 = vrot.slane %v1097_v1, 5  ;;  %v6463_v24 = vcombine.low %v8304_v30, %v8307_v16  ;;  %v1105_v28 = vrot.slane %v1103_v22, 5 }
 0x12f   : > { %v8324_v43 = vpop.permute.xlu1 %1269  ;;  %v1067_v56 = vrot.slane %v1066_v49, 4  ;;  %v1109_v51 = vrot.slane %v1107_v17, 4  ;;  %v1678_v44 = vsel %vm1645_vm6, %v7784_v18, %v8318_v26  ;;  %v1092_v30 = vsel %vm7425_vm4, %v1090_v29, %v1091_v53 }
 0x130   : > { %1551 = vrot.lane.b32.xlu0 %v8250_v14, %s7334_s16  ;;  %v1100_v16 = vor.u32 %v1099_v2, %v1096_v15  ;;  %v1113_v12 = vshll.u32 %v8378_v62, 16  ;;  %v1681_v20 = vsel %vm1645_vm6, %v7836_v37, %v8324_v43  ;;  %v2490_v49 = vrot.slane %v10840_v46, 7 }
 0x131   : > { %1553 = vrot.lane.b32.xlu1 %v8314_v32, %s7334_s16  ;;  %v1072_v50 = vsel %vm7460_vm5, %v1067_v56, %v1071_v42  ;;  %v1110_v5 = vor.u32 %v1109_v51, %v1105_v28  ;;  %v6466_v17 = vcombine.low %v8352_v7, %v8355_v10  ;;  %v1125_v29 = vrot.slane %v8378_v62, 5 }
 0x132   : > { %v1368_v40 = vpop.permute.xlu0 %1367  ;;  %v1101_v47 = vrot.slane %v1100_v16, 4  ;;  %v1115_v57 = vrot.slane %v1113_v12, 5  ;;  %v8421_v1 = vsel %vm8406_vm1, 0, %v2490_v49  ;;  %v8440_v15 = vsel %vm8406_vm1, %v2490_v49, 0 }
 0x133   : > { %v1370_v21 = vpop.permute.xlu1 %1369  ;;  %v1728_v3 = vsel %vm1706_vm7, %v1678_v44, %v1368_v40  ;;  %10864 = vst [vmem:[#allocation3_spill] sm:$0xff] %v8421_v1  ;;  %v2712_v62 = vshrl.u32 %v8421_v1, 16 }
 0x134   : > { %1594 = vrot.lane.b32.xlu0 %v8267_v55, %s7335_s17  ;;  %v1730_v18 = vsel %vm1706_vm7, %v1681_v20, %v1370_v21  ;;  %v10861_v21 = vmov 0  ;;  %v1106_v22 = vsel %vm7460_vm5, %v1101_v47, %v1105_v28  ;;  %v2719_v28 = vshll.u32 %v8440_v15, 16 }
 0x135   : > { %1596 = vrot.lane.b32.xlu1 %v8334_v27, %s7335_s17  ;;  %v10862_v21 = vsel %vm8406_vm1, 4294967295, %v10861_v21 }
 0x136   : > { %v1411_v45 = vpop.permute.xlu0 %1410  ;;  %10863 = vst [vmem:[#allocation2_spill] sm:$0xff] %v10862_v21  ;;  %v2721_v44 = vrot.slane %v2719_v28, 1 }
 0x137   : > { %v1413_v11 = vpop.permute.xlu1 %1412  ;;  %v1769_v26 = vsel %vm1747_vm8, %v1728_v3, %v1411_v45 }
 0x138   : > { %1637 = vrot.lane.b32.xlu0 %v8288_v48, %s7336_s18  ;;  %v1771_v42 = vsel %vm1747_vm8, %v1730_v18, %v1413_v11 }
 0x139   : > { %1639 = vrot.lane.b32.xlu1 %v8345_v58, %s7336_s18 }
 0x13a   : > { %v1454_v9 = vpop.permute.xlu0 %1453 }
 0x13b   : > { %v1456_v54 = vpop.permute.xlu1 %1455  ;;  %v1810_v34 = vsel %vm1788_vm9, %v1769_v26, %v1454_v9 }
 0x13c   : > { %1283 = vrot.lane.b32.xlu0 %v8267_v55, %s7332_s12  ;;  %v1082_v55 = vsel %vm7460_vm5, %v1077_v33, %v1081_v59  ;;  %v1812_v37 = vsel %vm1788_vm9, %v1771_v42, %v1456_v54  ;;  %v1122_v33 = vrot.slane %v8355_v10, 5 }
 0x13d   : > { %1285 = vrot.lane.b32.xlu1 %v8334_v27, %s7332_s12  ;;  %v8380_v8 = vcombine.low %v1072_v50, %v1082_v55 }
 0x13e   : > { %v1497_v31 = vpop.permute.xlu0 %1496 }
 0x13f   : > { %v1499_v25 = vpop.permute.xlu1 %1498  ;;  %v1851_v43 = vsel %vm1829_vm10, %v1810_v34, %v1497_v31 }
 0x140   : > { %1383 = vrot.lane.b32.xlu0 %v8288_v48, %s7331_s11  ;;  %v1089_v48 = vsel %vm7425_vm4, %v6401_v60, %v1088_v19  ;;  %v1853_v45 = vsel %vm1829_vm10, %v1812_v37, %v1499_v25  ;;  %v6402_v25 = vrot.slane %v8352_v7, 9  ;;  %v1124_v60 = vrot.slane %v1122_v33, 4 }
 0x141   : > { %1385 = vrot.lane.b32.xlu1 %v8345_v58, %s7331_s11  ;;  %v6465_v40 = vcombine.low %v1089_v48, %v1092_v30 }
 0x142   : > { %v1540_v39 = vpop.permute.xlu0 %1539  ;;  %v1123_v7 = vsel %vm7425_vm4, %v6402_v25, %v1122_v33  ;;  %v1126_v2 = vsel %vm7425_vm4, %v1124_v60, %v1125_v29  ;;  %vm3164_vm4 = vcmask 523264  }
 0x143   : > { %v1542_v41 = vpop.permute.xlu1 %1541  ;;  %v1892_v11 = vsel %vm1870_vm11, %v1851_v43, %v1540_v39 }
 0x144   : > { %1426 = vrot.lane.b32.xlu0 %v8314_v32, %s7329_s9  ;;  %v1894_v9 = vsel %vm1870_vm11, %v1853_v45, %v1542_v41 }
 0x145   : > { %1428 = vrot.lane.b32.xlu1 %v6463_v24, %s7329_s9 }
 0x146   : > { %v1583_v4 = vpop.permute.xlu0 %1582 }
 0x147   : > { %v1585_v0 = vpop.permute.xlu1 %1584  ;;  %v1933_v54 = vsel %vm1911_vm12, %v1892_v11, %v1583_v4 }
 0x148   : > { %1469 = vrot.lane.b32.xlu0 %v8334_v27, %s7333_s15  ;;  %v1111_v27 = vrot.slane %v1110_v5, 4  ;;  %v1935_v59 = vsel %vm1911_vm12, %v1894_v9, %v1585_v0 }
 0x149   : > { %1471 = vrot.lane.b32.xlu1 %v8380_v8, %s7333_s15 }
 0x14a   : > { %v1626_v56 = vpop.permute.xlu0 %1625  ;;  %v1116_v55 = vsel %vm7460_vm5, %v1111_v27, %v1115_v57 }
 0x14b   : > { %v1628_v19 = vpop.permute.xlu1 %1627  ;;  %v1974_v61 = vsel %vm1952_vm13, %v1933_v54, %v1626_v56  ;;  %v6467_v10 = vcombine.low %v1106_v22, %v1116_v55 }
 0x14c   : > { %v1976_v31 = vsel %vm1952_vm13, %v1935_v59, %v1628_v19  ;;  %6923 = vmatprep.mubr.msk.bf16.mxu0 %vm2028_vm14, %v1974_v61  ;;  %1512 = vrot.lane.b32.xlu0 %v8345_v58, %s7330_s10  ;;  %v2714_v58 = vshll.u32 %v8421_v1, 16 }
 0x14d   : > { %6924 = vmatmul.mubr.msk.bf16.gmra.mxu0 %vm2028_vm14, %v1976_v31  ;;  %1514 = vrot.lane.b32.xlu1 %v6465_v40, %s7330_s10 }
 0x14e   : > { %v1272_v50 = vpop.permute.xlu0 %1271  ;;  %v2716_v39 = vrot.slane %v2714_v58, 1 }
 0x14f   : > { %v1274_v53 = vpop.permute.xlu1 %1273  ;;  %v1684_v26 = vsel %vm1645_vm6, %v7901_v35, %v1272_v50 }
 0x150   : > { %1555 = vrot.lane.b32.xlu0 %v6463_v24, %s7334_s16  ;;  %v6468_v24 = vcombine.low %v1123_v7, %v1126_v2  ;;  %v2717_v48 = vor.u32 %v2716_v39, %v2712_v62  ;;  %v1687_v4 = vsel %vm1645_vm6, %v7956_v23, %v1274_v53 }
 0x151   : > { %1557 = vrot.lane.b32.xlu1 %v6466_v17, %s7334_s16  ;;  %s6604_s16 = sshll.u32 %s10925_s24, 8 }
 0x152   : > { %v1372_v52 = vpop.permute.xlu0 %1371  ;;  %v8456_v16 = vsel %vm2710_vm2, %v2717_v48, %v2721_v44 }
 0x153   : > { %v1374_v51 = vpop.permute.xlu1 %1373  ;;  %10865 = vst [vmem:[#allocation4_spill] sm:$0xff] %v8456_v16  ;;  %v1732_v5 = vsel %vm1706_vm7, %v1684_v26, %v1372_v52 }
 0x154   : > { %1598 = vrot.lane.b32.xlu0 %v8380_v8, %s7335_s17  ;;  %v1734_v42 = vsel %vm1706_vm7, %v1687_v4, %v1374_v51 }
 0x155   : > { %1600 = vrot.lane.b32.xlu1 %v6467_v10, %s7335_s17 }
 0x156   : > { %v1415_v41 = vpop.permute.xlu0 %1414 }
 0x157   : > { %v1417_v30 = vpop.permute.xlu1 %1416  ;;  %v1773_v34 = vsel %vm1747_vm8, %v1732_v5, %v1415_v41  ;;  %v8506_v5 = vld [vmem:[%s10834_s2] ss:$0 sm:$0xff] }
 0x158   : > { %1641 = vrot.lane.b32.xlu0 %v6465_v40, %s7336_s18  ;;  %v1775_v49 = vsel %vm1747_vm8, %v1734_v42, %v1417_v30 }
 0x159   : > { %1643 = vrot.lane.b32.xlu1 %v6468_v24, %s7336_s18  ;;  %s10581_s18 = scalar_lea.vmem %s10839_s7, %s6604_s16 }
 0x15a   : > { %v1458_v13 = vpop.permute.xlu0 %1457 }
 0x15b   : > { %v1460_v12 = vpop.permute.xlu1 %1459  ;;  %v1814_v37 = vsel %vm1788_vm9, %v1773_v34, %v1458_v13 }
 0x15c   : > { %3088 = vrot.lane.b32.xlu0 %v8421_v1, %s7338_s29  ;;  %v1816_v40 = vsel %vm1788_vm9, %v1775_v49, %v1460_v12 }
 0x15d   : > { %3052 = vrot.lane.b32.xlu1 %v8456_v16, %s7338_s29 }
 0x15e   : > { %v1501_v8 = vpop.permute.xlu0 %1500 }
 0x15f   : > { %v1503_v20 = vpop.permute.xlu1 %1502  ;;  %v1855_v45 = vsel %vm1829_vm10, %v1814_v37, %v1501_v8 }
 0x160   : > { %v1857_v35 = vsel %vm1829_vm10, %v1816_v40, %v1503_v20 }
 0x161   : > { %3054 = vrot.lane.b32.xlu1 %v8456_v16, %s7338_s29 }
 0x162   : > { %v1544_v3 = vpop.permute.xlu0 %1543 }
 0x163   : > { %v1546_v18 = vpop.permute.xlu1 %1545  ;;  %v1896_v23 = vsel %vm1870_vm11, %v1855_v45, %v1544_v3 }
 0x164   : > { %v1898_v11 = vsel %vm1870_vm11, %v1857_v35, %v1546_v18 }
 0x166   : > { %v1587_v0 = vpop.permute.xlu0 %1586 }
 0x167   : > { %v1589_v43 = vpop.permute.xlu1 %1588  ;;  %v1937_v47 = vsel %vm1911_vm12, %v1896_v23, %v1587_v0 }
 0x168   : > { %v1939_v9 = vsel %vm1911_vm12, %v1898_v11, %v1589_v43 }
 0x16a   : > { %v1630_v57 = vpop.permute.xlu0 %1629 }
 0x16b   : > { %v1632_v54 = vpop.permute.xlu1 %1631  ;;  %v1978_v56 = vsel %vm1952_vm13, %v1937_v47, %v1630_v57 }
 0x16c   : > { %v1980_v27 = vsel %vm1952_vm13, %v1939_v9, %v1632_v54  ;;  %6927 = vmatprep.mubr.msk.bf16.mxu0 %vm2028_vm14, %v1978_v56 }
 0x16d   : > { %6928 = vmatmul.mubr.msk.bf16.gmra.mxu0 %vm2028_vm14, %v1980_v27 }
 0x16e   : > { %v1276_v33 = vpop.permute.xlu0 %1275 }
 0x16f   : > { %v1278_v59 = vpop.permute.xlu1 %1277  ;;  %v1690_v52 = vsel %vm1645_vm6, %v8015_v6, %v1276_v33 }
 0x170   : > { %v6905_v19 = vpop.f32.mrf.mxu0  ;;  %v1693_v2 = vsel %vm1645_vm6, %v8067_v63, %v1278_v59 }
 0x172   : > { %v2107_v61 = vpop.f32.mrf.mxu0  ;;  %v1376_v31 = vpop.permute.xlu0 %1375 }
 0x173   : > { %v1378_v17 = vpop.permute.xlu1 %1377  ;;  %v1736_v62 = vsel %vm1706_vm7, %v1690_v52, %v1376_v31 }
 0x174   : > { %v6906_v22 = vpop.f32.mrf.mxu0  ;;  %v1738_v39 = vsel %vm1706_vm7, %v1693_v2, %v1378_v17 }
 0x176   : > { %v2110_v25 = vpop.f32.mrf.mxu0  ;;  %v1419_v50 = vpop.permute.xlu0 %1418 }
 0x177   : > { %v1421_v55 = vpop.permute.xlu1 %1420  ;;  %v1777_v28 = vsel %vm1747_vm8, %v1736_v62, %v1419_v50 }
 0x178   : > { %v1779_v24 = vsel %vm1747_vm8, %v1738_v39, %v1421_v55 }
 0x17a   : > { %v1462_v60 = vpop.permute.xlu0 %1461 }
 0x17b   : > { %v1464_v29 = vpop.permute.xlu1 %1463  ;;  %v1818_v41 = vsel %vm1788_vm9, %v1777_v28, %v1462_v60 }
 0x17c   : > { %v1820_v44 = vsel %vm1788_vm9, %v1779_v24, %v1464_v29 }
 0x17e   : > { %v1505_v58 = vpop.permute.xlu0 %1504 }
 0x17f   : > { %v1507_v53 = vpop.permute.xlu1 %1506  ;;  %v1859_v30 = vsel %vm1829_vm10, %v1818_v41, %v1505_v58 }
 0x180   : > { %v1861_v6 = vsel %vm1829_vm10, %v1820_v44, %v1507_v53 }
 0x182   : > { %v1548_v10 = vpop.permute.xlu0 %1547 }
 0x183   : > { %v1550_v7 = vpop.permute.xlu1 %1549  ;;  %v1900_v63 = vsel %vm1870_vm11, %v1859_v30, %v1548_v10 }
 0x184   : > { %v1902_v13 = vsel %vm1870_vm11, %v1861_v6, %v1550_v7 }
 0x186   : > { %v1591_v51 = vpop.permute.xlu0 %1590 }
 0x187   : > { %v1593_v48 = vpop.permute.xlu1 %1592  ;;  %v1941_v12 = vsel %vm1911_vm12, %v1900_v63, %v1591_v51 }
 0x188   : > { %v1943_v20 = vsel %vm1911_vm12, %v1902_v13, %v1593_v48 }
 0x18a   : > { %v1634_v8 = vpop.permute.xlu0 %1633 }
 0x18b   : > { %v1636_v3 = vpop.permute.xlu1 %1635  ;;  %v1982_v18 = vsel %vm1952_vm13, %v1941_v12, %v1634_v8 }
 0x18c   : > { %v1984_v26 = vsel %vm1952_vm13, %v1943_v20, %v1636_v3  ;;  %6931 = vmatprep.mubr.msk.bf16.mxu0 %vm2028_vm14, %v1982_v18 }
 0x18d   : > { %v6909_v4 = vpop.f32.mrf.mxu0  ;;  %6932 = vmatmul.mubr.msk.bf16.gmra.mxu0 %vm2028_vm14, %v1984_v26 }
 0x18e   : > { %v1280_v42 = vpop.permute.xlu0 %1279  ;;  %v2132_v49 = vadd.f32 %v6909_v4, %v8506_v5 }
 0x18f   : > { %v1282_v34 = vpop.permute.xlu1 %1281  ;;  %v2123_v0 = vpop.f32.mrf.mxu0  ;;  %v1696_v24 = vsel %vm1645_vm6, %v8128_v38, %v1280_v42 }
 0x190   : > { %v2124_v43 = vadd.f32 %v8506_v5, %v2123_v0  ;;  %v2272_v11 = vmax.f32 %v2132_v49, 0.0  ;;  %v1699_v6 = vsel %vm1645_vm6, %v8186_v36, %v1282_v34 }
 0x191   : > { %v6910_v37 = vpop.f32.mrf.mxu0 }
 0x192   : > { %v2135_v40 = vadd.f32 %v6910_v37, %v8506_v5  ;;  %v1380_v45 = vpop.permute.xlu0 %1379  ;;  %v2270_v9 = vmax.f32 %v2124_v43, 0.0 }
 0x193   : > { %v1382_v35 = vpop.permute.xlu1 %1381  ;;  %v2126_v23 = vpop.f32.mrf.mxu0  ;;  %v1740_v63 = vsel %vm1706_vm7, %v1696_v24, %v1380_v45  ;;  %v7106_v24 = vld [vmem:[%s10835_s3 + $0x20] sm:$0xff]  }
 0x194   : > { %v2273_v47 = vmax.f32 %v2135_v40, 0.0  ;;  %v2127_v57 = vadd.f32 %v8506_v5, %v2126_v23  ;;  %v1742_v38 = vsel %vm1706_vm7, %v1699_v6, %v1382_v35 }
 0x196   : > { %v2470_v54 = vpack.c.bf16 %v2273_v47, %v2272_v11  ;;  %v2271_v56 = vmax.f32 %v2127_v57, 0.0  ;;  %v1423_v27 = vpop.permute.xlu0 %1422  ;;  %v7103_v11 = vld [vmem:[%s10835_s3 + $0x38] sm:$0xff]  }
 0x197   : > { %v1425_v33 = vpop.permute.xlu1 %1424  ;;  %v1781_v3 = vsel %vm1747_vm8, %v1740_v63, %v1423_v27 }
 0x198   : > { %v2509_v59 = vshrl.u32 %v2470_v54, 16  ;;  %v2469_v19 = vpack.c.bf16 %v2271_v56, %v2270_v9  ;;  %v2512_v31 = vshll.u32 %v2470_v54, 16  ;;  %v1783_v26 = vsel %vm1747_vm8, %v1742_v38, %v1425_v33  ;;  %v7104_v33 = vld [vmem:[%s10835_s3 + $0x30] sm:$0xff]   ;;  %v7107_v38 = vld [vmem:[%s10835_s3 + $0x18] sm:$0xff]  }
 0x19a   : > { %v2511_v61 = vrot.slane %v2509_v59, 7  ;;  %v2502_v17 = vshrl.u32 %v2469_v19, 16  ;;  %v1466_v22 = vpop.permute.xlu0 %1465  ;;  %v2505_v60 = vshll.u32 %v2469_v19, 16 }
 0x19b   : > { %v1468_v25 = vpop.permute.xlu1 %1467  ;;  %v1822_v36 = vsel %vm1788_vm9, %v1781_v3, %v1466_v22 }
 0x19c   : > { %v2514_v50 = vor.u32 %v2512_v31, %v2511_v61  ;;  %v2504_v55 = vrot.slane %v2502_v17, 7  ;;  %v8532_v28 = vsel %vm8406_vm1, %v2511_v61, 0  ;;  %v1824_v0 = vsel %vm1788_vm9, %v1783_v26, %v1468_v25 }
 0x19d   : > { %v2755_v20 = vshll.u32 %v8532_v28, 16 }
 0x19e   : > { %v8515_v29 = vsel %vm8406_vm1, %v2504_v55, 0  ;;  %v1509_v58 = vpop.permute.xlu0 %1508  ;;  %v2507_v53 = vor.u32 %v2505_v60, %v2504_v55  ;;  %v8519_v10 = vsel %vm8406_vm1, 0, %v2514_v50  ;;  %v7105_v50 = vld [vmem:[%s10835_s3 + $0x28] sm:$0xff]  }
 0x19f   : > { %v1511_v7 = vpop.permute.xlu1 %1510  ;;  %v2750_v52 = vshll.u32 %v8519_v10, 16  ;;  %v2743_v39 = vshll.u32 %v8515_v29, 16  ;;  %v2748_v8 = vshrl.u32 %v8519_v10, 16  ;;  %v1863_v49 = vsel %vm1829_vm10, %v1822_v36, %v1509_v58 }
 0x1a0   : > { %v8524_v2 = vsel %vm8406_vm1, 0, %v2507_v53  ;;  %v1865_v37 = vsel %vm1829_vm10, %v1824_v0, %v1511_v7  ;;  %v2757_v40 = vrot.slane %v2755_v20, 1 }
 0x1a1   : > { %3090 = vrot.lane.b32.xlu0 %v8524_v2, %s7338_s29  ;;  %v2738_v62 = vshll.u32 %v8524_v2, 16  ;;  %v2736_v48 = vshrl.u32 %v8524_v2, 16  ;;  %v2752_v30 = vrot.slane %v2750_v52, 1  ;;  %v2745_v12 = vrot.slane %v2743_v39, 1 }
 0x1a2   : > { %v1552_v51 = vpop.permute.xlu0 %1551 }
 0x1a3   : > { %v1554_v41 = vpop.permute.xlu1 %1553  ;;  %v2740_v44 = vrot.slane %v2738_v62, 1  ;;  %v2753_v34 = vor.u32 %v2752_v30, %v2748_v8  ;;  %v1904_v43 = vsel %vm1870_vm11, %v1863_v49, %v1552_v51 }
 0x1a4   : > { %v1906_v45 = vsel %vm1870_vm11, %v1865_v37, %v1554_v41 }
 0x1a5   : > { %3092 = vrot.lane.b32.xlu0 %v8519_v10, %s7338_s29  ;;  %v2741_v13 = vor.u32 %v2740_v44, %v2736_v48  ;;  %v8564_v9 = vsel %vm2710_vm2, %v2753_v34, %v2757_v40 }
 0x1a6   : > { %v1595_v18 = vpop.permute.xlu0 %1594 }
 0x1a7   : > { %v1597_v4 = vpop.permute.xlu1 %1596  ;;  %v8549_v42 = vsel %vm2710_vm2, %v2741_v13, %v2745_v12  ;;  %v1945_v35 = vsel %vm1911_vm12, %v1904_v43, %v1595_v18  ;;  %v7108_v43 = vld [vmem:[%s10835_s3 + $0x10] sm:$0xff]  }
 0x1a8   : > { %3056 = vrot.lane.b32.xlu1 %v8549_v42, %s7338_s29  ;;  %v1947_v47 = vsel %vm1911_vm12, %v1906_v45, %v1597_v4 }
 0x1aa   : > { %v1638_v23 = vpop.permute.xlu0 %1637 }
 0x1ab   : > { %v1640_v57 = vpop.permute.xlu1 %1639  ;;  %v1986_v54 = vsel %vm1952_vm13, %v1945_v35, %v1638_v23 }
 0x1ac   : > { %v1988_v56 = vsel %vm1952_vm13, %v1947_v47, %v1640_v57  ;;  %3058 = vrot.lane.b32.xlu1 %v8564_v9, %s7338_s29  ;;  %6935 = vmatprep.mubr.msk.bf16.mxu1 %vm2028_vm14, %v1986_v54 }
 0x1ad   : > { %v6913_v27 = vpop.f32.mrf.mxu0  ;;  %6936 = vmatmul.mubr.msk.bf16.vlgmr.msra.gmra.mxu1 %vm2028_vm14, %v1988_v56 }
 0x1ae   : > { %3703 = vmatpush1.bf16.msra.mxu1 %v7103_v11  ;;  %v1284_v59 = vpop.permute.xlu0 %1283  ;;  %v2148_v31 = vadd.f32 %v6913_v27, %v8506_v5  ;;  %v7109_v27 = vld [vmem:[%s10835_s3 + $0x8] sm:$0xff]  }
 0x1af   : > { %v2139_v19 = vpop.f32.mrf.mxu0  ;;  %3704 = vmatprep.subr.bf16.mxu1 %v10840_v46  ;;  %v1286_v61 = vpop.permute.xlu1 %1285  ;;  %v1702_v41 = vsel %vm1645_vm6, %v8250_v14, %v1284_v59 }
 0x1b0   : > { %v2140_v22 = vadd.f32 %v8506_v5, %v2139_v19  ;;  %v2276_v53 = vmax.f32 %v2148_v31, 0.0  ;;  %v1705_v44 = vsel %vm1645_vm6, %v8314_v32, %v1286_v61  ;;  %vm6257_vm6 = vcmask 23552  }
 0x1b1   : > { %v6914_v17 = vpop.f32.mrf.mxu0 }
 0x1b2   : > { %v2151_v25 = vadd.f32 %v6914_v17, %v8506_v5  ;;  %3705 = vmatpush1.bf16.msra.mxu1 %v7104_v33  ;;  %v1384_v55 = vpop.permute.xlu0 %1383  ;;  %v2274_v62 = vmax.f32 %v2140_v22, 0.0 }
 0x1b3   : > { %v2142_v60 = vpop.f32.mrf.mxu0  ;;  %3706 = vmatprep.subr.bf16.mxu1 %v10840_v46  ;;  %v1386_v58 = vpop.permute.xlu1 %1385  ;;  %v1744_v13 = vsel %vm1706_vm7, %v1702_v41, %v1384_v55  ;;  %v2964_v41 = vrot.slane %v8421_v1, 1 }
 0x1b4   : > { %v2277_v7 = vmax.f32 %v2151_v25, 0.0  ;;  %v2143_v52 = vadd.f32 %v8506_v5, %v2142_v60  ;;  %v1746_v14 = vsel %vm1706_vm7, %v1705_v44, %v1386_v58 }
 0x1b6   : > { %v2472_v39 = vpack.c.bf16 %v2277_v7, %v2276_v53  ;;  %v2275_v51 = vmax.f32 %v2143_v52, 0.0  ;;  %3707 = vmatpush1.bf16.msra.mxu1 %v7105_v50  ;;  %v1427_v48 = vpop.permute.xlu0 %1426  ;;  %v7110_v53 = vld [vmem:[%s10835_s3] sm:$0xff]  }
 0x1b7   : > { %3708 = vmatprep.subr.bf16.mxu1 %v10840_v46  ;;  %v1429_v30 = vpop.permute.xlu1 %1428  ;;  %v1785_v4 = vsel %vm1747_vm8, %v1744_v13, %v1427_v48  ;;  %v2965_v48 = vrot.slane %v8440_v15, 1 }
 0x1b8   : > { %v2523_v6 = vshrl.u32 %v2472_v39, 16  ;;  %v2471_v63 = vpack.c.bf16 %v2275_v51, %v2274_v62  ;;  %v2526_v8 = vshll.u32 %v2472_v39, 16  ;;  %v1787_v34 = vsel %vm1747_vm8, %v1746_v14, %v1429_v30  ;;  %v7112_v14 = vld [vmem:[%s10835_s3 + $0x70] sm:$0xff]  }
 0x1ba   : > { %v2525_v12 = vrot.slane %v2523_v6, 7  ;;  %v2516_v20 = vshrl.u32 %v2471_v63, 16  ;;  %3709 = vmatpush1.bf16.msra.mxu1 %v7106_v24  ;;  %v1470_v3 = vpop.permute.xlu0 %1469  ;;  %v2519_v36 = vshll.u32 %v2471_v63, 16  ;;  %v7111_v6 = vld [vmem:[%s10835_s3 + $0x78] sm:$0xff]  }
 0x1bb   : > { %3710 = vmatprep.subr.bf16.mxu1 %v10840_v46  ;;  %v1472_v18 = vpop.permute.xlu1 %1471  ;;  %v1826_v35 = vsel %vm1788_vm9, %v1785_v4, %v1470_v3 }
 0x1bc   : > { %v2528_v32 = vor.u32 %v2526_v8, %v2525_v12  ;;  %v2518_v26 = vrot.slane %v2516_v20, 7  ;;  %v1828_v47 = vsel %vm1788_vm9, %v1787_v34, %v1472_v18  ;;  %v8621_v57 = vsel %vm8406_vm1, %v2525_v12, 0 }
 0x1bd   : > { %v2779_v25 = vshll.u32 %v8621_v57, 16  ;;  %v8666_v20 = vsel %vm2963_vm3, %v2964_v41, %v2965_v48 }
 0x1be   : > { %v8602_v0 = vsel %vm8406_vm1, %v2518_v26, 0  ;;  %v2521_v49 = vor.u32 %v2519_v36, %v2518_v26  ;;  %v8606_v37 = vsel %vm8406_vm1, 0, %v2528_v32  ;;  %3711 = vmatpush1.bf16.msra.mxu1 %v7107_v38  ;;  %v1513_v40 = vpop.permute.xlu0 %1512  ;;  %10866 = vst [vmem:[#allocation5_spill] sm:$0xff] %v8666_v20 }
 0x1bf   : > { %v2774_v45 = vshll.u32 %v8606_v37, 16  ;;  %3712 = vmatprep.subr.bf16.mxu1 %v10840_v46  ;;  %v1515_v23 = vpop.permute.xlu1 %1514  ;;  %v2767_v56 = vshll.u32 %v8602_v0, 16  ;;  %v1867_v33 = vsel %vm1829_vm10, %v1826_v35, %v1513_v40  ;;  %v2772_v60 = vshrl.u32 %v8606_v37, 16 }
 0x1c0   : > { %v8616_v11 = vsel %vm8406_vm1, 0, %v2521_v49  ;;  %v1869_v17 = vsel %vm1829_vm10, %v1828_v47, %v1515_v23  ;;  %v2781_v44 = vrot.slane %v2779_v25, 1  ;;  %v7113_v49 = vld [vmem:[%s10835_s3 + $0x68] sm:$0xff]  }
 0x1c1   : > { %3094 = vrot.lane.b32.xlu0 %v8616_v11, %s7338_s29  ;;  %v2762_v54 = vshll.u32 %v8616_v11, 16  ;;  %v2760_v19 = vshrl.u32 %v8616_v11, 16  ;;  %v2776_v31 = vrot.slane %v2774_v45, 1  ;;  %v2769_v55 = vrot.slane %v2767_v56, 1  ;;  %v7114_v56 = vld [vmem:[%s10835_s3 + $0x60] sm:$0xff]  }
 0x1c2   : > { %3713 = vmatpush1.bf16.msra.mxu1 %v7108_v43  ;;  %v1556_v59 = vpop.permute.xlu0 %1555 }
 0x1c3   : > { %v2764_v61 = vrot.slane %v2762_v54, 1  ;;  %3714 = vmatprep.subr.bf16.mxu1 %v10840_v46  ;;  %v1558_v22 = vpop.permute.xlu1 %1557  ;;  %v1908_v58 = vsel %vm1870_vm11, %v1867_v33, %v1556_v59  ;;  %v2777_v39 = vor.u32 %v2776_v31, %v2772_v60  ;;  %v7115_v31 = vld [vmem:[%s10835_s3 + $0x58] sm:$0xff]  }
 0x1c4   : > { %v1910_v7 = vsel %vm1870_vm11, %v1869_v17, %v1558_v22 }
 0x1c5   : > { %3096 = vrot.lane.b32.xlu0 %v8606_v37, %s7338_s29  ;;  %v2765_v50 = vor.u32 %v2764_v61, %v2760_v19  ;;  %v8657_v13 = vsel %vm2710_vm2, %v2777_v39, %v2781_v44 }
 0x1c6   : > { %3715 = vmatpush1.bf16.msra.mxu1 %v7109_v27  ;;  %v1599_v52 = vpop.permute.xlu0 %1598 }
 0x1c7   : > { %v8644_v62 = vsel %vm2710_vm2, %v2765_v50, %v2769_v55  ;;  %3716 = vmatprep.subr.bf16.mxu1 %v10840_v46  ;;  %v1601_v51 = vpop.permute.xlu1 %1600  ;;  %v1949_v24 = vsel %vm1911_vm12, %v1908_v58, %v1599_v52  ;;  %v7116_v58 = vld [vmem:[%s10835_s3 + $0x50] sm:$0xff]  }
 0x1c8   : > { %3060 = vrot.lane.b32.xlu1 %v8644_v62, %s7338_s29  ;;  %v1951_v30 = vsel %vm1911_vm12, %v1910_v7, %v1601_v51 }
 0x1ca   : > { %3717 = vmatpush1.bf16.msra.mxu1 %v7110_v53  ;;  %v1642_v63 = vpop.permute.xlu0 %1641 }
 0x1cb   : > { %3718 = vmatprep.subr.bf16.mxu1 %v10840_v46  ;;  %v1990_v12 = vsel %vm1952_vm13, %v1949_v24, %v1642_v63  ;;  %v1644_v8 = vpop.permute.xlu1 %1643  ;;  %v7117_v24 = vld [vmem:[%s10835_s3 + $0x48] sm:$0xff]  }
 0x1cc   : > { %3062 = vrot.lane.b32.xlu1 %v8657_v13, %s7338_s29  ;;  %v1992_v15 = vsel %vm1952_vm13, %v1951_v30, %v1644_v8  ;;  %6939 = vmatprep.mubr.msk.bf16.mxu1 %vm2028_vm14, %v1990_v12  ;;  %v7118_v8 = vld [vmem:[%s10835_s3 + $0x40] sm:$0xff]  }
 0x1cd   : > { %v6917_v38 = vpop.f32.mrf.mxu0  ;;  %6940 = vmatmul.mubr.msk.bf16.gmra.mxu1 %vm2028_vm14, %v1992_v15 }
 0x1ce   : > { %3719 = vmatpush2.bf16.msra.mxu1 %v7111_v6  ;;  %v3089_v3 = vpop.permute.xlu0 %3088  ;;  %v2164_v26 = vadd.f32 %v6917_v38, %v8506_v5 }
 0x1cf   : > { %v2155_v18 = vpop.f32.mrf.mxu0  ;;  %3720 = vmatprep.subr.bf16.mxu1 %v10840_v46  ;;  %v3221_v32 = vsel %vm3164_vm4, %v8666_v20, %v3089_v3 }
 0x1d0   : > { %3734 = vmatprep.mubr.bf16.mxu1 %v3221_v32  ;;  %v2156_v4 = vadd.f32 %v8506_v5, %v2155_v18  ;;  %v2280_v40 = vmax.f32 %v2164_v26, 0.0 }
 0x1d1   : > { %v6918_v36 = vpop.f32.mrf.mxu0 }
 0x1d2   : > { %v2167_v34 = vadd.f32 %v6918_v36, %v8506_v5  ;;  %3721 = vmatpush2.bf16.msra.mxu1 %v7112_v14  ;;  %v2278_v23 = vmax.f32 %v2156_v4, 0.0  ;;  %v3053_v14 = vpop.permute.xlu1 %3052 }
 0x1d3   : > { %v2158_v43 = vpop.f32.mrf.mxu0  ;;  %3722 = vmatprep.subr.bf16.mxu1 %v10840_v46  ;;  %v3166_v18 = vsel %vm3164_vm4, %v8421_v1, %v3053_v14 }
 0x1d4   : > { %v2281_v45 = vmax.f32 %v2167_v34, 0.0  ;;  %v2159_v35 = vadd.f32 %v8506_v5, %v2158_v43 }
 0x1d6   : > { %v2474_v47 = vpack.c.bf16 %v2281_v45, %v2280_v40  ;;  %v2279_v54 = vmax.f32 %v2159_v35, 0.0  ;;  %3723 = vmatpush2.bf16.msra.mxu1 %v7113_v49 }
 0x1d7   : > { %3724 = vmatprep.subr.bf16.mxu1 %v10840_v46 }
 0x1d8   : > { %v2537_v27 = vshrl.u32 %v2474_v47, 16  ;;  %v2473_v33 = vpack.c.bf16 %v2279_v54, %v2278_v23  ;;  %v2540_v19 = vshll.u32 %v2474_v47, 16 }
 0x1da   : > { %v2539_v59 = vrot.slane %v2537_v27, 7  ;;  %v2530_v61 = vshrl.u32 %v2473_v33, 16  ;;  %3725 = vmatpush2.bf16.msra.mxu1 %v7114_v56  ;;  %v2533_v25 = vshll.u32 %v2473_v33, 16 }
 0x1db   : > { %3726 = vmatprep.subr.bf16.mxu1 %v10840_v46 }
 0x1dc   : > { %v2542_v17 = vor.u32 %v2540_v19, %v2539_v59  ;;  %v2532_v22 = vrot.slane %v2530_v61, 7  ;;  %v8714_v51 = vsel %vm8406_vm1, %v2539_v59, 0 }
 0x1dd   : > { %v2803_v12 = vshll.u32 %v8714_v51, 16 }
 0x1de   : > { %v8693_v50 = vsel %vm8406_vm1, %v2532_v22, 0  ;;  %v2535_v55 = vor.u32 %v2533_v25, %v2532_v22  ;;  %v8697_v60 = vsel %vm8406_vm1, 0, %v2542_v17  ;;  %3727 = vmatpush2.bf16.msra.mxu1 %v7115_v31 }
 0x1df   : > { %v2798_v53 = vshll.u32 %v8697_v60, 16  ;;  %3728 = vmatprep.subr.bf16.mxu1 %v10840_v46  ;;  %v2791_v39 = vshll.u32 %v8693_v50, 16  ;;  %v2796_v63 = vshrl.u32 %v8697_v60, 16  ;;  %v2805_v3 = vrot.slane %v2803_v12, 1 }
 0x1e0   : > { %v8706_v7 = vsel %vm8406_vm1, 0, %v2535_v55 }
 0x1e1   : > { %3098 = vrot.lane.b32.xlu0 %v8706_v7, %s7338_s29  ;;  %v2786_v52 = vshll.u32 %v8706_v7, 16  ;;  %v2784_v41 = vshrl.u32 %v8706_v7, 16  ;;  %v2800_v44 = vrot.slane %v2798_v53, 1  ;;  %v2793_v6 = vrot.slane %v2791_v39, 1  ;;  %v7119_v53 = vld [vmem:[%s10835_s3 + $0x118] sm:$0xff]  }
 0x1e2   : > { %3729 = vmatpush2.bf16.msra.mxu1 %v7116_v58 }
 0x1e3   : > { %v2788_v48 = vrot.slane %v2786_v52, 1  ;;  %3730 = vmatprep.subr.bf16.mxu1 %v10840_v46  ;;  %v2801_v38 = vor.u32 %v2800_v44, %v2796_v63 }
 0x1e5   : > { %3100 = vrot.lane.b32.xlu0 %v8697_v60, %s7338_s29  ;;  %v2789_v30 = vor.u32 %v2788_v48, %v2784_v41  ;;  %v8737_v32 = vsel %vm2710_vm2, %v2801_v38, %v2805_v3 }
 0x1e6   : > { %3731 = vmatpush2.bf16.msra.mxu1 %v7117_v24 }
 0x1e7   : > { %v8729_v15 = vsel %vm2710_vm2, %v2789_v30, %v2793_v6  ;;  %3732 = vmatprep.subr.bf16.mxu1 %v10840_v46 }
 0x1e8   : > { %3064 = vrot.lane.b32.xlu1 %v8729_v15, %s7338_s29 }
 0x1ea   : > { %3733 = vmatpush2.bf16.msra.mxu1 %v7118_v8 }
 0x1eb   : > { %6943 = vmatprep.subr.bf16.mxu1 %v7119_v53 }
 0x1ec   : > { %3066 = vrot.lane.b32.xlu1 %v8737_v32, %s7338_s29 }
 0x1ed   : > { %v6921_v26 = vpop.f32.mrf.mxu0  ;;  %3735 = vmatmul.mubr.bf16.vlgmr.msra.gmra.mxu1 %v3166_v18 }
 0x1ee   : > { %v2180_v4 = vadd.f32 %v6921_v26, %v8506_v5  ;;  %6944 = vmatpush3.bf16.msra.mxu1 %v7119_v53 }
 0x1ef   : > { %v2171_v36 = vpop.f32.mrf.mxu0 }
 0x1f0   : > { %v2172_v49 = vadd.f32 %v8506_v5, %v2171_v36  ;;  %v2284_v45 = vmax.f32 %v2180_v4, 0.0 }
 0x1f1   : > { %v6922_v34 = vpop.f32.mrf.mxu0 }
 0x1f2   : > { %v2183_v43 = vadd.f32 %v6922_v34, %v8506_v5  ;;  %v2282_v47 = vmax.f32 %v2172_v49, 0.0  ;;  %v3055_v49 = vpop.permute.xlu1 %3054 }
 0x1f3   : > { %v2174_v40 = vpop.f32.mrf.mxu0 }
 0x1f4   : > { %v2285_v35 = vmax.f32 %v2183_v43, 0.0  ;;  %v2175_v23 = vadd.f32 %v8506_v5, %v2174_v40 }
 0x1f6   : > { %v2476_v54 = vpack.c.bf16 %v2285_v35, %v2284_v45  ;;  %v2283_v56 = vmax.f32 %v2175_v23, 0.0 }
 0x1f8   : > { %v2551_v27 = vshrl.u32 %v2476_v54, 16  ;;  %v2475_v33 = vpack.c.bf16 %v2283_v56, %v2282_v47  ;;  %v2554_v19 = vshll.u32 %v2476_v54, 16  ;;  %v3169_v47 = vsel %vm3164_vm4, %v8421_v1, %v3055_v49  ;;  %v7120_v49 = vld [vmem:[%s10835_s3 + $0x110] sm:$0xff]  }
 0x1f9   : > { %v2970_v54 = vrot.slane %v8524_v2, 1  ;;  %6945 = vmatprep.subr.bf16.mxu1 %v7120_v49 }
 0x1fa   : > { %v2553_v59 = vrot.slane %v2551_v27, 7  ;;  %v2544_v61 = vshrl.u32 %v2475_v33, 16  ;;  %v2547_v22 = vshll.u32 %v2475_v33, 16  ;;  %6946 = vmatpush3.bf16.msra.mxu1 %v7120_v49 }
 0x1fc   : > { %v2556_v31 = vor.u32 %v2554_v19, %v2553_v59  ;;  %v2546_v17 = vrot.slane %v2544_v61, 7  ;;  %v8767_v48 = vsel %vm8406_vm1, %v2553_v59, 0  ;;  %v2971_v19 = vrot.slane %v8515_v29, 1 }
 0x1fd   : > { %v2827_v38 = vshll.u32 %v8767_v48, 16 }
 0x1fe   : > { %v8747_v25 = vsel %vm8406_vm1, %v2546_v17, 0  ;;  %v2549_v55 = vor.u32 %v2547_v22, %v2546_v17  ;;  %v8751_v58 = vsel %vm8406_vm1, 0, %v2556_v31 }
 0x1ff   : > { %v2822_v52 = vshll.u32 %v8751_v58, 16  ;;  %v2815_v41 = vshll.u32 %v8747_v25, 16  ;;  %v2820_v8 = vshrl.u32 %v8751_v58, 16  ;;  %v2829_v18 = vrot.slane %v2827_v38, 1 }
 0x200   : > { %v8759_v39 = vsel %vm8406_vm1, 0, %v2549_v55  ;;  %v8795_v55 = vsel %vm2963_vm3, %v2970_v54, %v2971_v19 }
 0x201   : > { %3102 = vrot.lane.b32.xlu0 %v8759_v39, %s7338_s29  ;;  %v2810_v24 = vshll.u32 %v8759_v39, 16  ;;  %v2808_v44 = vshrl.u32 %v8759_v39, 16  ;;  %v2824_v6 = vrot.slane %v2822_v52, 1  ;;  %v2817_v12 = vrot.slane %v2815_v41, 1 }
 0x203   : > { %v2812_v30 = vrot.slane %v2810_v24, 1  ;;  %v2825_v3 = vor.u32 %v2824_v6, %v2820_v8 }
 0x205   : > { %3104 = vrot.lane.b32.xlu0 %v8751_v58, %s7338_s29  ;;  %v2813_v63 = vor.u32 %v2812_v30, %v2808_v44  ;;  %v8780_v26 = vsel %vm2710_vm2, %v2825_v3, %v2829_v18 }
 0x207   : > { %v8775_v14 = vsel %vm2710_vm2, %v2813_v63, %v2817_v12 }
 0x208   : > { %3068 = vrot.lane.b32.xlu1 %v8775_v14, %s7338_s29 }
 0x20c   : > { %3070 = vrot.lane.b32.xlu1 %v8780_v26, %s7338_s29 }
 0x20d   : > { %v6925_v36 = vpop.f32.mrf.mxu0 }
 0x20e   : > { %v2196_v34 = vadd.f32 %v6925_v36, %v8506_v5 }
 0x20f   : > { %v2187_v4 = vpop.f32.mrf.mxu0 }
 0x210   : > { %v2188_v40 = vadd.f32 %v8506_v5, %v2187_v4  ;;  %v2288_v56 = vmax.f32 %v2196_v34, 0.0 }
 0x211   : > { %v6926_v43 = vpop.f32.mrf.mxu0 }
 0x212   : > { %v2199_v45 = vadd.f32 %v6926_v43, %v8506_v5  ;;  %v2286_v61 = vmax.f32 %v2188_v40, 0.0 }
 0x213   : > { %v2190_v35 = vpop.f32.mrf.mxu0  ;;  %v3091_v23 = vpop.permute.xlu0 %3090 }
 0x214   : > { %v2289_v27 = vmax.f32 %v2199_v45, 0.0  ;;  %v2191_v33 = vadd.f32 %v8506_v5, %v2190_v35  ;;  %v3225_v59 = vsel %vm3164_vm4, %v8666_v20, %v3091_v23 }
 0x215   : > { %3742 = vmatprep.mubr.bf16.mxu1 %v3225_v59 }
 0x216   : > { %v2478_v31 = vpack.c.bf16 %v2289_v27, %v2288_v56  ;;  %v2287_v17 = vmax.f32 %v2191_v33, 0.0  ;;  %3743 = vmatmul.mubr.bf16.gmra.mxu1 %v3169_v47 }
 0x217   : > { %v3093_v22 = vpop.permute.xlu0 %3092 }
 0x218   : > { %v2565_v53 = vshrl.u32 %v2478_v31, 16  ;;  %v2477_v52 = vpack.c.bf16 %v2287_v17, %v2286_v61  ;;  %v3229_v24 = vsel %vm3164_vm4, %v8795_v55, %v3093_v22  ;;  %v2568_v44 = vshll.u32 %v2478_v31, 16 }
 0x219   : > { %3750 = vmatprep.mubr.bf16.mxu1 %v3229_v24  ;;  %v2973_v17 = vrot.slane %v8519_v10, 1 }
 0x21a   : > { %v2567_v41 = vrot.slane %v2565_v53, 7  ;;  %v2558_v30 = vshrl.u32 %v2477_v52, 16  ;;  %v3057_v6 = vpop.permute.xlu1 %3056  ;;  %v2561_v8 = vshll.u32 %v2477_v52, 16  ;;  %v2974_v52 = vrot.slane %v8532_v28, 1 }
 0x21b   : > { %v3172_v29 = vsel %vm3164_vm4, %v8524_v2, %v3057_v6 }
 0x21c   : > { %v2570_v63 = vor.u32 %v2568_v44, %v2567_v41  ;;  %v2560_v12 = vrot.slane %v2558_v30, 7  ;;  %3911 = vmatprep.mubr.bf16.mxu0 %v3172_v29  ;;  %v8823_v43 = vsel %vm8406_vm1, %v2567_v41, 0 }
 0x21d   : > { %v2851_v56 = vshll.u32 %v8823_v43, 16 }
 0x21e   : > { %v8803_v38 = vsel %vm8406_vm1, %v2560_v12, 0  ;;  %3751 = vmatmul.mubr.bf16.gmra.mxu1 %v3172_v29  ;;  %v2563_v3 = vor.u32 %v2561_v8, %v2560_v12  ;;  %v8807_v18 = vsel %vm8406_vm1, 0, %v2570_v63  ;;  %v3059_v24 = vpop.permute.xlu1 %3058  ;;  %v8846_v29 = vsel %vm2963_vm3, %v2973_v17, %v2974_v52 }
 0x21f   : > { %v2846_v36 = vshll.u32 %v8807_v18, 16  ;;  %v2839_v34 = vshll.u32 %v8803_v38, 16  ;;  %v2844_v54 = vshrl.u32 %v8807_v18, 16  ;;  %v2853_v59 = vrot.slane %v2851_v56, 1 }
 0x220   : > { %v8812_v4 = vsel %vm8406_vm1, 0, %v2563_v3  ;;  %v2976_v63 = vrot.slane %v8616_v11, 1  ;;  %v8854_v28 = vsel %vm3164_vm4, %v8519_v10, %v3059_v24  ;;  %v7121_v24 = vld [vmem:[%s10835_s3 + $0xb8] sm:$0xff]  }
 0x221   : > { %3106 = vrot.lane.b32.xlu0 %v8812_v4, %s7338_s29  ;;  %v2834_v2 = vshll.u32 %v8812_v4, 16  ;;  %v2832_v40 = vshrl.u32 %v8812_v4, 16  ;;  %v2848_v35 = vrot.slane %v2846_v36, 1  ;;  %v2841_v47 = vrot.slane %v2839_v34, 1  ;;  %3880 = vmatpush1.bf16.msra.mxu0 %v7121_v24 }
 0x222   : > { %3881 = vmatprep.subr.bf16.mxu0 %v10840_v46  ;;  %v2980_v24 = vrot.slane %v8621_v57, 1 }
 0x223   : > { %v2836_v45 = vrot.slane %v2834_v2, 1  ;;  %v2849_v33 = vor.u32 %v2848_v35, %v2844_v54  ;;  %v2977_v2 = vrot.slane %v8602_v0, 1 }
 0x225   : > { %3108 = vrot.lane.b32.xlu0 %v8807_v18, %s7338_s29  ;;  %v2837_v23 = vor.u32 %v2836_v45, %v2832_v40  ;;  %v8836_v19 = vsel %vm2710_vm2, %v2849_v33, %v2853_v59  ;;  %v8859_v35 = vsel %vm2963_vm3, %v2976_v63, %v2977_v2  ;;  %v7124_v2 = vld [vmem:[%s10835_s3 + $0xa8] sm:$0xff]  }
 0x227   : > { %v8831_v27 = vsel %vm2710_vm2, %v2837_v23, %v2841_v47 }
 0x228   : > { %3072 = vrot.lane.b32.xlu1 %v8831_v27, %s7338_s29 }
 0x22c   : > { %3074 = vrot.lane.b32.xlu1 %v8836_v19, %s7338_s29 }
 0x22d   : > { %v6929_v61 = vpop.f32.mrf.mxu0 }
 0x22e   : > { %v2212_v22 = vadd.f32 %v6929_v61, %v8506_v5 }
 0x22f   : > { %v2203_v31 = vpop.f32.mrf.mxu0 }
 0x230   : > { %v2204_v41 = vadd.f32 %v8506_v5, %v2203_v31  ;;  %v2292_v12 = vmax.f32 %v2212_v22, 0.0 }
 0x231   : > { %v6930_v53 = vpop.f32.mrf.mxu0 }
 0x232   : > { %v2215_v44 = vadd.f32 %v6930_v53, %v8506_v5  ;;  %v2290_v34 = vmax.f32 %v2204_v41, 0.0 }
 0x233   : > { %v2206_v30 = vpop.f32.mrf.mxu0  ;;  %v3095_v6 = vpop.permute.xlu0 %3094 }
 0x234   : > { %v2293_v8 = vmax.f32 %v2215_v44, 0.0  ;;  %v2207_v3 = vadd.f32 %v8506_v5, %v2206_v30  ;;  %v3233_v36 = vsel %vm3164_vm4, %v8846_v29, %v3095_v6  ;;  %v7122_v30 = vld [vmem:[%s10835_s3 + $0xb0] sm:$0xff]  }
 0x235   : > { %3758 = vmatprep.mubr.bf16.mxu1 %v3233_v36  ;;  %3882 = vmatpush1.bf16.msra.mxu0 %v7122_v30 }
 0x236   : > { %v2480_v49 = vpack.c.bf16 %v2293_v8, %v2292_v12  ;;  %v2291_v40 = vmax.f32 %v2207_v3, 0.0  ;;  %3759 = vmatmul.mubr.bf16.gmra.mxu1 %v8854_v28  ;;  %3883 = vmatprep.subr.bf16.mxu0 %v10840_v46 }
 0x237   : > { %v3097_v45 = vpop.permute.xlu0 %3096 }
 0x238   : > { %v2579_v23 = vshrl.u32 %v2480_v49, 16  ;;  %v2479_v47 = vpack.c.bf16 %v2291_v40, %v2290_v34  ;;  %v3237_v54 = vsel %vm3164_vm4, %v8859_v35, %v3097_v45  ;;  %v2582_v10 = vshll.u32 %v2480_v49, 16 }
 0x239   : > { %3766 = vmatprep.mubr.bf16.mxu1 %v3237_v54  ;;  %3884 = vmatpush1.bf16.msra.mxu0 %v7124_v2  ;;  %v7125_v54 = vld [vmem:[%s10835_s3 + $0xa0] sm:$0xff]  }
 0x23a   : > { %v2581_v56 = vrot.slane %v2579_v23, 7  ;;  %v2572_v33 = vshrl.u32 %v2479_v47, 16  ;;  %v3061_v59 = vpop.permute.xlu1 %3060  ;;  %v2575_v31 = vshll.u32 %v2479_v47, 16  ;;  %3885 = vmatprep.subr.bf16.mxu0 %v10840_v46 }
 0x23b   : > { %v8865_v17 = vsel %vm3164_vm4, %v8616_v11, %v3061_v59  ;;  %v7123_v11 = vld [vmem:[%s10835_s3 + $0x108] sm:$0xff]  }
 0x23c   : > { %v2584_v0 = vor.u32 %v2582_v10, %v2581_v56  ;;  %v2574_v61 = vrot.slane %v2572_v33, 7  ;;  %6947 = vmatprep.subr.bf16.mxu1 %v7123_v11  ;;  %v8897_v12 = vsel %vm8406_vm1, %v2581_v56, 0  ;;  %v7126_v33 = vld [vmem:[%s10835_s3 + $0x98] sm:$0xff]  }
 0x23d   : > { %6948 = vmatpush3.bf16.msra.mxu1 %v7123_v11  ;;  %v2875_v45 = vshll.u32 %v8897_v12, 16  ;;  %3886 = vmatpush1.bf16.msra.mxu0 %v7125_v54 }
 0x23e   : > { %v8869_v22 = vsel %vm8406_vm1, %v2574_v61, 0  ;;  %3767 = vmatmul.mubr.bf16.gmra.mxu1 %v8865_v17  ;;  %v2577_v53 = vor.u32 %v2575_v31, %v2574_v61  ;;  %v8874_v52 = vsel %vm8406_vm1, 0, %v2584_v0  ;;  %3887 = vmatprep.subr.bf16.mxu0 %v10840_v46  ;;  %v2979_v61 = vrot.slane %v8606_v37, 1  ;;  %v3063_v11 = vpop.permute.xlu1 %3062 }
 0x23f   : > { %v2870_v41 = vshll.u32 %v8874_v52, 16  ;;  %v2863_v63 = vshll.u32 %v8869_v22, 16  ;;  %v2868_v40 = vshrl.u32 %v8874_v52, 16  ;;  %v2877_v56 = vrot.slane %v2875_v45, 1 }
 0x240   : > { %v8885_v44 = vsel %vm8406_vm1, 0, %v2577_v53  ;;  %v2983_v45 = vrot.slane %v8693_v50, 1  ;;  %v7128_v50 = vld [vmem:[%s10835_s3 + $0x88] sm:$0xff]  }
 0x241   : > { %3110 = vrot.lane.b32.xlu0 %v8885_v44, %s7338_s29  ;;  %v2858_v6 = vshll.u32 %v8885_v44, 16  ;;  %v2856_v8 = vshrl.u32 %v8885_v44, 16  ;;  %v2872_v36 = vrot.slane %v2870_v41, 1  ;;  %v2865_v49 = vrot.slane %v2863_v63, 1  ;;  %3888 = vmatpush1.bf16.msra.mxu0 %v7126_v33 }
 0x242   : > { %3889 = vmatprep.subr.bf16.mxu0 %v10840_v46 }
 0x243   : > { %v2860_v3 = vrot.slane %v2858_v6, 1  ;;  %v2873_v47 = vor.u32 %v2872_v36, %v2868_v40  ;;  %v7127_v36 = vld [vmem:[%s10835_s3 + $0x90] sm:$0xff]   ;;  %v8944_v40 = vsel %vm3164_vm4, %v8606_v37, %v3063_v11 }
 0x245   : > { %3112 = vrot.lane.b32.xlu0 %v8874_v52, %s7338_s29  ;;  %v2861_v34 = vor.u32 %v2860_v3, %v2856_v8  ;;  %v8918_v10 = vsel %vm2710_vm2, %v2873_v47, %v2877_v56  ;;  %v8933_v8 = vsel %vm2963_vm3, %v2979_v61, %v2980_v24  ;;  %v2982_v3 = vrot.slane %v8706_v7, 1  ;;  %3890 = vmatpush1.bf16.msra.mxu0 %v7127_v36 }
 0x246   : > { %3891 = vmatprep.subr.bf16.mxu0 %v10840_v46 }
 0x247   : > { %v8909_v23 = vsel %vm2710_vm2, %v2861_v34, %v2865_v49 }
 0x248   : > { %3076 = vrot.lane.b32.xlu1 %v8909_v23, %s7338_s29 }
 0x249   : > { %3892 = vmatpush1.bf16.msra.mxu0 %v7128_v50 }
 0x24a   : > { %3893 = vmatprep.subr.bf16.mxu0 %v10840_v46 }
 0x24c   : > { %3078 = vrot.lane.b32.xlu1 %v8918_v10, %s7338_s29 }
 0x24d   : > { %v6933_v59 = vpop.f32.mrf.mxu0 }
 0x24e   : > { %v2228_v31 = vadd.f32 %v6933_v59, %v8506_v5 }
 0x24f   : > { %v2219_v0 = vpop.f32.mrf.mxu0 }
 0x250   : > { %v2220_v41 = vadd.f32 %v8506_v5, %v2219_v0  ;;  %v2296_v2 = vmax.f32 %v2228_v31, 0.0 }
 0x251   : > { %v6934_v53 = vpop.f32.mrf.mxu0 }
 0x252   : > { %v2231_v30 = vadd.f32 %v6934_v53, %v8506_v5  ;;  %v2294_v47 = vmax.f32 %v2220_v41, 0.0 }
 0x253   : > { %v2222_v6 = vpop.f32.mrf.mxu0  ;;  %v3099_v63 = vpop.permute.xlu0 %3098 }
 0x254   : > { %v2297_v57 = vmax.f32 %v2231_v30, 0.0  ;;  %v2223_v34 = vadd.f32 %v8506_v5, %v2222_v6  ;;  %v3241_v49 = vsel %vm3164_vm4, %v8933_v8, %v3099_v63  ;;  %v8950_v5 = vsel %vm2963_vm3, %v2982_v3, %v2983_v45  ;;  %v7129_v6 = vld [vmem:[%s10835_s3 + $0x80] sm:$0xff]  }
 0x255   : > { %3774 = vmatprep.mubr.bf16.mxu1 %v3241_v49  ;;  %3894 = vmatpush1.bf16.msra.mxu0 %v7129_v6 }
 0x256   : > { %v2482_v54 = vpack.c.bf16 %v2297_v57, %v2296_v2  ;;  %v2295_v56 = vmax.f32 %v2223_v34, 0.0  ;;  %3775 = vmatmul.mubr.bf16.gmra.mxu1 %v8944_v40  ;;  %3895 = vmatprep.subr.bf16.mxu0 %v10840_v46  ;;  %v7130_v34 = vld [vmem:[%s10835_s3 + $0xf8] sm:$0xff]  }
 0x257   : > { %v3101_v33 = vpop.permute.xlu0 %3100 }
 0x258   : > { %v2593_v59 = vshrl.u32 %v2482_v54, 16  ;;  %v2481_v0 = vpack.c.bf16 %v2295_v56, %v2294_v47  ;;  %v3245_v37 = vsel %vm3164_vm4, %v8950_v5, %v3101_v33  ;;  %v2596_v31 = vshll.u32 %v2482_v54, 16 }
 0x259   : > { %3782 = vmatprep.mubr.bf16.mxu1 %v3245_v37  ;;  %3896 = vmatpush2.bf16.msra.mxu0 %v7130_v34 }
 0x25a   : > { %v2595_v61 = vrot.slane %v2593_v59, 7  ;;  %v2586_v53 = vshrl.u32 %v2481_v0, 16  ;;  %v3065_v24 = vpop.permute.xlu1 %3064  ;;  %v2589_v30 = vshll.u32 %v2481_v0, 16  ;;  %3897 = vmatprep.subr.bf16.mxu0 %v10840_v46  ;;  %v7131_v59 = vld [vmem:[%s10835_s3 + $0xf0] sm:$0xff]   ;;  %v7133_v0 = vld [vmem:[%s10835_s3 + $0x100] sm:$0xff]  }
 0x25b   : > { %v8963_v63 = vsel %vm3164_vm4, %v8706_v7, %v3065_v24  ;;  %6949 = vmatprep.subr.bf16.mxu1 %v7133_v0 }
 0x25c   : > { %v2598_v11 = vor.u32 %v2596_v31, %v2595_v61  ;;  %v2588_v41 = vrot.slane %v2586_v53, 7  ;;  %v8989_v47 = vsel %vm8406_vm1, %v2595_v61, 0  ;;  %v7132_v53 = vld [vmem:[%s10835_s3 + $0xe8] sm:$0xff]   ;;  %6950 = vmatpush3.bf16.msra.mxu1 %v7133_v0 }
 0x25d   : > { %v2899_v31 = vshll.u32 %v8989_v47, 16  ;;  %3898 = vmatpush2.bf16.msra.mxu0 %v7131_v59 }
 0x25e   : > { %v8967_v3 = vsel %vm8406_vm1, %v2588_v41, 0  ;;  %3783 = vmatmul.mubr.bf16.gmra.mxu1 %v8963_v63  ;;  %v2591_v36 = vor.u32 %v2589_v30, %v2588_v41  ;;  %v8972_v2 = vsel %vm8406_vm1, 0, %v2598_v11  ;;  %3899 = vmatprep.subr.bf16.mxu0 %v10840_v46  ;;  %v7134_v30 = vld [vmem:[%s10835_s3 + $0xe0] sm:$0xff]   ;;  %v3067_v59 = vpop.permute.xlu1 %3066 }
 0x25f   : > { %v2894_v57 = vshll.u32 %v8972_v2, 16  ;;  %v2887_v45 = vshll.u32 %v8967_v3, 16  ;;  %v2892_v61 = vshrl.u32 %v8972_v2, 16  ;;  %v2901_v41 = vrot.slane %v2899_v31, 1 }
 0x260   : > { %v8978_v7 = vsel %vm8406_vm1, 0, %v2591_v36 }
 0x261   : > { %3114 = vrot.lane.b32.xlu0 %v8978_v7, %s7338_s29  ;;  %v2882_v49 = vshll.u32 %v8978_v7, 16  ;;  %v2880_v54 = vshrl.u32 %v8978_v7, 16  ;;  %v2896_v33 = vrot.slane %v2894_v57, 1  ;;  %v2889_v50 = vrot.slane %v2887_v45, 1  ;;  %3900 = vmatpush2.bf16.msra.mxu0 %v7132_v53  ;;  %v7135_v57 = vld [vmem:[%s10835_s3 + $0xd8] sm:$0xff]  }
 0x262   : > { %3901 = vmatprep.subr.bf16.mxu0 %v10840_v46  ;;  %v7303_v45 = vld [vmem:[%s10834_s2] ss:$0 sm:$0xff]  ;;  %v2988_v53 = vrot.slane %v8759_v39, 1 }
 0x263   : > { %v2884_v56 = vrot.slane %v2882_v49, 1  ;;  %v2897_v11 = vor.u32 %v2896_v33, %v2892_v61  ;;  %v2985_v49 = vrot.slane %v8697_v60, 1  ;;  %v2986_v33 = vrot.slane %v8714_v51, 1 }
 0x265   : > { %3116 = vrot.lane.b32.xlu0 %v8972_v2, %s7338_s29  ;;  %v2885_v37 = vor.u32 %v2884_v56, %v2880_v54  ;;  %v9016_v6 = vsel %vm2710_vm2, %v2897_v11, %v2901_v41  ;;  %3902 = vmatpush2.bf16.msra.mxu0 %v7134_v30  ;;  %v9031_v31 = vsel %vm2963_vm3, %v2985_v49, %v2986_v33  ;;  %v7136_v11 = vld [vmem:[%s10835_s3 + $0xd0] sm:$0xff]  }
 0x266   : > { %3903 = vmatprep.subr.bf16.mxu0 %v10840_v46 }
 0x267   : > { %v9007_v24 = vsel %vm2710_vm2, %v2885_v37, %v2889_v50 }
 0x268   : > { %3080 = vrot.lane.b32.xlu1 %v9007_v24, %s7338_s29 }
 0x269   : > { %3904 = vmatpush2.bf16.msra.mxu0 %v7135_v57  ;;  %v9042_v57 = vsel %vm3164_vm4, %v8697_v60, %v3067_v59 }
 0x26a   : > { %3905 = vmatprep.subr.bf16.mxu0 %v10840_v46 }
 0x26c   : > { %3082 = vrot.lane.b32.xlu1 %v9016_v6, %s7338_s29 }
 0x26d   : > { %v6937_v36 = vpop.f32.mrf.mxu1  ;;  %3906 = vmatpush2.bf16.msra.mxu0 %v7136_v11 }
 0x26e   : > { %v2244_v54 = vadd.f32 %v7303_v45, %v6937_v36 }
 0x26f   : > { %v2235_v34 = vpop.f32.mrf.mxu1 }
 0x270   : > { %v2236_v0 = vadd.f32 %v7303_v45, %v2235_v34  ;;  %v2300_v41 = vmax.f32 %v2244_v54, 0.0  ;;  %v2989_v34 = vrot.slane %v8747_v25, 1  ;;  %v7137_v25 = vld [vmem:[%s10835_s3 + $0xc8] sm:$0xff]  }
 0x271   : > { %v6938_v56 = vpop.f32.mrf.mxu1 }
 0x272   : > { %v2247_v37 = vadd.f32 %v7303_v45, %v6938_v56  ;;  %v2298_v49 = vmax.f32 %v2236_v0, 0.0  ;;  %v9047_v54 = vsel %vm2963_vm3, %v2988_v53, %v2989_v34 }
 0x273   : > { %v2238_v50 = vpop.f32.mrf.mxu1  ;;  %v3103_v61 = vpop.permute.xlu0 %3102 }
 0x274   : > { %v2301_v30 = vmax.f32 %v2247_v37, 0.0  ;;  %v2239_v51 = vadd.f32 %v7303_v45, %v2238_v50  ;;  %v3249_v36 = vsel %vm3164_vm4, %v9031_v31, %v3103_v61  ;;  %v10867_v45 = vmov 0  }
 0x275   : > { %3790 = vmatprep.mubr.bf16.mxu1 %v3249_v36  ;;  %3907 = vmatprep.subr.bf16.mxu0 %v10867_v45 }
 0x276   : > { %v2484_v56 = vpack.c.bf16 %v2301_v30, %v2300_v41  ;;  %v2299_v33 = vmax.f32 %v2239_v51, 0.0  ;;  %3791 = vmatmul.mubr.bf16.gmra.mxu1 %v9042_v57  ;;  %3908 = vmatpush2.bf16.msra.mxu0 %v7137_v25  ;;  %v7138_v51 = vld [vmem:[%s10835_s3 + $0xc0] sm:$0xff]  }
 0x277   : > { %v3105_v46 = vpop.permute.xlu0 %3104  ;;  %3909 = vmatprep.subr.bf16.mxu0 %v10867_v45 }
 0x278   : > { %v2607_v37 = vshrl.u32 %v2484_v56, 16  ;;  %v2483_v50 = vpack.c.bf16 %v2299_v33, %v2298_v49  ;;  %v3253_v60 = vsel %vm3164_vm4, %v9047_v54, %v3105_v46  ;;  %v2610_v0 = vshll.u32 %v2484_v56, 16 }
 0x279   : > { %3798 = vmatprep.mubr.bf16.mxu1 %v3253_v60 }
 0x27a   : > { %v2609_v59 = vrot.slane %v2607_v37, 7  ;;  %v2600_v61 = vshrl.u32 %v2483_v50, 16  ;;  %v3069_v11 = vpop.permute.xlu1 %3068  ;;  %v2603_v30 = vshll.u32 %v2483_v50, 16  ;;  %3910 = vmatpush2.bf16.msra.mxu0 %v7138_v51 }
 0x27b   : > { %v9061_v46 = vsel %vm3164_vm4, %v8759_v39, %v3069_v11 }
 0x27c   : > { %v2612_v53 = vor.u32 %v2610_v0, %v2609_v59  ;;  %v2602_v41 = vrot.slane %v2600_v61, 7  ;;  %v9083_v37 = vsel %vm8406_vm1, %v2609_v59, 0  ;;  %v7072_v0 = vpack.i.bf16 %v8666_v20, %v8421_v1 }
 0x27e   : > { %v9065_v36 = vsel %vm8406_vm1, %v2602_v41, 0  ;;  %3799 = vmatmul.mubr.bf16.gmra.mxu1 %v9061_v46  ;;  %v2605_v34 = vor.u32 %v2603_v30, %v2602_v41  ;;  %v9070_v49 = vsel %vm8406_vm1, 0, %v2612_v53  ;;  %v2923_v41 = vshll.u32 %v9083_v37, 16 }
 0x27f   : > { %v2918_v56 = vshll.u32 %v9070_v49, 16  ;;  %v2911_v45 = vshll.u32 %v9065_v36, 16  ;;  %v2916_v53 = vshrl.u32 %v9070_v49, 16 }
 0x280   : > { %v9075_v33 = vsel %vm8406_vm1, 0, %v2605_v34  ;;  %v2925_v51 = vrot.slane %v2923_v41, 1 }
 0x281   : > { %3118 = vrot.lane.b32.xlu0 %v9075_v33, %s7338_s29  ;;  %v2906_v39 = vshll.u32 %v9075_v33, 16  ;;  %v2904_v50 = vshrl.u32 %v9075_v33, 16  ;;  %v2920_v25 = vrot.slane %v2918_v56, 1  ;;  %v2913_v11 = vrot.slane %v2911_v45, 1 }
 0x283   : > { %v2908_v60 = vrot.slane %v2906_v39, 1  ;;  %v2921_v59 = vor.u32 %v2920_v25, %v2916_v53  ;;  %v2991_v39 = vrot.slane %v8751_v58, 1  ;;  %v3071_v25 = vpop.permute.xlu1 %3070 }
 0x285   : > { %3120 = vrot.lane.b32.xlu0 %v9070_v49, %s7338_s29  ;;  %v2909_v61 = vor.u32 %v2908_v60, %v2904_v50  ;;  %v9099_v34 = vsel %vm2710_vm2, %v2921_v59, %v2925_v51  ;;  %v2992_v50 = vrot.slane %v8767_v48, 1  ;;  %v9123_v48 = vsel %vm3164_vm4, %v8751_v58, %v3071_v25 }
 0x286   : > { %v2995_v59 = vrot.slane %v8803_v38, 1  ;;  %v3000_v38 = vrot.slane %v8885_v44, 1  ;;  %v3001_v25 = vrot.slane %v8869_v22, 1  ;;  %v3007_v22 = vrot.slane %v8967_v3, 1 }
 0x287   : > { %v9093_v30 = vsel %vm2710_vm2, %v2909_v61, %v2913_v11  ;;  %v9112_v61 = vsel %vm2963_vm3, %v2991_v39, %v2992_v50  ;;  %v2994_v11 = vrot.slane %v8812_v4, 1  ;;  %v3013_v3 = vrot.slane %v9065_v36, 1 }
 0x288   : > { %3084 = vrot.lane.b32.xlu1 %v9093_v30, %s7338_s29 }
 0x289   : > { %7073 = vrot.lane.b32.xlu0 %v7072_v0, %s7338_s29 }
 0x28c   : > { %3086 = vrot.lane.b32.xlu1 %v9099_v34, %s7338_s29 }
 0x28d   : > { %3126 = vrot.lane.b32.xlu0 %v8795_v55, %s7338_s29  ;;  %v6941_v56 = vpop.f32.mrf.mxu1 }
 0x28e   : > { %v9128_v56 = vsel %vm2963_vm3, %v2994_v11, %v2995_v59  ;;  %v3003_v11 = vrot.slane %v8874_v52, 1  ;;  %v3009_v59 = vrot.slane %v8972_v2, 1 }
 0x28f   : > { %v2251_v45 = vpop.f32.mrf.mxu1 }
 0x290   : > { %3128 = vrot.lane.b32.xlu1 %v8846_v29, %s7338_s29  ;;  %v2997_v45 = vrot.slane %v8807_v18, 1 }
 0x291   : > { %3130 = vrot.lane.b32.xlu0 %v8859_v35, %s7338_s29  ;;  %v6942_v60 = vpop.f32.mrf.mxu1 }
 0x292   : > { %v2998_v60 = vrot.slane %v8823_v43, 1  ;;  %v3004_v43 = vrot.slane %v8897_v12, 1  ;;  %v3010_v12 = vrot.slane %v8989_v47, 1 }
 0x293   : > { %v3107_v0 = vpop.permute.xlu0 %3106  ;;  %v2254_v53 = vpop.f32.mrf.mxu1 }
 0x294   : > { %3132 = vrot.lane.b32.xlu1 %v8933_v8, %s7338_s29  ;;  %v3257_v41 = vsel %vm3164_vm4, %v9112_v61, %v3107_v0  ;;  %v9150_v0 = vsel %vm2963_vm3, %v2997_v45, %v2998_v60  ;;  %v9156_v53 = vsel %vm2963_vm3, %v3000_v38, %v3001_v25  ;;  %v3015_v38 = vrot.slane %v9070_v49, 1 }
 0x295   : > { %3134 = vrot.lane.b32.xlu0 %v8950_v5, %s7338_s29  ;;  %3806 = vmatprep.mubr.bf16.mxu1 %v3257_v41  ;;  %v9164_v41 = vsel %vm2963_vm3, %v3003_v11, %v3004_v43  ;;  %v3016_v60 = vrot.slane %v9083_v37, 1 }
 0x296   : > { %3807 = vmatmul.mubr.bf16.gmra.mxu1 %v9123_v48 }
 0x297   : > { %v3109_v51 = vpop.permute.xlu0 %3108  ;;  %v9190_v47 = vsel %vm2963_vm3, %v3015_v38, %v3016_v60 }
 0x298   : > { %3136 = vrot.lane.b32.xlu1 %v9031_v31, %s7338_s29  ;;  %v3261_v39 = vsel %vm3164_vm4, %v9128_v56, %v3109_v51 }
 0x299   : > { %3138 = vrot.lane.b32.xlu0 %v9047_v54, %s7338_s29  ;;  %3814 = vmatprep.mubr.bf16.mxu1 %v3261_v39  ;;  %v3012_v39 = vrot.slane %v9075_v33, 1 }
 0x29a   : > { %v3073_v58 = vpop.permute.xlu1 %3072 }
 0x29b   : > { %v9144_v50 = vsel %vm3164_vm4, %v8812_v4, %v3073_v58  ;;  %v3006_v4 = vrot.slane %v8978_v7, 1  ;;  %v9178_v58 = vsel %vm2963_vm3, %v3009_v59, %v3010_v12  ;;  %v9183_v45 = vsel %vm2963_vm3, %v3012_v39, %v3013_v3 }
 0x29c   : > { %3140 = vrot.lane.b32.xlu1 %v9112_v61, %s7338_s29 }
 0x29d   : > { %3142 = vrot.lane.b32.xlu0 %v9128_v56, %s7338_s29  ;;  %v9170_v51 = vsel %vm2963_vm3, %v3006_v4, %v3007_v22 }
 0x29e   : > { %3815 = vmatmul.mubr.bf16.gmra.mxu1 %v9144_v50  ;;  %v3075_v4 = vpop.permute.xlu1 %3074 }
 0x29f   : > { %v9204_v59 = vsel %vm3164_vm4, %v8807_v18, %v3075_v4 }
 0x2a0   : > { %3144 = vrot.lane.b32.xlu1 %v9150_v0, %s7338_s29 }
 0x2a1   : > { %3146 = vrot.lane.b32.xlu0 %v9156_v53, %s7338_s29 }
 0x2a4   : > { %3148 = vrot.lane.b32.xlu1 %v9164_v41, %s7338_s29 }
 0x2a5   : > { %3150 = vrot.lane.b32.xlu0 %v9170_v51, %s7338_s29 }
 0x2a8   : > { %3152 = vrot.lane.b32.xlu1 %v9178_v58, %s7338_s29 }
 0x2a9   : > { %3154 = vrot.lane.b32.xlu0 %v9183_v45, %s7338_s29 }
 0x2ac   : > { %3160 = vrot.lane.b32.xlu1 %v8456_v16, %s7338_s29 }
 0x2ad   : > { %3156 = vrot.lane.b32.xlu0 %v9190_v47, %s7338_s29  ;;  %v3736_v36 = vpop.f32.mrf.mxu1 }
 0x2af   : > { %v3738_v25 = vpop.f32.mrf.mxu1 }
 0x2b0   : > { %3162 = vrot.lane.b32.xlu1 %v8456_v16, %s7338_s29 }
 0x2b1   : > { %v3739_v11 = vpop.f32.mrf.mxu1  ;;  %3158 = vrot.lane.b32.xlu0 %v8666_v20, %s7338_s29 }
 0x2b3   : > { %v3111_v37 = vpop.permute.xlu0 %3110  ;;  %v3741_v43 = vpop.f32.mrf.mxu1 }
 0x2b4   : > { %v3265_v22 = vsel %vm3164_vm4, %v9150_v0, %v3111_v37 }
 0x2b5   : > { %3822 = vmatprep.mubr.bf16.mxu1 %v3265_v22  ;;  %4936 = vrot.lane.b32.xlu0 %v8456_v16, %s7338_s29 }
 0x2b6   : > { %3823 = vmatmul.mubr.bf16.gmra.mxu1 %v9204_v59 }
 0x2b7   : > { %v3113_v39 = vpop.permute.xlu0 %3112 }
 0x2b8   : > { %v3269_v12 = vsel %vm3164_vm4, %v9156_v53, %v3113_v39 }
 0x2b9   : > { %3830 = vmatprep.mubr.bf16.mxu1 %v3269_v12 }
 0x2ba   : > { %v3077_v3 = vpop.permute.xlu1 %3076 }
 0x2bb   : > { %v9213_v38 = vsel %vm3164_vm4, %v8885_v44, %v3077_v3 }
 0x2be   : > { %3831 = vmatmul.mubr.bf16.gmra.mxu1 %v9213_v38  ;;  %v3079_v60 = vpop.permute.xlu1 %3078 }
 0x2bf   : > { %v9220_v25 = vsel %vm3164_vm4, %v8874_v52, %v3079_v60 }
 0x2d3   : > { %v3115_v18 = vpop.permute.xlu0 %3114 }
 0x2d4   : > { %v3273_v36 = vsel %vm3164_vm4, %v9164_v41, %v3115_v18 }
 0x2d5   : > { %3838 = vmatprep.mubr.bf16.mxu1 %v3273_v36 }
 0x2d6   : > { %v9222_v11 = vpop.f32.mrf.mxu1  ;;  %3839 = vmatmul.mubr.bf16.gmra.mxu1 %v9220_v25 }
 0x2d7   : > { %v3117_v4 = vpop.permute.xlu0 %3116 }
 0x2d8   : > { %v3746_v37 = vpop.f32.mrf.mxu1  ;;  %v3277_v44 = vsel %vm3164_vm4, %v9170_v51, %v3117_v4 }
 0x2d9   : > { %3846 = vmatprep.mubr.bf16.mxu1 %v3277_v44 }
 0x2da   : > { %v3081_v43 = vpop.permute.xlu1 %3080  ;;  %v9227_v22 = vpop.f32.mrf.mxu1 }
 0x2db   : > { %v9231_v12 = vsel %vm3164_vm4, %v8978_v7, %v3081_v43 }
 0x2dc   : > { %v3749_v39 = vpop.f32.mrf.mxu1 }
 0x2de   : > { %v9233_v52 = vpop.f32.mrf.mxu1  ;;  %3847 = vmatmul.mubr.bf16.gmra.mxu1 %v9231_v12  ;;  %v3083_v36 = vpop.permute.xlu1 %3082 }
 0x2df   : > { %10868 = vst [vmem:[#allocation6_spill] sm:$0xff] %v9233_v52  ;;  %v9242_v44 = vsel %vm3164_vm4, %v8972_v2, %v3083_v36 }
 0x2e0   : > { %v3754_v3 = vpop.f32.mrf.mxu1 }
 0x2e2   : > { %v9236_v60 = vpop.f32.mrf.mxu1 }
 0x2e3   : > { %10869 = vst [vmem:[#allocation7_spill] sm:$0xff] %v9236_v60 }
 0x2e4   : > { %v3757_v18 = vpop.f32.mrf.mxu1 }
 0x2f3   : > { %v3119_v37 = vpop.permute.xlu0 %3118 }
 0x2f4   : > { %v3281_v4 = vsel %vm3164_vm4, %v9178_v58, %v3119_v37 }
 0x2f5   : > { %3854 = vmatprep.mubr.bf16.mxu1 %v3281_v4 }
 0x2f6   : > { %v9244_v7 = vpop.f32.mrf.mxu1  ;;  %3855 = vmatmul.mubr.bf16.gmra.mxu1 %v9242_v44 }
 0x2f7   : > { %v3121_v43 = vpop.permute.xlu0 %3120 }
 0x2f8   : > { %v3762_v39 = vpop.f32.mrf.mxu1  ;;  %v3285_v3 = vsel %vm3164_vm4, %v9183_v45, %v3121_v43 }
 0x2f9   : > { %3862 = vmatprep.mubr.bf16.mxu1 %v3285_v3 }
 0x2fa   : > { %v3085_v18 = vpop.permute.xlu1 %3084  ;;  %v9249_v21 = vpop.f32.mrf.mxu1 }
 0x2fb   : > { %v7074_v60 = vpop.permute.xlu0 %7073  ;;  %v9253_v2 = vsel %vm3164_vm4, %v9075_v33, %v3085_v18 }
 0x2fc   : > { %v7076_v37 = vunpack.i.h.bf16 %v7074_v60  ;;  %v7075_v4 = vunpack.i.l.bf16 %v7074_v60  ;;  %v3765_v52 = vpop.f32.mrf.mxu1 }
 0x2fe   : > { %v9255_v36 = vpop.f32.mrf.mxu1  ;;  %3863 = vmatmul.mubr.bf16.gmra.mxu1 %v9253_v2  ;;  %v3289_v39 = vsel %vm3164_vm4, %v9190_v47, %v7075_v4  ;;  %v3293_v43 = vsel %vm3164_vm4, %v8456_v16, %v7076_v37  ;;  %v3087_v52 = vpop.permute.xlu1 %3086 }
 0x2ff   : > { %10870 = vst [vmem:[#allocation8_spill] sm:$0xff] %v9255_v36  ;;  %3870 = vmatprep.mubr.bf16.mxu1 %v3289_v39  ;;  %3912 = vmatmul.mubr.bf16.vlgmr.msra.gmra.mxu0 %v3293_v43  ;;  %v3127_v33 = vpop.permute.xlu0 %3126  ;;  %v9267_v36 = vsel %vm3164_vm4, %v9070_v49, %v3087_v52 }
 0x300   : > { %v3770_v3 = vpop.f32.mrf.mxu1  ;;  %3919 = vmatprep.mubr.bf16.mxu0 %v8854_v28  ;;  %v3297_v4 = vsel %vm3164_vm4, %v8549_v42, %v3127_v33 }
 0x302   : > { %v9263_v60 = vpop.f32.mrf.mxu1  ;;  %v3129_v28 = vpop.permute.xlu1 %3128 }
 0x303   : > { %v3301_v37 = vsel %vm3164_vm4, %v8564_v9, %v3129_v28  ;;  %v3131_v42 = vpop.permute.xlu0 %3130 }
 0x304   : > { %v3773_v18 = vpop.f32.mrf.mxu1 }
 0x305   : > { %v7141_v18 = vld [vmem:[%s10837_s5 + $0x70] sm:$0xff]  }
 0x306   : > { %3871 = vmatmul.mubr.bf16.gmra.mxu1 %v9267_v36 }
 0x307   : > { %3920 = vmatmul.mubr.bf16.gmra.mxu0 %v3297_v4  ;;  %6951 = vmatprep.mubr.msk.bf16.mxu1 %vm3164_vm4, %v8795_v55  ;;  %v3305_v55 = vsel %vm3164_vm4, %v8644_v62, %v3131_v42 }
 0x308   : > { %3927 = vmatprep.mubr.bf16.mxu0 %v8865_v17 }
 0x30e   : > { %6952 = vmatmul.mubr.msk.bf16.vlgmr.msra.gmra.mxu1 %vm3164_vm4, %v8846_v29 }
 0x30f   : > { %3928 = vmatmul.mubr.bf16.gmra.mxu0 %v3301_v37  ;;  %6955 = vmatprep.mubr.msk.bf16.mxu1 %vm3164_vm4, %v8859_v35  ;;  %v3133_v35 = vpop.permute.xlu1 %3132 }
 0x310   : > { %3935 = vmatprep.mubr.bf16.mxu0 %v8944_v40 }
 0x316   : > { %v9282_v49 = vpop.f32.mrf.mxu1  ;;  %6956 = vmatmul.mubr.msk.bf16.gmra.mxu1 %vm3164_vm4, %v8933_v8  ;;  %v3309_v8 = vsel %vm3164_vm4, %v8657_v13, %v3133_v35  ;;  %v3137_v13 = vpop.permute.xlu1 %3136 }
 0x317   : > { %3936 = vmatmul.mubr.bf16.gmra.mxu0 %v3305_v55  ;;  %6959 = vmatprep.mubr.msk.bf16.mxu1 %vm3164_vm4, %v8950_v5 }
 0x318   : > { %v3778_v9 = vpop.f32.mrf.mxu1  ;;  %3943 = vmatprep.mubr.bf16.mxu0 %v8963_v63  ;;  %v3135_v63 = vpop.permute.xlu0 %3134 }
 0x31a   : > { %v9291_v29 = vpop.f32.mrf.mxu1 }
 0x31c   : > { %v3781_v17 = vpop.f32.mrf.mxu1 }
 0x31e   : > { %v9293_v40 = vpop.f32.mrf.mxu1  ;;  %6960 = vmatmul.mubr.msk.bf16.gmra.mxu1 %vm3164_vm4, %v9031_v31  ;;  %v3313_v31 = vsel %vm3164_vm4, %v8729_v15, %v3135_v63  ;;  %v3139_v15 = vpop.permute.xlu0 %3138 }
 0x31f   : > { %3944 = vmatmul.mubr.bf16.gmra.mxu0 %v3309_v8  ;;  %6963 = vmatprep.mubr.msk.bf16.mxu1 %vm3164_vm4, %v9047_v54 }
 0x320   : > { %v3786_v62 = vpop.f32.mrf.mxu1  ;;  %3951 = vmatprep.mubr.bf16.mxu0 %v9042_v57  ;;  %v3317_v57 = vsel %vm3164_vm4, %v8737_v32, %v3137_v13 }
 0x322   : > { %v9302_v5 = vpop.f32.mrf.mxu1 }
 0x324   : > { %v3789_v39 = vpop.f32.mrf.mxu1 }
 0x326   : > { %6964 = vmatmul.mubr.msk.bf16.gmra.mxu1 %vm3164_vm4, %v9112_v61 }
 0x327   : > { %3952 = vmatmul.mubr.bf16.gmra.mxu0 %v3313_v31  ;;  %6967 = vmatprep.mubr.msk.bf16.mxu1 %vm3164_vm4, %v9128_v56  ;;  %v3141_v56 = vpop.permute.xlu1 %3140 }
 0x328   : > { %3959 = vmatprep.mubr.bf16.mxu0 %v9061_v46  ;;  %v3321_v46 = vsel %vm3164_vm4, %v8775_v14, %v3139_v15 }
 0x32e   : > { %6968 = vmatmul.mubr.msk.bf16.gmra.mxu1 %vm3164_vm4, %v9150_v0 }
 0x32f   : > { %3960 = vmatmul.mubr.bf16.gmra.mxu0 %v3317_v57  ;;  %6971 = vmatprep.mubr.msk.bf16.mxu1 %vm3164_vm4, %v9156_v53  ;;  %v3325_v53 = vsel %vm3164_vm4, %v8780_v26, %v3141_v56  ;;  %v7139_v26 = vld [vmem:[%s10837_s5 + $0x78] sm:$0xff]  }
 0x330   : > { %3967 = vmatprep.mubr.bf16.mxu0 %v9123_v48  ;;  %6651 = vmatprep.subr.bf16.mxu0 %v7139_v26 }
 0x336   : > { %v9318_v54 = vpop.f32.mrf.mxu1  ;;  %6972 = vmatmul.mubr.msk.bf16.gmra.mxu1 %vm3164_vm4, %v9164_v41  ;;  %v3143_v41 = vpop.permute.xlu0 %3142 }
 0x337   : > { %3968 = vmatmul.mubr.bf16.gmra.mxu0 %v3321_v46  ;;  %6975 = vmatprep.mubr.msk.bf16.mxu1 %vm3164_vm4, %v9170_v51  ;;  %v7145_v46 = vld [vmem:[%s10837_s5 + $0x60] sm:$0xff]  }
 0x338   : > { %v3794_v32 = vpop.f32.mrf.mxu1  ;;  %3975 = vmatprep.mubr.bf16.mxu0 %v9144_v50 }
 0x339   : > { %v7146_v32 = vld [vmem:[%s10837_s5 + $0x20] sm:$0xff]  }
 0x33a   : > { %v9327_v61 = vpop.f32.mrf.mxu1 }
 0x33c   : > { %v3797_v48 = vpop.f32.mrf.mxu1 }
 0x33d   : > { %v7148_v48 = vld [vmem:[%s10837_s5 + $0x18] sm:$0xff]  }
 0x33e   : > { %v9329_v0 = vpop.f32.mrf.mxu1  ;;  %6976 = vmatmul.mubr.msk.bf16.gmra.mxu1 %vm3164_vm4, %v9178_v58  ;;  %v3329_v58 = vsel %vm3164_vm4, %v8831_v27, %v3143_v41 }
 0x33f   : > { %3976 = vmatmul.mubr.bf16.gmra.mxu0 %v3325_v53  ;;  %6979 = vmatprep.mubr.msk.bf16.mxu1 %vm3164_vm4, %v9183_v45  ;;  %v7140_v45 = vld [vmem:[%s10837_s5 + $0x38] sm:$0xff]  }
 0x340   : > { %v3802_v14 = vpop.f32.mrf.mxu1  ;;  %3983 = vmatprep.mubr.bf16.mxu0 %v9204_v59  ;;  %6652 = vmatpush3.bf16.msra.mxu0 %v7140_v45  ;;  %v3147_v59 = vpop.permute.xlu0 %3146 }
 0x341   : > { %6653 = vmatprep.subr.bf16.mxu0 %v7141_v18 }
 0x342   : > { %v9338_v50 = vpop.f32.mrf.mxu1 }
 0x344   : > { %v3805_v51 = vpop.f32.mrf.mxu1  ;;  %v3151_v37 = vpop.permute.xlu0 %3150 }
 0x345   : > { %v3345_v55 = vsel %vm3164_vm4, %v9007_v24, %v3151_v37 }
 0x346   : > { %6980 = vmatmul.mubr.msk.bf16.gmra.mxu1 %vm3164_vm4, %v9190_v47  ;;  %v3145_v47 = vpop.permute.xlu1 %3144 }
 0x347   : > { %3984 = vmatmul.mubr.bf16.gmra.mxu0 %v3329_v58  ;;  %6983 = vmatprep.mubr.msk.bf16.mxu1 %vm3164_vm4, %v8666_v20  ;;  %v3333_v27 = vsel %vm3164_vm4, %v8836_v19, %v3145_v47  ;;  %v7149_v47 = vld [vmem:[%s10837_s5 + $0x50] sm:$0xff]  }
 0x348   : > { %3991 = vmatprep.mubr.bf16.mxu0 %v9213_v38  ;;  %v3337_v38 = vsel %vm3164_vm4, %v8909_v23, %v3147_v59  ;;  %v3155_v17 = vpop.permute.xlu0 %3154 }
 0x34a   : > { %v3149_v33 = vpop.permute.xlu1 %3148 }
 0x34b   : > { %v3341_v23 = vsel %vm3164_vm4, %v8918_v10, %v3149_v33 }
 0x34c   : > { %v3157_v63 = vpop.permute.xlu0 %3156 }
 0x34d   : > { %v3357_v13 = vsel %vm3164_vm4, %v9099_v34, %v3157_v63  ;;  %v7147_v34 = vld [vmem:[%s10837_s5 + $0x58] sm:$0xff]  }
 0x34e   : > { %6984 = vmatmul.mubr.msk.bf16.gmra.mxu1 %vm3164_vm4, %v8666_v20  ;;  %v3153_v9 = vpop.permute.xlu1 %3152 }
 0x34f   : > { %3992 = vmatmul.mubr.bf16.gmra.mxu0 %v3333_v27  ;;  %v3349_v10 = vsel %vm3164_vm4, %v9016_v6, %v3153_v9  ;;  %v7144_v6 = vld [vmem:[%s10837_s5 + $0x28] sm:$0xff]   ;;  %v7150_v27 = vld [vmem:[%s10837_s5 + $0x10] sm:$0xff]  }
 0x350   : > { %3999 = vmatprep.mubr.bf16.mxu0 %v9220_v25  ;;  %v7142_v25 = vld [vmem:[%s10837_s5 + $0x30] sm:$0xff]  }
 0x351   : > { %6654 = vmatpush3.bf16.msra.mxu0 %v7142_v25  ;;  %v7152_v25 = vld [vmem:[%s10837_s5 + $0x8] sm:$0xff]  }
 0x352   : > { %v3161_v35 = vpop.permute.xlu1 %3160 }
 0x353   : > { %v3364_v24 = vsel %vm3164_vm4, %v8421_v1, %v3161_v35  ;;  %v7153_v35 = vld [vmem:[%s10837_s5 + $0x40] sm:$0xff]  }
 0x356   : > { %v9358_v43 = vpop.f32.mrf.mxu1  ;;  %v3163_v63 = vpop.permute.xlu1 %3162 }
 0x357   : > { %4000 = vmatmul.mubr.bf16.gmra.mxu0 %v3337_v38  ;;  %v7151_v38 = vld [vmem:[%s10837_s5 + $0x48] sm:$0xff]  }
 0x358   : > { %v3810_v3 = vpop.f32.mrf.mxu1  ;;  %4007 = vmatprep.mubr.bf16.mxu0 %v9231_v12 }
 0x35a   : > { %v9363_v52 = vpop.f32.mrf.mxu1 }
 0x35c   : > { %v3813_v19 = vpop.f32.mrf.mxu1 }
 0x35e   : > { %v9371_v4 = vpop.f32.mrf.mxu1 }
 0x35f   : > { %4008 = vmatmul.mubr.bf16.gmra.mxu0 %v3341_v23 }
 0x360   : > { %v3818_v12 = vpop.f32.mrf.mxu1  ;;  %4015 = vmatprep.mubr.bf16.mxu0 %v9242_v44  ;;  %v7143_v44 = vld [vmem:[%s10837_s5 + $0x68] sm:$0xff]  }
 0x361   : > { %6655 = vmatprep.subr.bf16.mxu0 %v7143_v44 }
 0x362   : > { %v9376_v28 = vpop.f32.mrf.mxu1  ;;  %6656 = vmatpush3.bf16.msra.mxu0 %v7144_v6 }
 0x363   : > { %6657 = vmatprep.subr.bf16.mxu0 %v7145_v46 }
 0x364   : > { %v3821_v42 = vpop.f32.mrf.mxu1 }
 0x366   : > { %6658 = vmatpush3.bf16.msra.mxu0 %v7146_v32 }
 0x367   : > { %4016 = vmatmul.mubr.bf16.gmra.mxu0 %v3345_v55  ;;  %6659 = vmatprep.subr.bf16.mxu0 %v7147_v34 }
 0x368   : > { %4023 = vmatprep.mubr.bf16.mxu0 %v9253_v2  ;;  %v3353_v2 = vsel %vm3164_vm4, %v9093_v30, %v3155_v17 }
 0x36a   : > { %6660 = vmatpush3.bf16.msra.mxu0 %v7148_v48 }
 0x36b   : > { %6661 = vmatprep.subr.bf16.mxu0 %v7149_v47  ;;  %v7154_v47 = vld [vmem:[%s10837_s5] sm:$0xff]  }
 0x36e   : > { %6662 = vmatpush3.bf16.msra.mxu0 %v7150_v27  ;;  %v7156_v27 = vld [vmem:[%s10837_s5 + $0xb8] sm:$0xff]  }
 0x36f   : > { %4024 = vmatmul.mubr.bf16.gmra.mxu0 %v3349_v10  ;;  %6663 = vmatprep.subr.bf16.mxu0 %v7151_v38 }
 0x370   : > { %4031 = vmatprep.mubr.bf16.mxu0 %v9267_v36 }
 0x372   : > { %6664 = vmatpush3.bf16.msra.mxu0 %v7152_v25 }
 0x373   : > { %6665 = vmatprep.subr.bf16.mxu0 %v7153_v35  ;;  %v7159_v35 = vld [vmem:[%s10837_s5 + $0x118] sm:$0xff]  }
 0x376   : > { %v9389_v8 = vpop.f32.mrf.mxu1  ;;  %6666 = vmatpush3.bf16.msra.mxu0 %v7154_v47 }
 0x377   : > { %4032 = vmatmul.mubr.bf16.gmra.mxu0 %v3353_v2  ;;  %6987 = vmatprep.subr.bf16.mxu0 %v7159_v35 }
 0x378   : > { %v3826_v36 = vpop.f32.mrf.mxu1  ;;  %4039 = vmatprep.mubr.bf16.mxu0 %v3364_v24 }
 0x37a   : > { %v9396_v62 = vpop.f32.mrf.mxu1 }
 0x37c   : > { %v3829_v39 = vpop.f32.mrf.mxu1 }
 0x37d   : > { %v9450_v39 = vld [vmem:[%s10836_s4] ss:$0 sm:$0xff] }
 0x37e   : > { %v9398_v31 = vpop.f32.mrf.mxu1  ;;  %v3745_v46 = vadd.f32 %v9450_v39, %v9222_v11  ;;  %v7155_v11 = vld [vmem:[%s10837_s5 + $0xf8] sm:$0xff]  }
 0x37f   : > { %4040 = vmatmul.mubr.bf16.gmra.mxu0 %v3357_v13  ;;  %6763 = vmatprep.subr.bf16.mxu1 %v7155_v11 }
 0x380   : > { %v3834_v57 = vpop.f32.mrf.mxu1  ;;  %6764 = vmatpush3.bf16.msra.mxu1 %v7156_v27 }
 0x381   : > { %v3159_v57 = vpop.permute.xlu0 %3158 }
 0x382   : > { %v9402_v30 = vpop.f32.mrf.mxu1  ;;  %v3361_v34 = vsel %vm3164_vm4, %v8456_v16, %v3159_v57 }
 0x384   : > { %v3837_v15 = vpop.f32.mrf.mxu1 }
 0x385   : > { %v3367_v15 = vsel %vm3164_vm4, %v8421_v1, %v3163_v63 }
 0x386   : > { %4047 = vmatprep.mubr.bf16.mxu0 %v3367_v15  ;;  %v10872_v15 = vld [vmem:[#allocation7_spill] sm:$0xff] }
 0x387   : > { %4048 = vmatmul.mubr.bf16.gmra.mxu0 %v3361_v34 }
 0x396   : > { %v9410_v56 = vpop.f32.mrf.mxu1 }
 0x398   : > { %v3842_v53 = vpop.f32.mrf.mxu1 }
 0x399   : > { %v3748_v53 = vadd.f32 %v9450_v39, %v9227_v22  ;;  %v7157_v22 = vld [vmem:[%s10837_s5 + $0xf0] sm:$0xff]  }
 0x39a   : > { %v9418_v14 = vpop.f32.mrf.mxu1  ;;  %6765 = vmatprep.subr.bf16.mxu1 %v7157_v22 }
 0x39c   : > { %v3845_v41 = vpop.f32.mrf.mxu1 }
 0x39e   : > { %v9420_v51 = vpop.f32.mrf.mxu1 }
 0x3a0   : > { %v3850_v58 = vpop.f32.mrf.mxu1 }
 0x3a2   : > { %v9422_v26 = vpop.f32.mrf.mxu1 }
 0x3a4   : > { %v3853_v45 = vpop.f32.mrf.mxu1 }
 0x3b6   : > { %v9430_v59 = vpop.f32.mrf.mxu1 }
 0x3b8   : > { %v3858_v3 = vpop.f32.mrf.mxu1 }
 0x3ba   : > { %v9435_v33 = vpop.f32.mrf.mxu1 }
 0x3bc   : > { %v3861_v19 = vpop.f32.mrf.mxu1 }
 0x3be   : > { %v9437_v18 = vpop.f32.mrf.mxu1 }
 0x3bf   : > { %v3913_v23 = vpop.f32.mrf.mxu0 }
 0x3c0   : > { %v3866_v12 = vpop.f32.mrf.mxu1 }
 0x3c1   : > { %v3915_v37 = vpop.f32.mrf.mxu0 }
 0x3c2   : > { %v9442_v42 = vpop.f32.mrf.mxu1 }
 0x3c3   : > { %v3916_v55 = vpop.f32.mrf.mxu0 }
 0x3c4   : > { %v3869_v9 = vpop.f32.mrf.mxu1  ;;  %v7158_v55 = vld [vmem:[%s10837_s5 + $0xb0] sm:$0xff]  }
 0x3c5   : > { %v3918_v10 = vpop.f32.mrf.mxu0  ;;  %6766 = vmatpush3.bf16.msra.mxu1 %v7158_v55 }
 0x3c6   : > { %v3872_v44 = vpop.f32.mrf.mxu1 }
 0x3c7   : > { %v3921_v17 = vpop.f32.mrf.mxu0 }
 0x3c8   : > { %v3874_v24 = vpop.f32.mrf.mxu1  ;;  %v3922_v41 = vadd.f32 %v3921_v17, %v3745_v46  ;;  %v3761_v17 = vadd.f32 %v9450_v39, %v9244_v7  ;;  %v3756_v46 = vadd.f32 %v9450_v39, %v10872_v15 }
 0x3c9   : > { %v3923_v2 = vpop.f32.mrf.mxu0 }
 0x3ca   : > { %v3875_v6 = vpop.f32.mrf.mxu1  ;;  %v10871_v2 = vld [vmem:[#allocation6_spill] sm:$0xff] }
 0x3cb   : > { %v3924_v36 = vpop.f32.mrf.mxu0  ;;  %v3753_v6 = vadd.f32 %v9450_v39, %v10871_v2 }
 0x3cc   : > { %v3877_v13 = vpop.f32.mrf.mxu1  ;;  %v3925_v38 = vadd.f32 %v3924_v36, %v3748_v53  ;;  %v3764_v53 = vadd.f32 %v9450_v39, %v9249_v21 }
 0x3cd   : > { %v3926_v32 = vpop.f32.mrf.mxu0 }
 0x3ce   : > { %v6953_v48 = vpop.f32.mrf.mxu1 }
 0x3cf   : > { %v3929_v58 = vpop.f32.mrf.mxu0  ;;  %v4099_v3 = vadd.f32 %v6953_v48, %v3922_v41 }
 0x3d0   : > { %v4090_v45 = vpop.f32.mrf.mxu1  ;;  %v3930_v32 = vadd.f32 %v3929_v58, %v3753_v6  ;;  %v7161_v58 = vld [vmem:[%s10837_s5 + $0xa8] sm:$0xff]  }
 0x3d1   : > { %v3931_v19 = vpop.f32.mrf.mxu0  ;;  %v4235_v9 = vmax.f32 %v4099_v3, 0.0 }
 0x3d2   : > { %v6954_v25 = vpop.f32.mrf.mxu1 }
 0x3d3   : > { %v4102_v23 = vadd.f32 %v6954_v25, %v3925_v38  ;;  %v3932_v12 = vpop.f32.mrf.mxu0  ;;  %v7160_v38 = vld [vmem:[%s10837_s5 + $0xe8] sm:$0xff]  }
 0x3d4   : > { %v4093_v37 = vpop.f32.mrf.mxu1  ;;  %v3933_v47 = vadd.f32 %v3932_v12, %v3756_v46  ;;  %6767 = vmatprep.subr.bf16.mxu1 %v7160_v38 }
 0x3d5   : > { %v4236_v10 = vmax.f32 %v4102_v23, 0.0  ;;  %v3934_v44 = vpop.f32.mrf.mxu0  ;;  %v10873_v37 = vld [vmem:[#allocation8_spill] sm:$0xff]  ;;  %6768 = vmatpush3.bf16.msra.mxu1 %v7161_v58 }
 0x3d6   : > { %v6957_v24 = vpop.f32.mrf.mxu1  ;;  %v3769_v12 = vadd.f32 %v9450_v39, %v10873_v37 }
 0x3d7   : > { %v4415_v36 = vpack.c.bf16 %v4236_v10, %v4235_v9  ;;  %v3937_v63 = vpop.f32.mrf.mxu0 }
 0x3d8   : > { %v3938_v13 = vadd.f32 %v3937_v63, %v3761_v17  ;;  %v4106_v57 = vpop.f32.mrf.mxu1 }
 0x3d9   : > { %v4440_v34 = vshrl.u32 %v4415_v36, 16  ;;  %v3939_v48 = vpop.f32.mrf.mxu0  ;;  %v4443_v45 = vshll.u32 %v4415_v36, 16  ;;  %v4107_v11 = vadd.f32 %v4106_v57, %v3930_v32 }
 0x3da   : > { %v6958_v7 = vpop.f32.mrf.mxu1  ;;  %v4115_v3 = vadd.f32 %v6957_v24, %v3938_v13 }
 0x3db   : > { %v4442_v41 = vrot.slane %v4440_v34, 7  ;;  %v3940_v27 = vpop.f32.mrf.mxu0  ;;  %v4237_v35 = vmax.f32 %v4107_v11, 0.0  ;;  %v3772_v34 = vadd.f32 %v9450_v39, %v9263_v60 }
 0x3dc   : > { %v3941_v19 = vadd.f32 %v3940_v27, %v3764_v53  ;;  %v4109_v25 = vpop.f32.mrf.mxu1  ;;  %v4239_v6 = vmax.f32 %v4115_v3, 0.0 }
 0x3dd   : > { %v4445_v22 = vor.u32 %v4443_v45, %v4442_v41  ;;  %v4110_v23 = vadd.f32 %v4109_v25, %v3933_v47  ;;  %v3942_v21 = vpop.f32.mrf.mxu0  ;;  %v9496_v9 = vsel %vm8406_vm1, %v4442_v41, 0 }
 0x3de   : > { %v4118_v10 = vadd.f32 %v6958_v7, %v3941_v19  ;;  %v6961_v44 = vpop.f32.mrf.mxu1  ;;  %v4650_v32 = vshll.u32 %v9496_v9, 16  ;;  %v7162_v19 = vld [vmem:[%s10837_s5 + $0xe0] sm:$0xff]   ;;  %v3777_v21 = vadd.f32 %v9450_v39, %v9282_v49 }
 0x3df   : > { %v4238_v17 = vmax.f32 %v4110_v23, 0.0  ;;  %v3945_v24 = vpop.f32.mrf.mxu0  ;;  %v9500_v2 = vsel %vm8406_vm1, 0, %v4445_v22  ;;  %6769 = vmatprep.subr.bf16.mxu1 %v7162_v19 }
 0x3e0   : > { %v4240_v36 = vmax.f32 %v4118_v10, 0.0  ;;  %v3946_v63 = vadd.f32 %v3945_v24, %v3769_v12  ;;  %4968 = vrot.lane.b32.xlu1 %v9500_v2, %s7338_s29  ;;  %v4122_v13 = vpop.f32.mrf.mxu1  ;;  %v4645_v57 = vshll.u32 %v9500_v2, 16  ;;  %v4643_v47 = vshrl.u32 %v9500_v2, 16 }
 0x3e1   : > { %v4416_v15 = vpack.c.bf16 %v4238_v17, %v4237_v35  ;;  %v3947_v46 = vpop.f32.mrf.mxu0  ;;  %v4652_v60 = vrot.slane %v4650_v32, 1  ;;  %v7163_v17 = vld [vmem:[%s10837_s5 + $0xa0] sm:$0xff]  }
 0x3e2   : > { %v4417_v48 = vpack.c.bf16 %v4240_v36, %v4239_v6  ;;  %v6962_v53 = vpop.f32.mrf.mxu1  ;;  %v4647_v7 = vrot.slane %v4645_v57, 1  ;;  %v4123_v27 = vadd.f32 %v4122_v13, %v3946_v63  ;;  %6770 = vmatpush3.bf16.msra.mxu1 %v7163_v17 }
 0x3e3   : > { %v4447_v41 = vshrl.u32 %v4416_v15, 16  ;;  %v3948_v45 = vpop.f32.mrf.mxu0  ;;  %v4450_v58 = vshll.u32 %v4416_v15, 16 }
 0x3e4   : > { %v4454_v11 = vshrl.u32 %v4417_v48, 16  ;;  %v3949_v38 = vadd.f32 %v3948_v45, %v3772_v34  ;;  %v4125_v3 = vpop.f32.mrf.mxu1  ;;  %v4648_v23 = vor.u32 %v4647_v7, %v4643_v47  ;;  %v4457_v12 = vshll.u32 %v4417_v48, 16 }
 0x3e5   : > { %v4449_v25 = vrot.slane %v4447_v41, 7  ;;  %v3950_v22 = vpop.f32.mrf.mxu0  ;;  %v4241_v49 = vmax.f32 %v4123_v27, 0.0  ;;  %v3780_v48 = vadd.f32 %v9450_v39, %v9291_v29 }
 0x3e6   : > { %v4456_v37 = vrot.slane %v4454_v11, 7  ;;  %v4126_v10 = vadd.f32 %v4125_v3, %v3949_v38  ;;  %v9514_v35 = vpop.f32.mrf.mxu1  ;;  %v9524_v63 = vsel %vm2710_vm2, %v4648_v23, %v4652_v60  ;;  %v3785_v22 = vadd.f32 %v9450_v39, %v9293_v40 }
 0x3e7   : > { %v4452_v24 = vor.u32 %v4450_v58, %v4449_v25  ;;  %v9521_v6 = vsel %vm8406_vm1, %v4449_v25, 0  ;;  %v3953_v36 = vpop.f32.mrf.mxu0  ;;  %10875 = vst [vmem:[#allocation6_spill] sm:$0xff] %v9524_v63  ;;  %4938 = vrot.lane.b32.xlu0 %v9524_v63, %s7338_s29 }
 0x3e8   : > { %v4242_v13 = vmax.f32 %v4126_v10, 0.0  ;;  %v3954_v57 = vadd.f32 %v3953_v36, %v3777_v21  ;;  %v4138_v15 = vpop.f32.mrf.mxu1  ;;  %v4459_v46 = vor.u32 %v4457_v12, %v4456_v37  ;;  %v4662_v47 = vshll.u32 %v9521_v6, 16  ;;  %v7164_v12 = vld [vmem:[%s10837_s5 + $0xd8] sm:$0xff]  }
 0x3e9   : > { %v3955_v32 = vpop.f32.mrf.mxu0  ;;  %v9530_v34 = vsel %vm8406_vm1, 0, %v4452_v24  ;;  %v9547_v58 = vsel %vm8406_vm1, %v4456_v37, 0  ;;  %6771 = vmatprep.subr.bf16.mxu1 %v7164_v12 }
 0x3ea   : > { %v4418_v7 = vpack.c.bf16 %v4242_v13, %v4241_v49  ;;  %v9534_v41 = vpop.f32.mrf.mxu1  ;;  %4970 = vrot.lane.b32.xlu1 %v9530_v34, %s7338_s29  ;;  %v9540_v45 = vsel %vm8406_vm1, 0, %v4459_v46  ;;  %v4131_v11 = vadd.f32 %v6961_v44, %v3954_v57  ;;  %v4657_v38 = vshll.u32 %v9530_v34, 16  ;;  %v7165_v32 = vld [vmem:[%s10837_s5 + $0x98] sm:$0xff]  }
 0x3eb   : > { %v3956_v27 = vpop.f32.mrf.mxu0  ;;  %v4669_v3 = vshll.u32 %v9540_v45, 16  ;;  %v4655_v60 = vshrl.u32 %v9530_v34, 16  ;;  %v4664_v37 = vrot.slane %v4662_v47, 1  ;;  %v4667_v57 = vshrl.u32 %v9540_v45, 16  ;;  %6772 = vmatpush3.bf16.msra.mxu1 %v7165_v32 }
 0x3ec   : > { %v4461_v19 = vshrl.u32 %v4418_v7, 16  ;;  %v3957_v29 = vadd.f32 %v3956_v27, %v3780_v48  ;;  %v4141_v25 = vpop.f32.mrf.mxu1  ;;  %v4659_v21 = vrot.slane %v4657_v38, 1  ;;  %v4464_v17 = vshll.u32 %v4418_v7, 16 }
 0x3ed   : > { %v3958_v23 = vpop.f32.mrf.mxu0  ;;  %v4671_v44 = vrot.slane %v4669_v3, 1  ;;  %v4243_v49 = vmax.f32 %v4131_v11, 0.0  ;;  %v4674_v46 = vshll.u32 %v9547_v58, 16 }
 0x3ee   : > { %v4463_v10 = vrot.slane %v4461_v19, 7  ;;  %v4134_v24 = vadd.f32 %v6962_v53, %v3957_v29  ;;  %v9555_v36 = vpop.f32.mrf.mxu1  ;;  %4972 = vrot.lane.b32.xlu1 %v9540_v45, %s7338_s29  ;;  %v4660_v13 = vor.u32 %v4659_v21, %v4655_v60  ;;  %v3788_v19 = vadd.f32 %v9450_v39, %v9302_v5 }
 0x3ef   : > { %v3961_v40 = vpop.f32.mrf.mxu0  ;;  %v4672_v3 = vor.u32 %v4671_v44, %v4667_v57  ;;  %v4676_v44 = vrot.slane %v4674_v46, 1 }
 0x3f0   : > { %v4466_v48 = vor.u32 %v4464_v17, %v4463_v10  ;;  %v9566_v53 = vsel %vm8406_vm1, %v4463_v10, 0  ;;  %v4244_v7 = vmax.f32 %v4134_v24, 0.0  ;;  %v3962_v27 = vadd.f32 %v3961_v40, %v3785_v22  ;;  %v9568_v47 = vpop.f32.mrf.mxu1 }
 0x3f1   : > { %v3963_v11 = vpop.f32.mrf.mxu0  ;;  %v9571_v38 = vsel %vm2710_vm2, %v4660_v13, %v4664_v37  ;;  %v4686_v5 = vshll.u32 %v9566_v53, 16  ;;  %v3793_v13 = vadd.f32 %v9450_v39, %v9318_v54 }
 0x3f2   : > { %10876 = vst [vmem:[#allocation7_spill] sm:$0xff] %v9571_v38  ;;  %v4419_v29 = vpack.c.bf16 %v4244_v7, %v4243_v49  ;;  %4940 = vrot.lane.b32.xlu0 %v9571_v38, %s7338_s29  ;;  %v9577_v23 = vpop.f32.mrf.mxu1  ;;  %v9581_v22 = vsel %vm8406_vm1, 0, %v4466_v48  ;;  %v4139_v60 = vadd.f32 %v4138_v15, %v3962_v27  ;;  %v9590_v49 = vsel %vm2710_vm2, %v4672_v3, %v4676_v44  ;;  %v7167_v3 = vld [vmem:[%s10837_s5 + $0xd0] sm:$0xff]  }
 0x3f3   : > { %v3964_v21 = vpop.f32.mrf.mxu0  ;;  %4974 = vrot.lane.b32.xlu1 %v9581_v22, %s7338_s29  ;;  %v4681_v12 = vshll.u32 %v9581_v22, 16  ;;  %10877 = vst [vmem:[#allocation8_spill] sm:$0xff] %v9590_v49  ;;  %v4679_v40 = vshrl.u32 %v9581_v22, 16  ;;  %6773 = vmatprep.subr.bf16.mxu1 %v7167_v3  ;;  %v3801_v3 = vadd.f32 %v9450_v39, %v9329_v0  ;;  %v7169_v0 = vld [vmem:[%s10837_s5 + $0xc8] sm:$0xff]  }
 0x3f4   : > { %v4468_v10 = vshrl.u32 %v4419_v29, 16  ;;  %v3965_v17 = vadd.f32 %v3964_v21, %v3788_v19  ;;  %v9587_v24 = vpop.f32.mrf.mxu1  ;;  %v4471_v46 = vshll.u32 %v4419_v29, 16  ;;  %v4245_v7 = vmax.f32 %v4139_v60, 0.0  ;;  %v7168_v29 = vld [vmem:[%s10837_s5 + $0x90] sm:$0xff]  }
 0x3f5   : > { %v3966_v37 = vpop.f32.mrf.mxu0  ;;  %v4683_v15 = vrot.slane %v4681_v12, 1  ;;  %v4688_v19 = vrot.slane %v4686_v5, 1  ;;  %6774 = vmatpush3.bf16.msra.mxu1 %v7168_v29 }
 0x3f6   : > { %v4470_v57 = vrot.slane %v4468_v10, 7  ;;  %v4142_v32 = vadd.f32 %v4141_v25, %v3965_v17  ;;  %4942 = vrot.lane.b32.xlu0 %v9590_v49, %s7338_s29  ;;  %v9597_v48 = vpop.f32.mrf.mxu1  ;;  %v3796_v10 = vadd.f32 %v9450_v39, %v9327_v61  ;;  %6775 = vmatprep.subr.bf16.mxu1 %v7169_v0 }
 0x3f7   : > { %v3969_v27 = vpop.f32.mrf.mxu0  ;;  %v4684_v11 = vor.u32 %v4683_v15, %v4679_v40 }
 0x3f8   : > { %v4246_v21 = vmax.f32 %v4142_v32, 0.0  ;;  %v3970_v44 = vadd.f32 %v3969_v27, %v3793_v13  ;;  %v9602_v12 = vpop.f32.mrf.mxu1  ;;  %v4473_v54 = vor.u32 %v4471_v46, %v4470_v57  ;;  %v9606_v25 = vsel %vm8406_vm1, %v4470_v57, 0 }
 0x3f9   : > { %v3971_v60 = vpop.f32.mrf.mxu0  ;;  %v9612_v5 = vsel %vm2710_vm2, %v4684_v11, %v4688_v19  ;;  %v4698_v61 = vshll.u32 %v9606_v25, 16 }
 0x3fa   : > { %10878 = vst [vmem:[#allocation2_spill] sm:$0xff] %v9612_v5  ;;  %v4420_v17 = vpack.c.bf16 %v4246_v21, %v4245_v7  ;;  %v9616_v37 = vpop.f32.mrf.mxu1  ;;  %4944 = vrot.lane.b32.xlu0 %v9612_v5, %s7338_s29  ;;  %v9622_v40 = vsel %vm8406_vm1, 0, %v4473_v54  ;;  %v4147_v15 = vadd.f32 %v9514_v35, %v3970_v44 }
 0x3fb   : > { %v3972_v13 = vpop.f32.mrf.mxu0  ;;  %4976 = vrot.lane.b32.xlu1 %v9622_v40, %s7338_s29  ;;  %v4693_v57 = vshll.u32 %v9622_v40, 16  ;;  %v4691_v11 = vshrl.u32 %v9622_v40, 16  ;;  %v4700_v49 = vrot.slane %v4698_v61, 1  ;;  %v3804_v61 = vadd.f32 %v9450_v39, %v9338_v50 }
 0x3fc   : > { %v4475_v46 = vshrl.u32 %v4420_v17, 16  ;;  %v3973_v32 = vadd.f32 %v3972_v13, %v3796_v10  ;;  %v9629_v7 = vpop.f32.mrf.mxu1  ;;  %v4478_v21 = vshll.u32 %v4420_v17, 16  ;;  %v4247_v29 = vmax.f32 %v4147_v15, 0.0 }
 0x3fd   : > { %v3974_v27 = vpop.f32.mrf.mxu0  ;;  %v4695_v19 = vrot.slane %v4693_v57, 1 }
 0x3fe   : > { %v4477_v35 = vrot.slane %v4475_v46, 7  ;;  %v4150_v44 = vadd.f32 %v9534_v41, %v3973_v32  ;;  %v9635_v54 = vpop.f32.mrf.mxu1  ;;  %v7170_v41 = vld [vmem:[%s10837_s5 + $0x88] sm:$0xff]  }
 0x3ff   : > { %v3977_v60 = vpop.f32.mrf.mxu0  ;;  %v4696_v5 = vor.u32 %v4695_v19, %v4691_v11  ;;  %6776 = vmatpush3.bf16.msra.mxu1 %v7170_v41 }
 0x400   : > { %v4248_v10 = vmax.f32 %v4150_v44, 0.0  ;;  %v3978_v13 = vadd.f32 %v3977_v60, %v3801_v3  ;;  %v9637_v38 = vpop.f32.mrf.mxu1  ;;  %v4480_v27 = vor.u32 %v4478_v21, %v4477_v35  ;;  %v9641_v57 = vsel %vm8406_vm1, %v4477_v35, 0 }
 0x401   : > { %v3979_v17 = vpop.f32.mrf.mxu0  ;;  %v9650_v15 = vsel %vm2710_vm2, %v4696_v5, %v4700_v49  ;;  %v4710_v50 = vshll.u32 %v9641_v57, 16 }
 0x402   : > { %10879 = vst [vmem:[#allocation9_spill] sm:$0xff] %v9650_v15  ;;  %v4421_v46 = vpack.c.bf16 %v4248_v10, %v4247_v29  ;;  %v9654_v32 = vpop.f32.mrf.mxu1  ;;  %4946 = vrot.lane.b32.xlu0 %v9650_v15, %s7338_s29  ;;  %v9660_v11 = vsel %vm8406_vm1, 0, %v4480_v27  ;;  %v4155_v19 = vadd.f32 %v9568_v47, %v3978_v13  ;;  %v3809_v47 = vadd.f32 %v9450_v39, %v9358_v43 }
 0x403   : > { %v3980_v3 = vpop.f32.mrf.mxu0  ;;  %4978 = vrot.lane.b32.xlu1 %v9660_v11, %s7338_s29  ;;  %v4705_v49 = vshll.u32 %v9660_v11, 16  ;;  %v4703_v29 = vshrl.u32 %v9660_v11, 16  ;;  %v4712_v63 = vrot.slane %v4710_v50, 1  ;;  %v3812_v50 = vadd.f32 %v9450_v39, %v9363_v52 }
 0x404   : > { %v4482_v5 = vshrl.u32 %v4421_v46, 16  ;;  %v3981_v35 = vadd.f32 %v3980_v3, %v3804_v61  ;;  %v9667_v21 = vpop.f32.mrf.mxu1  ;;  %v4485_v13 = vshll.u32 %v4421_v46, 16  ;;  %v4249_v17 = vmax.f32 %v4155_v19, 0.0  ;;  %v7171_v61 = vld [vmem:[%s10837_s5 + $0xc0] sm:$0xff]  }
 0x405   : > { %v3982_v44 = vpop.f32.mrf.mxu0  ;;  %v4707_v60 = vrot.slane %v4705_v49, 1  ;;  %6777 = vmatprep.subr.bf16.mxu1 %v7171_v61 }
 0x406   : > { %v4484_v10 = vrot.slane %v4482_v5, 7  ;;  %v4158_v27 = vadd.f32 %v9587_v24, %v3981_v35  ;;  %v9673_v0 = vpop.f32.mrf.mxu1  ;;  %v7172_v24 = vld [vmem:[%s10837_s5 + $0x80] sm:$0xff]  }
 0x407   : > { %v3985_v15 = vpop.f32.mrf.mxu0  ;;  %v4708_v41 = vor.u32 %v4707_v60, %v4703_v29  ;;  %6778 = vmatpush3.bf16.msra.mxu1 %v7172_v24 }
 0x408   : > { %v4250_v3 = vmax.f32 %v4158_v27, 0.0  ;;  %v3986_v44 = vadd.f32 %v3985_v15, %v3809_v47  ;;  %v9678_v49 = vpop.f32.mrf.mxu1  ;;  %v4487_v16 = vor.u32 %v4485_v13, %v4484_v10  ;;  %v9682_v43 = vsel %vm8406_vm1, %v4484_v10, 0 }
 0x409   : > { %10880 = vst [vmem:[#allocation10_spill] sm:$0xff] %v9682_v43  ;;  %v3987_v46 = vpop.f32.mrf.mxu0  ;;  %v9688_v19 = vsel %vm2710_vm2, %v4708_v41, %v4712_v63  ;;  %v4722_v52 = vshll.u32 %v9682_v43, 16  ;;  %v3817_v41 = vadd.f32 %v9450_v39, %v9371_v4 }
 0x40a   : > { %10881 = vst [vmem:[#allocation11_spill] sm:$0xff] %v9688_v19  ;;  %v4422_v15 = vpack.c.bf16 %v4250_v3, %v4249_v17  ;;  %v9692_v5 = vpop.f32.mrf.mxu1  ;;  %4948 = vrot.lane.b32.xlu0 %v9688_v19, %s7338_s29  ;;  %v9698_v35 = vsel %vm8406_vm1, 0, %v4487_v16  ;;  %v4163_v29 = vadd.f32 %v9555_v36, %v3986_v44 }
 0x40b   : > { %v3988_v60 = vpop.f32.mrf.mxu0  ;;  %4980 = vrot.lane.b32.xlu1 %v9698_v35, %s7338_s29  ;;  %v4717_v63 = vshll.u32 %v9698_v35, 16  ;;  %v4715_v17 = vshrl.u32 %v9698_v35, 16  ;;  %v4724_v20 = vrot.slane %v4722_v52, 1  ;;  %v4857_v52 = vrot.slane %v9500_v2, 1 }
 0x40c   : > { %v4489_v47 = vshrl.u32 %v4422_v15, 16  ;;  %v3989_v10 = vadd.f32 %v3988_v60, %v3812_v50  ;;  %v9705_v13 = vpop.f32.mrf.mxu1  ;;  %v4492_v61 = vshll.u32 %v4422_v15, 16  ;;  %v4251_v24 = vmax.f32 %v4163_v29, 0.0 }
 0x40d   : > { %v3990_v27 = vpop.f32.mrf.mxu0  ;;  %v4719_v16 = vrot.slane %v4717_v63, 1 }
 0x40e   : > { %v4491_v36 = vrot.slane %v4489_v47, 7  ;;  %v4166_v3 = vadd.f32 %v9577_v23, %v3989_v10  ;;  %v6985_v44 = vpop.f32.mrf.mxu1  ;;  %v3820_v23 = vadd.f32 %v9450_v39, %v9376_v28 }
 0x40f   : > { %v3993_v46 = vpop.f32.mrf.mxu0  ;;  %v4720_v19 = vor.u32 %v4719_v16, %v4715_v17  ;;  %v4858_v17 = vrot.slane %v9496_v9, 1  ;;  %v3825_v16 = vadd.f32 %v9450_v39, %v9389_v8 }
 0x410   : > { %v4252_v1 = vmax.f32 %v4166_v3, 0.0  ;;  %v3994_v50 = vadd.f32 %v3993_v46, %v3817_v41  ;;  %v4494_v60 = vor.u32 %v4492_v61, %v4491_v36  ;;  %v9713_v27 = vsel %vm8406_vm1, %v4491_v36, 0  ;;  %v9715_v63 = vpop.f32.mrf.mxu1 }
 0x411   : > { %v3995_v43 = vpop.f32.mrf.mxu0  ;;  %v9718_v4 = vsel %vm2710_vm2, %v4720_v19, %v4724_v20 }
 0x412   : > { %v4423_v15 = vpack.c.bf16 %v4252_v1, %v4251_v24  ;;  %4950 = vrot.lane.b32.xlu0 %v9718_v4, %s7338_s29  ;;  %v9726_v29 = vsel %vm8406_vm1, 0, %v4494_v60  ;;  %v6986_v47 = vpop.f32.mrf.mxu1  ;;  %v4171_v10 = vadd.f32 %v9602_v12, %v3994_v50  ;;  %v4734_v1 = vshll.u32 %v9713_v27, 16 }
 0x413   : > { %v3996_v43 = vpop.f32.mrf.mxu0  ;;  %4982 = vrot.lane.b32.xlu1 %v9726_v29, %s7338_s29  ;;  %v4729_v20 = vshll.u32 %v9726_v29, 16  ;;  %v4727_v36 = vshrl.u32 %v9726_v29, 16  ;;  %v9740_v24 = vsel %vm2963_vm3, %v4857_v52, %v4858_v17  ;;  %v3828_v52 = vadd.f32 %v9450_v39, %v9396_v62 }
 0x414   : > { %v4496_v28 = vshrl.u32 %v4423_v15, 16  ;;  %v3997_v19 = vadd.f32 %v3996_v43, %v3820_v23  ;;  %v4499_v3 = vshll.u32 %v4423_v15, 16  ;;  %v4253_v46 = vmax.f32 %v4171_v10, 0.0 }
 0x415   : > { %v3998_v41 = vpop.f32.mrf.mxu0  ;;  %v4731_v61 = vrot.slane %v4729_v20, 1  ;;  %v4736_v60 = vrot.slane %v4734_v1, 1  ;;  %v4860_v1 = vrot.slane %v9530_v34, 1 }
 0x416   : > { %v4498_v12 = vrot.slane %v4496_v28, 7  ;;  %v4174_v44 = vadd.f32 %v9629_v7, %v3997_v19 }
 0x417   : > { %v4001_v50 = vpop.f32.mrf.mxu0  ;;  %5000 = vrot.lane.b32.xlu1 %v9740_v24, %s7338_s29  ;;  %v4732_v9 = vor.u32 %v4731_v61, %v4727_v36  ;;  %v4861_v36 = vrot.slane %v9521_v6, 1  ;;  %v3833_v61 = vadd.f32 %v9450_v39, %v9398_v31 }
 0x418   : > { %v4254_v23 = vmax.f32 %v4174_v44, 0.0  ;;  %v4002_v8 = vadd.f32 %v4001_v50, %v3825_v16  ;;  %v4501_v47 = vor.u32 %v4499_v3, %v4498_v12  ;;  %v9746_v43 = vsel %vm8406_vm1, %v4498_v12, 0 }
 0x419   : > { %v4003_v15 = vpop.f32.mrf.mxu0  ;;  %v9749_v7 = vsel %vm2710_vm2, %v4732_v9, %v4736_v60  ;;  %v4746_v62 = vshll.u32 %v9746_v43, 16  ;;  %v9771_v9 = vsel %vm2963_vm3, %v4860_v1, %v4861_v36  ;;  %v3836_v1 = vadd.f32 %v9450_v39, %v9402_v30 }
 0x41a   : > { %v4424_v10 = vpack.c.bf16 %v4254_v23, %v4253_v46  ;;  %v9755_v20 = vsel %vm8406_vm1, 0, %v4501_v47  ;;  %v4179_v28 = vadd.f32 %v9597_v48, %v4002_v8 }
 0x41b   : > { %v4004_v19 = vpop.f32.mrf.mxu0  ;;  %4952 = vrot.lane.b32.xlu1 %v9749_v7, %s7338_s29  ;;  %4984 = vrot.lane.b32.xlu0 %v9755_v20, %s7338_s29  ;;  %v4741_v17 = vshll.u32 %v9755_v20, 16  ;;  %v4739_v48 = vshrl.u32 %v9755_v20, 16  ;;  %v4748_v8 = vrot.slane %v4746_v62, 1 }
 0x41c   : > { %v4503_v16 = vshrl.u32 %v4424_v10, 16  ;;  %v4005_v41 = vadd.f32 %v4004_v19, %v3828_v52  ;;  %v4506_v46 = vshll.u32 %v4424_v10, 16  ;;  %v4255_v60 = vmax.f32 %v4179_v28, 0.0 }
 0x41d   : > { %v4006_v12 = vpop.f32.mrf.mxu0  ;;  %v4743_v3 = vrot.slane %v4741_v17, 1  ;;  %v4863_v17 = vrot.slane %v9540_v45, 1 }
 0x41e   : > { %v4505_v44 = vrot.slane %v4503_v16, 7  ;;  %v4182_v50 = vadd.f32 %v9616_v37, %v4005_v41  ;;  %v4864_v12 = vrot.slane %v9547_v58, 1 }
 0x41f   : > { %v4009_v23 = vpop.f32.mrf.mxu0  ;;  %5002 = vrot.lane.b32.xlu0 %v9771_v9, %s7338_s29  ;;  %v4744_v6 = vor.u32 %v4743_v3, %v4739_v48  ;;  %v3841_v48 = vadd.f32 %v9450_v39, %v9410_v56 }
 0x420   : > { %v4256_v47 = vmax.f32 %v4182_v50, 0.0  ;;  %v4010_v31 = vadd.f32 %v4009_v23, %v3833_v61  ;;  %v4508_v15 = vor.u32 %v4506_v46, %v4505_v44  ;;  %v9777_v52 = vsel %vm8406_vm1, %v4505_v44, 0 }
 0x421   : > { %v4011_v10 = vpop.f32.mrf.mxu0  ;;  %v9780_v37 = vsel %vm2710_vm2, %v4744_v6, %v4748_v8  ;;  %v4758_v30 = vshll.u32 %v9777_v52, 16  ;;  %v9802_v23 = vsel %vm2963_vm3, %v4863_v17, %v4864_v12 }
 0x422   : > { %v4425_v28 = vpack.c.bf16 %v4256_v47, %v4255_v60  ;;  %v9786_v19 = vsel %vm8406_vm1, 0, %v4508_v15  ;;  %v4187_v62 = vadd.f32 %v9637_v38, %v4010_v31 }
 0x423   : > { %v4012_v16 = vpop.f32.mrf.mxu0  ;;  %4986 = vrot.lane.b32.xlu1 %v9786_v19, %s7338_s29  ;;  %4954 = vrot.lane.b32.xlu0 %v9780_v37, %s7338_s29  ;;  %v4753_v41 = vshll.u32 %v9786_v19, 16  ;;  %v4751_v38 = vshrl.u32 %v9786_v19, 16  ;;  %v4760_v47 = vrot.slane %v4758_v30, 1 }
 0x424   : > { %v4510_v36 = vshrl.u32 %v4425_v28, 16  ;;  %v4013_v61 = vadd.f32 %v4012_v16, %v3836_v1  ;;  %v4513_v50 = vshll.u32 %v4425_v28, 16  ;;  %v4257_v6 = vmax.f32 %v4187_v62, 0.0 }
 0x425   : > { %v4014_v3 = vpop.f32.mrf.mxu0  ;;  %v4755_v44 = vrot.slane %v4753_v41, 1  ;;  %v3844_v28 = vadd.f32 %v9450_v39, %v9418_v14  ;;  %v4866_v16 = vrot.slane %v9581_v22, 1 }
 0x426   : > { %v4512_v46 = vrot.slane %v4510_v36, 7  ;;  %v4190_v60 = vadd.f32 %v9667_v21, %v4013_v61  ;;  %v3849_v3 = vadd.f32 %v9450_v39, %v9420_v51 }
 0x427   : > { %v4017_v8 = vpop.f32.mrf.mxu0  ;;  %5004 = vrot.lane.b32.xlu1 %v9802_v23, %s7338_s29  ;;  %v4756_v58 = vor.u32 %v4755_v44, %v4751_v38 }
 0x428   : > { %v4258_v31 = vmax.f32 %v4190_v60, 0.0  ;;  %v4018_v56 = vadd.f32 %v4017_v8, %v3841_v48  ;;  %v4515_v15 = vor.u32 %v4513_v50, %v4512_v46  ;;  %v9808_v10 = vsel %vm8406_vm1, %v4512_v46, 0 }
 0x429   : > { %v4019_v1 = vpop.f32.mrf.mxu0  ;;  %v9811_v21 = vsel %vm2710_vm2, %v4756_v58, %v4760_v47  ;;  %v4770_v14 = vshll.u32 %v9808_v10, 16  ;;  %v4867_v48 = vrot.slane %v9566_v53, 1 }
 0x42a   : > { %v4426_v17 = vpack.c.bf16 %v4258_v31, %v4257_v6  ;;  %v9817_v62 = vsel %vm8406_vm1, 0, %v4515_v15  ;;  %v4195_v41 = vadd.f32 %v9635_v54, %v4018_v56 }
 0x42b   : > { %v4020_v30 = vpop.f32.mrf.mxu0  ;;  %4956 = vrot.lane.b32.xlu1 %v9811_v21, %s7338_s29  ;;  %4988 = vrot.lane.b32.xlu0 %v9817_v62, %s7338_s29  ;;  %v4765_v36 = vshll.u32 %v9817_v62, 16  ;;  %v4763_v54 = vshrl.u32 %v9817_v62, 16  ;;  %v9833_v6 = vsel %vm2963_vm3, %v4866_v16, %v4867_v48  ;;  %v4772_v47 = vrot.slane %v4770_v14, 1 }
 0x42c   : > { %v4517_v61 = vshrl.u32 %v4426_v17, 16  ;;  %v4021_v12 = vadd.f32 %v4020_v30, %v3844_v28  ;;  %v4520_v50 = vshll.u32 %v4426_v17, 16  ;;  %v4259_v8 = vmax.f32 %v4195_v41, 0.0 }
 0x42d   : > { %v4022_v38 = vpop.f32.mrf.mxu0  ;;  %v4767_v44 = vrot.slane %v4765_v36, 1  ;;  %v3852_v28 = vadd.f32 %v9450_v39, %v9422_v26  ;;  %v4869_v41 = vrot.slane %v9622_v40, 1  ;;  %v4870_v48 = vrot.slane %v9606_v25, 1 }
 0x42e   : > { %v4519_v46 = vrot.slane %v4517_v61, 7  ;;  %v4198_v60 = vadd.f32 %v9654_v32, %v4021_v12 }
 0x42f   : > { %v4025_v58 = vpop.f32.mrf.mxu0  ;;  %5006 = vrot.lane.b32.xlu0 %v9833_v6, %s7338_s29  ;;  %v4768_v53 = vor.u32 %v4767_v44, %v4763_v54 }
 0x430   : > { %v4260_v31 = vmax.f32 %v4198_v60, 0.0  ;;  %v4026_v51 = vadd.f32 %v4025_v58, %v3849_v3  ;;  %v4522_v56 = vor.u32 %v4520_v50, %v4519_v46  ;;  %v9839_v15 = vsel %vm8406_vm1, %v4519_v46, 0 }
 0x431   : > { %v4027_v1 = vpop.f32.mrf.mxu0  ;;  %v9842_v32 = vsel %vm2710_vm2, %v4768_v53, %v4772_v47  ;;  %v4782_v26 = vshll.u32 %v9839_v15, 16  ;;  %v3857_v3 = vadd.f32 %v9450_v39, %v9430_v59  ;;  %v9864_v60 = vsel %vm2963_vm3, %v4869_v41, %v4870_v48 }
 0x432   : > { %v4427_v17 = vpack.c.bf16 %v4260_v31, %v4259_v8  ;;  %v9848_v16 = vsel %vm8406_vm1, 0, %v4522_v56  ;;  %v4203_v30 = vadd.f32 %v9678_v49, %v4026_v51  ;;  %v3860_v1 = vadd.f32 %v9450_v39, %v9435_v33 }
 0x433   : > { %v4028_v36 = vpop.f32.mrf.mxu0  ;;  %4990 = vrot.lane.b32.xlu1 %v9848_v16, %s7338_s29  ;;  %4958 = vrot.lane.b32.xlu0 %v9842_v32, %s7338_s29  ;;  %v4777_v14 = vshll.u32 %v9848_v16, 16  ;;  %v4775_v49 = vshrl.u32 %v9848_v16, 16  ;;  %v4784_v53 = vrot.slane %v4782_v26, 1  ;;  %v4872_v41 = vrot.slane %v9660_v11, 1 }
 0x434   : > { %v4524_v61 = vshrl.u32 %v4427_v17, 16  ;;  %v4029_v12 = vadd.f32 %v4028_v36, %v3852_v28  ;;  %v4527_v46 = vshll.u32 %v4427_v17, 16  ;;  %v4261_v8 = vmax.f32 %v4203_v30, 0.0 }
 0x435   : > { %v4030_v38 = vpop.f32.mrf.mxu0  ;;  %v4779_v54 = vrot.slane %v4777_v14, 1  ;;  %v3865_v48 = vadd.f32 %v9450_v39, %v9437_v18 }
 0x436   : > { %v4526_v44 = vrot.slane %v4524_v61, 7  ;;  %v4206_v50 = vadd.f32 %v9705_v13, %v4029_v12  ;;  %v4873_v12 = vrot.slane %v9641_v57, 1 }
 0x437   : > { %v4033_v58 = vpop.f32.mrf.mxu0  ;;  %5008 = vrot.lane.b32.xlu1 %v9864_v60, %s7338_s29  ;;  %v4780_v25 = vor.u32 %v4779_v54, %v4775_v49 }
 0x438   : > { %v4262_v47 = vmax.f32 %v4206_v50, 0.0  ;;  %v4034_v59 = vadd.f32 %v4033_v58, %v3857_v3  ;;  %v4529_v31 = vor.u32 %v4527_v46, %v4526_v44  ;;  %v9870_v51 = vsel %vm8406_vm1, %v4526_v44, 0 }
 0x439   : > { %v4035_v56 = vpop.f32.mrf.mxu0  ;;  %v9873_v13 = vsel %vm2710_vm2, %v4780_v25, %v4784_v53  ;;  %v4794_v33 = vshll.u32 %v9870_v51, 16  ;;  %v9895_v46 = vsel %vm2963_vm3, %v4872_v41, %v4873_v12 }
 0x43a   : > { %v4428_v28 = vpack.c.bf16 %v4262_v47, %v4261_v8  ;;  %v9879_v17 = vsel %vm8406_vm1, 0, %v4529_v31  ;;  %v4211_v30 = vadd.f32 %v9673_v0, %v4034_v59  ;;  %v3868_v31 = vadd.f32 %v9450_v39, %v9442_v42 }
 0x43b   : > { %v4036_v36 = vpop.f32.mrf.mxu0  ;;  %4960 = vrot.lane.b32.xlu1 %v9873_v13, %s7338_s29  ;;  %4992 = vrot.lane.b32.xlu0 %v9879_v17, %s7338_s29  ;;  %v4789_v14 = vshll.u32 %v9879_v17, 16  ;;  %v4787_v0 = vshrl.u32 %v9879_v17, 16  ;;  %v4796_v58 = vrot.slane %v4794_v33, 1 }
 0x43c   : > { %v4531_v26 = vshrl.u32 %v4428_v28, 16  ;;  %v4037_v61 = vadd.f32 %v4036_v36, %v3860_v1  ;;  %v4534_v54 = vshll.u32 %v4428_v28, 16  ;;  %v4263_v50 = vmax.f32 %v4211_v30, 0.0  ;;  %v4221_v30 = vpop.f32.mrf.mxu1 }
 0x43d   : > { %v4038_v3 = vpop.f32.mrf.mxu0  ;;  %v4791_v38 = vrot.slane %v4789_v14, 1  ;;  %v4875_v28 = vrot.slane %v9698_v35, 1 }
 0x43e   : > { %v4533_v49 = vrot.slane %v4531_v26, 7  ;;  %v4214_v44 = vadd.f32 %v9692_v5, %v4037_v61  ;;  %v10882_v26 = vld [vmem:[#allocation10_spill] sm:$0xff] }
 0x43f   : > { %v4041_v8 = vpop.f32.mrf.mxu0  ;;  %5010 = vrot.lane.b32.xlu0 %v9895_v46, %s7338_s29  ;;  %v4792_v57 = vor.u32 %v4791_v38, %v4787_v0  ;;  %v4876_v61 = vrot.slane %v10882_v26, 1 }
 0x440   : > { %v4264_v25 = vmax.f32 %v4214_v44, 0.0  ;;  %v4042_v18 = vadd.f32 %v4041_v8, %v3865_v48  ;;  %v4536_v53 = vor.u32 %v4534_v54, %v4533_v49  ;;  %v9901_v47 = vsel %vm8406_vm1, %v4533_v49, 0 }
 0x441   : > { %v4043_v59 = vpop.f32.mrf.mxu0  ;;  %v9904_v5 = vsel %vm2710_vm2, %v4792_v57, %v4796_v58  ;;  %v4806_v14 = vshll.u32 %v9901_v47, 16  ;;  %v9923_v54 = vsel %vm2963_vm3, %v4875_v28, %v4876_v61 }
 0x442   : > { %v4429_v56 = vpack.c.bf16 %v4264_v25, %v4263_v50  ;;  %v9910_v1 = vsel %vm8406_vm1, 0, %v4536_v53  ;;  %v4219_v39 = vadd.f32 %v9715_v63, %v4042_v18  ;;  %v4878_v59 = vrot.slane %v9726_v29, 1 }
 0x443   : > { %v4044_v41 = vpop.f32.mrf.mxu0  ;;  %4994 = vrot.lane.b32.xlu1 %v9910_v1, %s7338_s29  ;;  %4962 = vrot.lane.b32.xlu0 %v9904_v5, %s7338_s29  ;;  %v4801_v36 = vshll.u32 %v9910_v1, 16  ;;  %v4799_v48 = vshrl.u32 %v9910_v1, 16  ;;  %v4808_v50 = vrot.slane %v4806_v14, 1  ;;  %v4896_v55 = vrot.slane %v9910_v1, 1 }
 0x444   : > { %v4538_v42 = vshrl.u32 %v4429_v56, 16  ;;  %v4045_v33 = vadd.f32 %v4044_v41, %v3868_v31  ;;  %v4541_v38 = vshll.u32 %v4429_v56, 16  ;;  %v4265_v8 = vmax.f32 %v4219_v39, 0.0 }
 0x445   : > { %v4046_v12 = vpop.f32.mrf.mxu0  ;;  %v4803_v3 = vrot.slane %v4801_v36, 1  ;;  %v4879_v41 = vrot.slane %v9713_v27, 1  ;;  %v4881_v27 = vrot.slane %v9755_v20, 1 }
 0x446   : > { %v4540_v0 = vrot.slane %v4538_v42, 7  ;;  %v4222_v49 = vadd.f32 %v4221_v30, %v4045_v33  ;;  %v4937_v33 = vpop.permute.xlu0 %4936 }
 0x447   : > { %5012 = vrot.lane.b32.xlu1 %v9923_v54, %s7338_s29  ;;  %v4804_v44 = vor.u32 %v4803_v3, %v4799_v48  ;;  %v9948_v39 = vsel %vm2963_vm3, %v4878_v59, %v4879_v41  ;;  %v4888_v41 = vrot.slane %v9808_v10, 1 }
 0x448   : > { %v4266_v63 = vmax.f32 %v4222_v49, 0.0  ;;  %v4543_v57 = vor.u32 %v4541_v38, %v4540_v0  ;;  %v9929_v58 = vsel %vm8406_vm1, %v4540_v0, 0  ;;  %v10883_v0 = vld [vmem:[#allocation3_spill] sm:$0xff] }
 0x449   : > { %v9932_v25 = vsel %vm2710_vm2, %v4804_v44, %v4808_v50  ;;  %v4818_v56 = vshll.u32 %v9929_v58, 16  ;;  %v5037_v38 = vsel %vm3164_vm4, %v10883_v0, %v4937_v33  ;;  %v4884_v44 = vrot.slane %v9786_v19, 1  ;;  %v10884_v50 = vld [vmem:[#allocation5_spill] sm:$0xff] }
 0x44a   : > { %v4430_v18 = vpack.c.bf16 %v4266_v63, %v4265_v8  ;;  %v9936_v53 = vsel %vm8406_vm1, 0, %v4543_v57  ;;  %v4882_v63 = vrot.slane %v9746_v43, 1  ;;  %v4885_v57 = vrot.slane %v9777_v52, 1 }
 0x44b   : > { %4964 = vrot.lane.b32.xlu1 %v9932_v25, %s7338_s29  ;;  %4996 = vrot.lane.b32.xlu0 %v9936_v53, %s7338_s29  ;;  %v4813_v31 = vshll.u32 %v9936_v53, 16  ;;  %v4811_v30 = vshrl.u32 %v9936_v53, 16  ;;  %v4820_v61 = vrot.slane %v4818_v56, 1  ;;  %v4887_v43 = vrot.slane %v9817_v62, 1 }
 0x44c   : > { %v4545_v28 = vshrl.u32 %v4430_v18, 16  ;;  %v4548_v42 = vshll.u32 %v4430_v18, 16  ;;  %v7166_v18 = vld [vmem:[%s10837_s5 + $0x110] sm:$0xff]   ;;  %v9975_v59 = vsel %vm2963_vm3, %v4881_v27, %v4882_v63  ;;  %v9981_v56 = vsel %vm2963_vm3, %v4884_v44, %v4885_v57 }
 0x44d   : > { %v4815_v36 = vrot.slane %v4813_v31, 1  ;;  %v7304_v31 = vld [vmem:[%s10837_s5 + $0x118] sm:$0xff]   ;;  %v4890_v52 = vrot.slane %v9848_v16, 1  ;;  %v9998_v33 = vsel %vm2963_vm3, %v4887_v43, %v4888_v41  ;;  %v4900_v43 = vrot.slane %v9929_v58, 1 }
 0x44e   : > { %v4547_v14 = vrot.slane %v4545_v28, 7 }
 0x44f   : > { %5014 = vrot.lane.b32.xlu0 %v9948_v39, %s7338_s29  ;;  %v4816_v26 = vor.u32 %v4815_v36, %v4811_v30  ;;  %v4891_v30 = vrot.slane %v9839_v15, 1  ;;  %v7173_v36 = vld [vmem:[%s10837_s5 + $0x108] sm:$0xff]  }
 0x450   : > { %v4550_v12 = vor.u32 %v4548_v42, %v4547_v14  ;;  %v4628_v42 = vsel %vm8406_vm1, %v4547_v14, 0  ;;  %v4894_v14 = vrot.slane %v9870_v51, 1 }
 0x451   : > { %v9953_v48 = vsel %vm2710_vm2, %v4816_v26, %v4820_v61  ;;  %v10001_v26 = vsel %vm2963_vm3, %v4890_v52, %v4891_v30  ;;  %v4893_v61 = vrot.slane %v9879_v17, 1 }
 0x452   : > { %v4969_v3 = vpop.permute.xlu1 %4968  ;;  %v9960_v49 = vsel %vm8406_vm1, 0, %v4550_v12 }
 0x453   : > { %4998 = vrot.lane.b32.xlu1 %v9960_v49, %s7338_s29  ;;  %4966 = vrot.lane.b32.xlu0 %v9953_v48, %s7338_s29  ;;  %v5086_v8 = vsel %vm3164_vm4, %v10884_v50, %v4969_v3  ;;  %v4905_v28 = vshll.u32 %v9960_v49, 16  ;;  %v4903_v27 = vshrl.u32 %v9960_v49, 16  ;;  %v4910_v3 = vshll.u32 %v4628_v42, 16 }
 0x454   : > { %5579 = vmatprep.mubr.bf16.mxu0 %v5086_v8  ;;  %v4897_v8 = vrot.slane %v9901_v47, 1  ;;  %v10018_v63 = vsel %vm2963_vm3, %v4893_v61, %v4894_v14  ;;  %v4916_v41 = vrot.slane %v9960_v49, 1  ;;  %v4917_v61 = vrot.slane %v4628_v42, 1 }
 0x455   : > { %5580 = vmatmul.mubr.bf16.vlgmr.msra.gmra.mxu0 %v5037_v38  ;;  %v4907_v12 = vrot.slane %v4905_v28, 1  ;;  %v7174_v38 = vld [vmem:[%s10837_s5 + $0x100] sm:$0xff]  }
 0x456   : > { %6988 = vmatpush3.bf16.msra.mxu0 %v7304_v31  ;;  %v4912_v31 = vrot.slane %v4910_v3, 1 }
 0x457   : > { %5016 = vrot.lane.b32.xlu1 %v9975_v59, %s7338_s29  ;;  %5018 = vrot.lane.b32.xlu0 %v9981_v56, %s7338_s29  ;;  %v4908_v57 = vor.u32 %v4907_v12, %v4903_v27 }
 0x458   : > { %6989 = vmatprep.subr.bf16.mxu0 %v7166_v18 }
 0x459   : > { %v4939_v10 = vpop.permute.xlu0 %4938  ;;  %v10034_v52 = vsel %vm2710_vm2, %v4908_v57, %v4912_v31 }
 0x45a   : > { %6990 = vmatpush3.bf16.msra.mxu0 %v7166_v18  ;;  %v5040_v51 = vsel %vm3164_vm4, %v9500_v2, %v4939_v10  ;;  %v10025_v18 = vsel %vm2963_vm3, %v4896_v55, %v4897_v8  ;;  %v10049_v10 = vsel %vm2963_vm3, %v4916_v41, %v4917_v61  ;;  %v10885_v55 = vld [vmem:[#allocation4_spill] sm:$0xff]  ;;  %v10886_v41 = vld [vmem:[#allocation6_spill] sm:$0xff] }
 0x45b   : > { %5020 = vrot.lane.b32.xlu1 %v9998_v33, %s7338_s29  ;;  %5022 = vrot.lane.b32.xlu0 %v10001_v26, %s7338_s29 }
 0x45c   : > { %v4971_v15 = vpop.permute.xlu1 %4970  ;;  %6991 = vmatprep.subr.bf16.mxu0 %v7173_v36 }
 0x45d   : > { %v5090_v44 = vsel %vm3164_vm4, %v9740_v24, %v4971_v15  ;;  %v4899_v24 = vrot.slane %v9936_v53, 1 }
 0x45e   : > { %5587 = vmatprep.mubr.bf16.mxu0 %v5090_v44  ;;  %6992 = vmatpush3.bf16.msra.mxu0 %v7173_v36 }
 0x45f   : > { %5024 = vrot.lane.b32.xlu1 %v10018_v63, %s7338_s29  ;;  %5588 = vmatmul.mubr.bf16.gmra.mxu0 %v5040_v51  ;;  %v10039_v28 = vsel %vm2963_vm3, %v4899_v24, %v4900_v43 }
 0x460   : > { %5026 = vrot.lane.b32.xlu0 %v10025_v18, %s7338_s29  ;;  %v4973_v47 = vpop.permute.xlu1 %4972  ;;  %6993 = vmatprep.subr.bf16.mxu0 %v7174_v38 }
 0x461   : > { %v5094_v2 = vsel %vm3164_vm4, %v9771_v9, %v4973_v47 }
 0x462   : > { %5595 = vmatprep.mubr.bf16.mxu0 %v5094_v2  ;;  %6994 = vmatpush3.bf16.msra.mxu0 %v7174_v38 }
 0x463   : > { %5032 = vrot.lane.b32.xlu1 %v10034_v52, %s7338_s29 }
 0x464   : > { %5028 = vrot.lane.b32.xlu0 %v10039_v28, %s7338_s29  ;;  %v4941_v30 = vpop.permute.xlu0 %4940 }
 0x465   : > { %v4975_v36 = vpop.permute.xlu1 %4974  ;;  %v5043_v58 = vsel %vm3164_vm4, %v9530_v34, %v4941_v30 }
 0x466   : > { %5740 = vmatprep.mubr.bf16.mxu1 %v5043_v58  ;;  %v5098_v12 = vsel %vm3164_vm4, %v9802_v23, %v4975_v36 }
 0x467   : > { %5596 = vmatmul.mubr.bf16.gmra.mxu0 %v5043_v58  ;;  %5034 = vrot.lane.b32.xlu1 %v10885_v55, %s7338_s29 }
 0x468   : > { %5030 = vrot.lane.b32.xlu0 %v10049_v10, %s7338_s29  ;;  %5603 = vmatprep.mubr.bf16.mxu0 %v5098_v12  ;;  %v4943_v15 = vpop.permute.xlu0 %4942 }
 0x469   : > { %v5046_v34 = vsel %vm3164_vm4, %v9540_v45, %v4943_v15  ;;  %v10887_v15 = vld [vmem:[#allocation7_spill] sm:$0xff] }
 0x46c   : > { %v4945_v27 = vpop.permute.xlu0 %4944 }
 0x46d   : > { %v4977_v14 = vpop.permute.xlu1 %4976  ;;  %v5049_v38 = vsel %vm3164_vm4, %v9581_v22, %v4945_v27 }
 0x46e   : > { %v5102_v42 = vsel %vm3164_vm4, %v9833_v6, %v4977_v14 }
 0x46f   : > { %5604 = vmatmul.mubr.bf16.gmra.mxu0 %v5046_v34 }
 0x470   : > { %5611 = vmatprep.mubr.bf16.mxu0 %v5102_v42 }
 0x474   : > { %v4947_v8 = vpop.permute.xlu0 %4946 }
 0x475   : > { %v4979_v3 = vpop.permute.xlu1 %4978  ;;  %v5052_v45 = vsel %vm3164_vm4, %v9622_v40, %v4947_v8 }
 0x476   : > { %v5106_v44 = vsel %vm3164_vm4, %v9864_v60, %v4979_v3 }
 0x477   : > { %5612 = vmatmul.mubr.bf16.gmra.mxu0 %v5049_v38 }
 0x478   : > { %5619 = vmatprep.mubr.bf16.mxu0 %v5106_v44 }
 0x47c   : > { %v4949_v24 = vpop.permute.xlu0 %4948 }
 0x47d   : > { %v4981_v51 = vpop.permute.xlu1 %4980  ;;  %v5055_v22 = vsel %vm3164_vm4, %v9660_v11, %v4949_v24  ;;  %v4049_v11 = vpop.f32.mrf.mxu0 }
 0x47e   : > { %v5110_v57 = vsel %vm3164_vm4, %v9895_v46, %v4981_v51  ;;  %v10888_v51 = vld [vmem:[#allocation8_spill] sm:$0xff] }
 0x47f   : > { %5620 = vmatmul.mubr.bf16.gmra.mxu0 %v5052_v45  ;;  %v4051_v61 = vpop.f32.mrf.mxu0 }
 0x480   : > { %5627 = vmatprep.mubr.bf16.mxu0 %v5110_v57 }
 0x481   : > { %v4052_v42 = vpop.f32.mrf.mxu0 }
 0x484   : > { %v4951_v2 = vpop.permute.xlu0 %4950 }
 0x485   : > { %v4983_v47 = vpop.permute.xlu1 %4982  ;;  %v5058_v36 = vsel %vm3164_vm4, %v9698_v35, %v4951_v2  ;;  %v10889_v2 = vld [vmem:[#allocation2_spill] sm:$0xff] }
 0x486   : > { %v5114_v31 = vsel %vm3164_vm4, %v9923_v54, %v4983_v47 }
 0x487   : > { %5628 = vmatmul.mubr.bf16.gmra.mxu0 %v5055_v22 }
 0x488   : > { %5635 = vmatprep.mubr.bf16.mxu0 %v5114_v31 }
 0x489   : > { %v5001_v43 = vpop.permute.xlu1 %5000 }
 0x48a   : > { %v5150_v40 = vsel %vm3164_vm4, %v10886_v41, %v5001_v43 }
 0x48b   : > { %5741 = vmatmul.mubr.bf16.vlgmr.msra.gmra.mxu1 %v5150_v40 }
 0x48c   : > { %5748 = vmatprep.mubr.bf16.mxu1 %v5046_v34  ;;  %v4054_v34 = vpop.f32.mrf.mxu0 }
 0x48d   : > { %v4985_v30 = vpop.permute.xlu0 %4984  ;;  %v4953_v12 = vpop.permute.xlu1 %4952 }
 0x48e   : > { %v5118_v58 = vsel %vm3164_vm4, %v9948_v39, %v4985_v30  ;;  %v5061_v35 = vsel %vm3164_vm4, %v9726_v29, %v4953_v12 }
 0x48f   : > { %5636 = vmatmul.mubr.bf16.gmra.mxu0 %v5058_v36 }
 0x490   : > { %5643 = vmatprep.mubr.bf16.mxu0 %v5118_v58  ;;  %v10890_v58 = vld [vmem:[#allocation9_spill] sm:$0xff] }
 0x491   : > { %v5003_v55 = vpop.permute.xlu0 %5002 }
 0x492   : > { %v5154_v14 = vsel %vm3164_vm4, %v10887_v15, %v5003_v55  ;;  %v10891_v15 = vld [vmem:[#allocation11_spill] sm:$0xff] }
 0x493   : > { %5749 = vmatmul.mubr.bf16.gmra.mxu1 %v5154_v14 }
 0x494   : > { %5756 = vmatprep.mubr.bf16.mxu1 %v5049_v38 }
 0x495   : > { %v4987_v27 = vpop.permute.xlu1 %4986  ;;  %v4955_v44 = vpop.permute.xlu0 %4954 }
 0x496   : > { %v5122_v3 = vsel %vm3164_vm4, %v9975_v59, %v4987_v27  ;;  %v5064_v38 = vsel %vm3164_vm4, %v9755_v20, %v4955_v44 }
 0x497   : > { %5644 = vmatmul.mubr.bf16.gmra.mxu0 %v5061_v35 }
 0x498   : > { %5651 = vmatprep.mubr.bf16.mxu0 %v5122_v3 }
 0x499   : > { %v5005_v8 = vpop.permute.xlu1 %5004 }
 0x49a   : > { %v5158_v57 = vsel %vm3164_vm4, %v10888_v51, %v5005_v8 }
 0x49b   : > { %5757 = vmatmul.mubr.bf16.gmra.mxu1 %v5158_v57 }
 0x49c   : > { %5764 = vmatprep.mubr.bf16.mxu1 %v5052_v45 }
 0x49d   : > { %v4989_v24 = vpop.permute.xlu0 %4988  ;;  %v4957_v29 = vpop.permute.xlu1 %4956 }
 0x49e   : > { %v5126_v47 = vsel %vm3164_vm4, %v9981_v56, %v4989_v24  ;;  %v5067_v45 = vsel %vm3164_vm4, %v9786_v19, %v4957_v29 }
 0x49f   : > { %5652 = vmatmul.mubr.bf16.gmra.mxu0 %v5064_v38 }
 0x4a0   : > { %5659 = vmatprep.mubr.bf16.mxu0 %v5126_v47 }
 0x4a1   : > { %v5007_v31 = vpop.permute.xlu0 %5006 }
 0x4a2   : > { %v5162_v43 = vsel %vm3164_vm4, %v10889_v2, %v5007_v31 }
 0x4a3   : > { %5765 = vmatmul.mubr.bf16.gmra.mxu1 %v5162_v43 }
 0x4a4   : > { %5772 = vmatprep.mubr.bf16.mxu1 %v5055_v22 }
 0x4a5   : > { %v4991_v41 = vpop.permute.xlu1 %4990  ;;  %v4959_v20 = vpop.permute.xlu0 %4958 }
 0x4a6   : > { %v5130_v40 = vsel %vm3164_vm4, %v9998_v33, %v4991_v41  ;;  %v5070_v22 = vsel %vm3164_vm4, %v9817_v62, %v4959_v20 }
 0x4a7   : > { %5660 = vmatmul.mubr.bf16.gmra.mxu0 %v5067_v45 }
 0x4a8   : > { %5667 = vmatprep.mubr.bf16.mxu0 %v5130_v40 }
 0x4a9   : > { %v5009_v30 = vpop.permute.xlu1 %5008 }
 0x4aa   : > { %v5166_v11 = vsel %vm3164_vm4, %v10890_v58, %v5009_v30 }
 0x4ab   : > { %5773 = vmatmul.mubr.bf16.gmra.mxu1 %v5166_v11 }
 0x4ac   : > { %5780 = vmatprep.mubr.bf16.mxu1 %v5058_v36 }
 0x4ad   : > { %v4993_v61 = vpop.permute.xlu0 %4992  ;;  %v4961_v19 = vpop.permute.xlu1 %4960 }
 0x4ae   : > { %v5134_v12 = vsel %vm3164_vm4, %v10001_v26, %v4993_v61  ;;  %v5073_v36 = vsel %vm3164_vm4, %v9848_v16, %v4961_v19 }
 0x4af   : > { %5668 = vmatmul.mubr.bf16.gmra.mxu0 %v5070_v22 }
 0x4b0   : > { %5675 = vmatprep.mubr.bf16.mxu0 %v5134_v12 }
 0x4b1   : > { %v5011_v55 = vpop.permute.xlu0 %5010 }
 0x4b2   : > { %v5170_v14 = vsel %vm3164_vm4, %v10891_v15, %v5011_v55 }
 0x4b3   : > { %5781 = vmatmul.mubr.bf16.gmra.mxu1 %v5170_v14 }
 0x4b4   : > { %5788 = vmatprep.mubr.bf16.mxu1 %v5061_v35 }
 0x4b5   : > { %v4995_v42 = vpop.permute.xlu1 %4994  ;;  %v4963_v62 = vpop.permute.xlu0 %4962 }
 0x4b6   : > { %v5138_v34 = vsel %vm3164_vm4, %v10018_v63, %v4995_v42  ;;  %v5076_v35 = vsel %vm3164_vm4, %v9879_v17, %v4963_v62 }
 0x4b7   : > { %5676 = vmatmul.mubr.bf16.gmra.mxu0 %v5073_v36 }
 0x4b8   : > { %5683 = vmatprep.mubr.bf16.mxu0 %v5138_v34 }
 0x4b9   : > { %v5013_v27 = vpop.permute.xlu1 %5012 }
 0x4ba   : > { %v5174_v3 = vsel %vm3164_vm4, %v9718_v4, %v5013_v27 }
 0x4bb   : > { %5789 = vmatmul.mubr.bf16.gmra.mxu1 %v5174_v3 }
 0x4bc   : > { %5796 = vmatprep.mubr.bf16.mxu1 %v5064_v38 }
 0x4bd   : > { %v4997_v44 = vpop.permute.xlu0 %4996  ;;  %v4965_v16 = vpop.permute.xlu1 %4964 }
 0x4be   : > { %v5142_v8 = vsel %vm3164_vm4, %v10025_v18, %v4997_v44  ;;  %v5079_v4 = vsel %vm3164_vm4, %v9910_v1, %v4965_v16 }
 0x4bf   : > { %5684 = vmatmul.mubr.bf16.gmra.mxu0 %v5076_v35 }
 0x4c0   : > { %5691 = vmatprep.mubr.bf16.mxu0 %v5142_v8 }
 0x4c1   : > { %v5015_v51 = vpop.permute.xlu0 %5014 }
 0x4c2   : > { %v5178_v57 = vsel %vm3164_vm4, %v9749_v7, %v5015_v51 }
 0x4c3   : > { %5797 = vmatmul.mubr.bf16.gmra.mxu1 %v5178_v57 }
 0x4c4   : > { %5804 = vmatprep.mubr.bf16.mxu1 %v5067_v45 }
 0x4c5   : > { %v4999_v24 = vpop.permute.xlu1 %4998  ;;  %v4967_v17 = vpop.permute.xlu0 %4966 }
 0x4c6   : > { %v5146_v38 = vsel %vm3164_vm4, %v10039_v28, %v4999_v24  ;;  %v5082_v7 = vsel %vm3164_vm4, %v9936_v53, %v4967_v17  ;;  %v10198_v24 = vld [vmem:[%s10838_s6] ss:$0 sm:$0xff] }
 0x4c7   : > { %5692 = vmatmul.mubr.bf16.gmra.mxu0 %v5079_v4 }
 0x4c8   : > { %5699 = vmatprep.mubr.bf16.mxu0 %v5146_v38 }
 0x4c9   : > { %v5017_v47 = vpop.permute.xlu1 %5016  ;;  %v5019_v31 = vpop.permute.xlu0 %5018 }
 0x4ca   : > { %v5182_v29 = vsel %vm3164_vm4, %v9780_v37, %v5017_v47  ;;  %v5186_v1 = vsel %vm3164_vm4, %v9811_v21, %v5019_v31 }
 0x4cb   : > { %5805 = vmatmul.mubr.bf16.gmra.mxu1 %v5182_v29 }
 0x4cc   : > { %5812 = vmatprep.mubr.bf16.mxu1 %v5070_v22 }
 0x4cd   : > { %v5021_v2 = vpop.permute.xlu1 %5020  ;;  %v5023_v53 = vpop.permute.xlu0 %5022 }
 0x4ce   : > { %v5190_v37 = vsel %vm3164_vm4, %v9842_v32, %v5021_v2 }
 0x4cf   : > { %5700 = vmatmul.mubr.bf16.gmra.mxu0 %v5082_v7 }
 0x4d0   : > { %6995 = vmatprep.mubr.msk.bf16.mxu0 %vm3164_vm4, %v9771_v9  ;;  %v5194_v9 = vsel %vm3164_vm4, %v9873_v13, %v5023_v53 }
 0x4d3   : > { %5813 = vmatmul.mubr.bf16.gmra.mxu1 %v5186_v1 }
 0x4d4   : > { %5820 = vmatprep.mubr.bf16.mxu1 %v5073_v36 }
 0x4d7   : > { %6996 = vmatmul.mubr.msk.bf16.vlgmr.msra.gmra.mxu0 %vm3164_vm4, %v9802_v23  ;;  %v5025_v23 = vpop.permute.xlu1 %5024 }
 0x4d8   : > { %6999 = vmatprep.mubr.msk.bf16.mxu0 %vm3164_vm4, %v9833_v6  ;;  %v5198_v21 = vsel %vm3164_vm4, %v9904_v5, %v5025_v23  ;;  %v5027_v6 = vpop.permute.xlu0 %5026 }
 0x4db   : > { %5821 = vmatmul.mubr.bf16.gmra.mxu1 %v5190_v37  ;;  %v5033_v32 = vpop.permute.xlu1 %5032 }
 0x4dc   : > { %5828 = vmatprep.mubr.bf16.mxu1 %v5076_v35  ;;  %v5213_v13 = vsel %vm3164_vm4, %v9960_v49, %v5033_v32  ;;  %v5029_v5 = vpop.permute.xlu0 %5028 }
 0x4df   : > { %7000 = vmatmul.mubr.msk.bf16.gmra.mxu0 %vm3164_vm4, %v9864_v60  ;;  %v5202_v60 = vsel %vm3164_vm4, %v9932_v25, %v5027_v6 }
 0x4e0   : > { %7003 = vmatprep.mubr.msk.bf16.mxu0 %vm3164_vm4, %v9895_v46  ;;  %v5035_v46 = vpop.permute.xlu1 %5034  ;;  %v5031_v25 = vpop.permute.xlu0 %5030 }
 0x4e1   : > { %v5210_v49 = vsel %vm3164_vm4, %v10034_v52, %v5031_v25 }
 0x4e3   : > { %5829 = vmatmul.mubr.bf16.gmra.mxu1 %v5194_v9 }
 0x4e4   : > { %5836 = vmatprep.mubr.bf16.mxu1 %v5079_v4 }
 0x4e7   : > { %7004 = vmatmul.mubr.msk.bf16.gmra.mxu0 %vm3164_vm4, %v9923_v54  ;;  %v5216_v54 = vsel %vm3164_vm4, %v10883_v0, %v5035_v46 }
 0x4e8   : > { %7007 = vmatprep.mubr.msk.bf16.mxu0 %vm3164_vm4, %v9948_v39  ;;  %v5206_v39 = vsel %vm3164_vm4, %v9953_v48, %v5029_v5 }
 0x4eb   : > { %5837 = vmatmul.mubr.bf16.gmra.mxu1 %v5198_v21 }
 0x4ec   : > { %5844 = vmatprep.mubr.bf16.mxu1 %v5082_v7 }
 0x4ef   : > { %7008 = vmatmul.mubr.msk.bf16.gmra.mxu0 %vm3164_vm4, %v9975_v59 }
 0x4f0   : > { %7011 = vmatprep.mubr.msk.bf16.mxu0 %vm3164_vm4, %v9981_v56 }
 0x4f3   : > { %5845 = vmatmul.mubr.bf16.gmra.mxu1 %v5202_v60 }
 0x4f4   : > { %5852 = vmatprep.mubr.bf16.mxu1 %v5213_v13 }
 0x4f7   : > { %7012 = vmatmul.mubr.msk.bf16.gmra.mxu0 %vm3164_vm4, %v9998_v33 }
 0x4f8   : > { %7015 = vmatprep.mubr.msk.bf16.mxu0 %vm3164_vm4, %v10001_v26 }
 0x4fb   : > { %5853 = vmatmul.mubr.bf16.gmra.mxu1 %v5206_v39 }
 0x4fc   : > { %5860 = vmatprep.mubr.bf16.mxu1 %v5216_v54 }
 0x4ff   : > { %7016 = vmatmul.mubr.msk.bf16.gmra.mxu0 %vm3164_vm4, %v10018_v63 }
 0x500   : > { %7019 = vmatprep.mubr.msk.bf16.mxu0 %vm3164_vm4, %v10025_v18 }
 0x503   : > { %5861 = vmatmul.mubr.bf16.gmra.mxu1 %v5210_v49 }
 0x507   : > { %7020 = vmatmul.mubr.msk.bf16.gmra.mxu0 %vm3164_vm4, %v10039_v28 }
 0x508   : > { %7023 = vmatprep.mubr.msk.bf16.mxu0 %vm3164_vm4, %v10049_v10 }
 0x50f   : > { %7024 = vmatmul.mubr.msk.bf16.gmra.mxu0 %vm3164_vm4, %v10884_v50 }
 0x515   : > { %v6667_v48 = vpop.f32.mrf.mxu0 }
 0x517   : > { %v6668_v0 = vpop.f32.mrf.mxu0 }
 0x518   : > { %v6669_v59 = vadd.f32 %v6668_v0, %v6667_v48 }
 0x519   : > { %v6670_v56 = vpop.f32.mrf.mxu0 }
 0x51a   : > { %v5582_v29 = vadd.f32 %v6669_v59, %v10198_v24 }
 0x51b   : > { %v6671_v33 = vpop.f32.mrf.mxu0 }
 0x51c   : > { %v6672_v26 = vadd.f32 %v6671_v33, %v6670_v56 }
 0x51e   : > { %v5585_v23 = vadd.f32 %v6672_v26, %v10198_v24 }
 0x51f   : > { %v6673_v63 = vpop.f32.mrf.mxu0 }
 0x521   : > { %v6674_v18 = vpop.f32.mrf.mxu0 }
 0x522   : > { %v10173_v43 = vadd.f32 %v6674_v18, %v6673_v63 }
 0x523   : > { %v6676_v52 = vpop.f32.mrf.mxu0 }
 0x525   : > { %v6677_v41 = vpop.f32.mrf.mxu0 }
 0x526   : > { %v10175_v45 = vadd.f32 %v6677_v41, %v6676_v52 }
 0x527   : > { %v6679_v28 = vpop.f32.mrf.mxu0 }
 0x529   : > { %v6680_v40 = vpop.f32.mrf.mxu0 }
 0x52a   : > { %v10177_v10 = vadd.f32 %v6680_v40, %v6679_v28 }
 0x52b   : > { %v6682_v20 = vpop.f32.mrf.mxu0 }
 0x52d   : > { %v6683_v50 = vpop.f32.mrf.mxu0 }
 0x52e   : > { %v10179_v30 = vadd.f32 %v6683_v50, %v6682_v20 }
 0x52f   : > { %v6685_v58 = vpop.f32.mrf.mxu0 }
 0x531   : > { %v6686_v11 = vpop.f32.mrf.mxu0 }
 0x532   : > { %v10181_v61 = vadd.f32 %v6686_v11, %v6685_v58 }
 0x533   : > { %v6688_v22 = vpop.f32.mrf.mxu0 }
 0x535   : > { %v6689_v12 = vpop.f32.mrf.mxu0 }
 0x536   : > { %v10183_v19 = vadd.f32 %v6689_v12, %v6688_v22 }
 0x537   : > { %v6691_v55 = vpop.f32.mrf.mxu0 }
 0x539   : > { %v6692_v15 = vpop.f32.mrf.mxu0 }
 0x53a   : > { %v10185_v14 = vadd.f32 %v6692_v15, %v6691_v55 }
 0x53b   : > { %v6694_v42 = vpop.f32.mrf.mxu0 }
 0x53d   : > { %v6695_v36 = vpop.f32.mrf.mxu0 }
 0x53e   : > { %v10187_v34 = vadd.f32 %v6695_v36, %v6694_v42 }
 0x53f   : > { %v6697_v62 = vpop.f32.mrf.mxu0 }
 0x541   : > { %v6698_v27 = vpop.f32.mrf.mxu0 }
 0x542   : > { %v10189_v3 = vadd.f32 %v6698_v27, %v6697_v62 }
 0x543   : > { %v6700_v44 = vpop.f32.mrf.mxu0 }
 0x545   : > { %v6701_v35 = vpop.f32.mrf.mxu0 }
 0x546   : > { %v10191_v8 = vadd.f32 %v6701_v35, %v6700_v44 }
 0x547   : > { %v6703_v16 = vpop.f32.mrf.mxu0 }
 0x549   : > { %v6704_v51 = vpop.f32.mrf.mxu0 }
 0x54a   : > { %v10193_v57 = vadd.f32 %v6704_v51, %v6703_v16 }
 0x54b   : > { %v6706_v4 = vpop.f32.mrf.mxu0  ;;  %v6779_v38 = vpop.f32.mrf.mxu1 }
 0x54d   : > { %v6707_v17 = vpop.f32.mrf.mxu0  ;;  %v6780_v47 = vpop.f32.mrf.mxu1 }
 0x54e   : > { %v10201_v7 = vadd.f32 %v6707_v17, %v6706_v4  ;;  %v6781_v31 = vadd.f32 %v6780_v47, %v6779_v38 }
 0x54f   : > { %v6709_v1 = vpop.f32.mrf.mxu0  ;;  %v6782_v2 = vpop.f32.mrf.mxu1 }
 0x550   : > { %v10203_v37 = vadd.f32 %v6781_v31, %v5582_v29 }
 0x551   : > { %v6710_v53 = vpop.f32.mrf.mxu0  ;;  %v6783_v9 = vpop.f32.mrf.mxu1 }
 0x552   : > { %v10206_v21 = vadd.f32 %v6710_v53, %v6709_v1  ;;  %v6784_v6 = vadd.f32 %v6783_v9, %v6782_v2 }
 0x553   : > { %v6712_v32 = vpop.f32.mrf.mxu0  ;;  %v10208_v60 = vpop.f32.mrf.mxu1 }
 0x554   : > { %v10210_v13 = vadd.f32 %v6784_v6, %v5585_v23 }
 0x555   : > { %v6713_v46 = vpop.f32.mrf.mxu0  ;;  %v10212_v5 = vpop.f32.mrf.mxu1 }
 0x556   : > { %v10214_v54 = vadd.f32 %v6713_v46, %v6712_v32 }
 0x557   : > { %v6715_v39 = vpop.f32.mrf.mxu0  ;;  %v10216_v25 = vpop.f32.mrf.mxu1 }
 0x559   : > { %v6716_v49 = vpop.f32.mrf.mxu0  ;;  %v10218_v48 = vpop.f32.mrf.mxu1 }
 0x55a   : > { %v10220_v0 = vadd.f32 %v6716_v49, %v6715_v39 }
 0x55b   : > { %v6718_v59 = vpop.f32.mrf.mxu0  ;;  %v10222_v56 = vpop.f32.mrf.mxu1 }
 0x55d   : > { %v6719_v33 = vpop.f32.mrf.mxu0  ;;  %v10224_v26 = vpop.f32.mrf.mxu1 }
 0x55e   : > { %v10226_v63 = vadd.f32 %v6719_v33, %v6718_v59 }
 0x55f   : > { %v6721_v18 = vpop.f32.mrf.mxu0  ;;  %v10228_v52 = vpop.f32.mrf.mxu1 }
 0x561   : > { %v6722_v41 = vpop.f32.mrf.mxu0  ;;  %v10230_v28 = vpop.f32.mrf.mxu1 }
 0x562   : > { %v10232_v40 = vadd.f32 %v6722_v41, %v6721_v18 }
 0x563   : > { %v6724_v20 = vpop.f32.mrf.mxu0  ;;  %v10234_v50 = vpop.f32.mrf.mxu1 }
 0x565   : > { %v6725_v58 = vpop.f32.mrf.mxu0  ;;  %v10236_v11 = vpop.f32.mrf.mxu1 }
 0x566   : > { %v10238_v22 = vadd.f32 %v6725_v58, %v6724_v20 }
 0x567   : > { %v6727_v12 = vpop.f32.mrf.mxu0  ;;  %v10240_v55 = vpop.f32.mrf.mxu1 }
 0x569   : > { %v6728_v15 = vpop.f32.mrf.mxu0  ;;  %v10242_v42 = vpop.f32.mrf.mxu1 }
 0x56a   : > { %v10244_v36 = vadd.f32 %v6728_v15, %v6727_v12 }
 0x56b   : > { %v6730_v62 = vpop.f32.mrf.mxu0  ;;  %v10246_v27 = vpop.f32.mrf.mxu1 }
 0x56d   : > { %v6731_v44 = vpop.f32.mrf.mxu0  ;;  %v10248_v35 = vpop.f32.mrf.mxu1 }
 0x56e   : > { %v10250_v16 = vadd.f32 %v6731_v44, %v6730_v62 }
 0x56f   : > { %v6733_v51 = vpop.f32.mrf.mxu0  ;;  %v10252_v4 = vpop.f32.mrf.mxu1 }
 0x571   : > { %v6734_v38 = vpop.f32.mrf.mxu0  ;;  %v10254_v17 = vpop.f32.mrf.mxu1 }
 0x572   : > { %v10256_v47 = vadd.f32 %v6734_v38, %v6733_v51 }
 0x573   : > { %v6736_v29 = vpop.f32.mrf.mxu0  ;;  %v10258_v31 = vpop.f32.mrf.mxu1 }
 0x575   : > { %v6737_v1 = vpop.f32.mrf.mxu0  ;;  %v10260_v2 = vpop.f32.mrf.mxu1 }
 0x576   : > { %v10262_v53 = vadd.f32 %v6737_v1, %v6736_v29 }
 0x577   : > { %v6739_v9 = vpop.f32.mrf.mxu0  ;;  %v10264_v23 = vpop.f32.mrf.mxu1 }
 0x579   : > { %v6740_v6 = vpop.f32.mrf.mxu0  ;;  %v10266_v32 = vpop.f32.mrf.mxu1 }
 0x57a   : > { %v10268_v46 = vadd.f32 %v6740_v6, %v6739_v9 }
 0x57b   : > { %v6742_v39 = vpop.f32.mrf.mxu0  ;;  %v10270_v49 = vpop.f32.mrf.mxu1 }
 0x57d   : > { %v6743_v59 = vpop.f32.mrf.mxu0  ;;  %v10272_v33 = vpop.f32.mrf.mxu1 }
 0x57e   : > { %v10274_v18 = vadd.f32 %v6743_v59, %v6742_v39 }
 0x57f   : > { %v6745_v41 = vpop.f32.mrf.mxu0  ;;  %v10276_v20 = vpop.f32.mrf.mxu1 }
 0x580   : > { %10892 = vst [vmem:[#allocation10_spill] sm:$0xff] %v10276_v20 }
 0x581   : > { %v6746_v58 = vpop.f32.mrf.mxu0  ;;  %v10278_v12 = vpop.f32.mrf.mxu1 }
 0x582   : > { %10893 = vst [vmem:[#allocation3_spill] sm:$0xff] %v10278_v12  ;;  %v10280_v15 = vadd.f32 %v6746_v58, %v6745_v41 }
 0x583   : > { %v6748_v62 = vpop.f32.mrf.mxu0  ;;  %v10282_v44 = vpop.f32.mrf.mxu1 }
 0x584   : > { %10894 = vst [vmem:[#allocation5_spill] sm:$0xff] %v10280_v15  ;;  %10895 = vst [vmem:[#allocation4_spill] sm:$0xff] %v10282_v44 }
 0x585   : > { %v6749_v51 = vpop.f32.mrf.mxu0  ;;  %v10284_v38 = vpop.f32.mrf.mxu1 }
 0x586   : > { %10896 = vst [vmem:[#allocation6_spill] sm:$0xff] %v10284_v38  ;;  %v10286_v29 = vadd.f32 %v6749_v51, %v6748_v62 }
 0x587   : > { %v6751_v1 = vpop.f32.mrf.mxu0  ;;  %v10288_v9 = vpop.f32.mrf.mxu1 }
 0x588   : > { %10897 = vst [vmem:[#allocation7_spill] sm:$0xff] %v10286_v29 }
 0x589   : > { %v6752_v6 = vpop.f32.mrf.mxu0  ;;  %v10290_v39 = vpop.f32.mrf.mxu1 }
 0x58a   : > { %v10292_v59 = vadd.f32 %v6752_v6, %v6751_v1  ;;  %v6030_v1 = vlaneseq  ;;  %v6787_v6 = vadd.f32 %v10212_v5, %v10208_v60  ;;  %v5601_v60 = vadd.f32 %v10179_v30, %v10198_v24 }
 0x58b   : > { %v6754_v20 = vpop.f32.mrf.mxu0  ;;  %v10294_v12 = vpop.f32.mrf.mxu1  ;;  %v5606_v5 = vadd.f32 %v10181_v61, %v10198_v24  ;;  %v5622_v61 = vadd.f32 %v10189_v3, %v10198_v24  ;;  %v6796_v3 = vadd.f32 %v10230_v28, %v10228_v52  ;;  %v10383_v52 = vadd.f32 %v10226_v63, %v10198_v24 }
 0x58c   : > { %10898 = vst [vmem:[#allocation8_spill] sm:$0xff] %v10292_v59  ;;  %10899 = vst [vmem:[#allocation2_spill] sm:$0xff] %v10294_v12  ;;  %v6802_v28 = vadd.f32 %v10242_v42, %v10240_v55  ;;  %v10398_v63 = vadd.f32 %v10238_v22, %v10198_v24  ;;  %v6805_v55 = vadd.f32 %v10248_v35, %v10246_v27 }
 0x58d   : > { %v6755_v41 = vpop.f32.mrf.mxu0  ;;  %v10296_v58 = vpop.f32.mrf.mxu1  ;;  %v6811_v22 = vadd.f32 %v10260_v2, %v10258_v31 }
 0x58e   : > { %v6756_v15 = vadd.f32 %v6755_v41, %v6754_v20  ;;  %v5590_v20 = vadd.f32 %v10173_v43, %v10198_v24  ;;  %v5593_v41 = vadd.f32 %v10175_v45, %v10198_v24  ;;  %v6790_v43 = vadd.f32 %v10218_v48, %v10216_v25 }
 0x58f   : > { %v10298_v44 = vpop.f32.mrf.mxu0  ;;  %v10300_v38 = vpop.f32.mrf.mxu1  ;;  %v5609_v45 = vadd.f32 %v10183_v19, %v10198_v24  ;;  %v10347_v25 = vadd.f32 %v10191_v8, %v10198_v24  ;;  %v10351_v19 = vadd.f32 %v10193_v57, %v10198_v24  ;;  %v10361_v48 = vadd.f32 %v10206_v21, %v10198_v24 }
 0x590   : > { %10900 = vst [vmem:[#allocation9_spill] sm:$0xff] %v10300_v38  ;;  %v10303_v62 = vadd.f32 %v6756_v15, %v10198_v24  ;;  %v5598_v15 = vadd.f32 %v10177_v10, %v10198_v24  ;;  %v10325_v38 = vand.u32 127, %v6030_v1  ;;  %v5614_v10 = vadd.f32 %v10185_v14, %v10198_v24 }
 0x591   : > { %v10305_v51 = vpop.f32.mrf.mxu0  ;;  %v10307_v29 = vpop.f32.mrf.mxu1  ;;  %v5617_v1 = vadd.f32 %v10187_v34, %v10198_v24  ;;  %v10357_v34 = vadd.f32 %v10201_v7, %v10198_v24  ;;  %v6799_v8 = vadd.f32 %v10236_v11, %v10234_v50  ;;  %v5754_v21 = vadd.f32 %v6790_v43, %v5593_v41 }
 0x592   : > { %10901 = vst [vmem:[#allocation11_spill] sm:$0xff] %v10303_v62  ;;  %10902 = vst [vmem:[#allocation12_spill] sm:$0xff] %v10307_v29 }
 0x593   : > { %v10311_v59 = vpop.f32.mrf.mxu0  ;;  %v10313_v12 = vpop.f32.mrf.mxu1  ;;  %10905 = vst [vmem:[#allocation15_spill] sm:$0xff] %v10325_v38  ;;  %v6793_v38 = vadd.f32 %v10224_v26, %v10222_v56  ;;  %v10371_v26 = vadd.f32 %v10214_v54, %v10198_v24 }
 0x594   : > { %10903 = vst [vmem:[#allocation13_spill] sm:$0xff] %v10313_v12  ;;  %v5751_v12 = vadd.f32 %v6787_v6, %v5590_v20 }
 0x595   : > { %v10321_v62 = vpop.f32.mrf.mxu0  ;;  %v10323_v29 = vpop.f32.mrf.mxu1  ;;  %v5759_v11 = vadd.f32 %v6793_v38, %v5598_v15  ;;  %v5767_v38 = vadd.f32 %v6799_v8, %v5606_v5  ;;  %v5762_v15 = vadd.f32 %v6796_v3, %v5601_v60  ;;  %v5770_v5 = vadd.f32 %v6802_v28, %v5609_v45 }
 0x596   : > { %10904 = vst [vmem:[#allocation14_spill] sm:$0xff] %v10323_v29  ;;  %v5775_v8 = vadd.f32 %v6805_v55, %v5614_v10  ;;  %v10448_v10 = vadd.f32 %v10268_v46, %v10198_v24  ;;  %v10908_v46 = vld [vmem:[#allocation4_spill] sm:$0xff] }
 0x597   : > { %v10341_v30 = vpop.f32.mrf.mxu1  ;;  %v6997_v29 = vpop.f32.mrf.mxu0 }
 0x598   : > { %v10353_v14 = vadd.f32 %v6997_v29, %v5751_v12  ;;  %v10379_v29 = vadd.f32 %v10220_v0, %v10198_v24 }
 0x599   : > { %v10367_v56 = vpop.f32.mrf.mxu1  ;;  %v5903_v57 = vpop.f32.mrf.mxu0 }
 0x59a   : > { %v6035_v7 = vsub.f32 0.0, %v10353_v14  ;;  %v10375_v12 = vadd.f32 %v5903_v57, %v10203_v37  ;;  %v10391_v37 = vadd.f32 %v10232_v40, %v10198_v24  ;;  %v6808_v40 = vadd.f32 %v10254_v17, %v10252_v4 }
 0x59b   : > { %v10387_v50 = vpop.f32.mrf.mxu1  ;;  %v6998_v54 = vpop.f32.mrf.mxu0  ;;  %v10420_v4 = vadd.f32 %v10250_v16, %v10198_v24 }
 0x59c   : > { %v6069_v6 = vmul.f32 1.442695, %v6035_v7  ;;  %v6033_v20 = vsub.f32 0.0, %v10375_v12  ;;  %v10394_v0 = vadd.f32 %v6998_v54, %v5754_v21  ;;  %v10409_v7 = vadd.f32 %v10244_v36, %v10198_v24 }
 0x59d   : > { %v10402_v42 = vpop.f32.mrf.mxu1  ;;  %v5906_v41 = vpop.f32.mrf.mxu0  ;;  %v10426_v36 = vadd.f32 %v10256_v47, %v10198_v24  ;;  %v10436_v28 = vadd.f32 %v6808_v40, %v5617_v1  ;;  %v10440_v47 = vadd.f32 %v10262_v53, %v10198_v24  ;;  %v10455_v53 = vadd.f32 %v10274_v18, %v10198_v24 }
 0x59e   : > { %7175 = vpow2.f32 %v6069_v6  ;;  %v6065_v43 = vmul.f32 1.442695, %v6033_v20  ;;  %v6036_v57 = vsub.f32 0.0, %v10394_v0  ;;  %v10414_v27 = vadd.f32 %v5906_v41, %v10210_v13  ;;  %v10906_v41 = vld [vmem:[#allocation10_spill] sm:$0xff] }
 0x59f   : > { %v10416_v35 = vpop.f32.mrf.mxu1  ;;  %v7001_v60 = vpop.f32.mrf.mxu0  ;;  %v6814_v13 = vadd.f32 %v10266_v32, %v10264_v23  ;;  %v6817_v23 = vadd.f32 %v10272_v33, %v10270_v49  ;;  %v5783_v20 = vadd.f32 %v6811_v22, %v5622_v61  ;;  %v10907_v49 = vld [vmem:[#allocation3_spill] sm:$0xff]  ;;  %v6826_v18 = vadd.f32 %v10290_v39, %v10288_v9 }
 0x5a0   : > { %7177 = vpow2.f32 %v6065_v43  ;;  %v6071_v17 = vmul.f32 1.442695, %v6036_v57  ;;  %v10422_v3 = vadd.f32 %v7001_v60, %v5767_v38  ;;  %v6034_v31 = vsub.f32 0.0, %v10414_v27  ;;  %v10909_v43 = vld [vmem:[#allocation6_spill] sm:$0xff]  ;;  %v10912_v9 = vld [vmem:[#allocation7_spill] sm:$0xff] }
 0x5a1   : > { %v10431_v2 = vpop.f32.mrf.mxu1  ;;  %v5919_v45 = vpop.f32.mrf.mxu0  ;;  %v6820_v33 = vadd.f32 %v10907_v49, %v10906_v41  ;;  %v5786_v40 = vadd.f32 %v6814_v13, %v10347_v25  ;;  %v6823_v57 = vadd.f32 %v10909_v43, %v10908_v46  ;;  %v5791_v25 = vadd.f32 %v6817_v23, %v10351_v19  ;;  %v10911_v13 = vld [vmem:[#allocation5_spill] sm:$0xff]  ;;  %v10913_v46 = vld [vmem:[#allocation8_spill] sm:$0xff] }
 0x5a2   : > { %7179 = vpow2.f32 %v6071_v17  ;;  %v6039_v16 = vsub.f32 0.0, %v10422_v3  ;;  %v10434_v21 = vadd.f32 %v5919_v45, %v5759_v11  ;;  %v6067_v32 = vmul.f32 1.442695, %v6034_v31 }
 0x5a3   : > { %v10444_v54 = vpop.f32.mrf.mxu1  ;;  %v7002_v6 = vpop.f32.mrf.mxu0  ;;  %v10482_v39 = vadd.f32 %v10912_v9, %v10198_v24  ;;  %v10490_v23 = vadd.f32 %v6820_v33, %v10357_v34  ;;  %v5799_v49 = vadd.f32 %v6823_v57, %v10361_v48  ;;  %v10498_v43 = vadd.f32 %v10913_v46, %v10198_v24 }
 0x5a4   : > { %v6077_v11 = vmul.f32 1.442695, %v6039_v16  ;;  %v6037_v1 = vsub.f32 0.0, %v10434_v21  ;;  %v10451_v55 = vadd.f32 %v7002_v6, %v5770_v5  ;;  %7181 = vpow2.f32 %v6067_v32  ;;  %v10910_v5 = vld [vmem:[#allocation2_spill] sm:$0xff] }
 0x5a5   : > { %v10459_v38 = vpop.f32.mrf.mxu1  ;;  %v5922_v61 = vpop.f32.mrf.mxu0  ;;  %v6829_v17 = vadd.f32 %v10296_v58, %v10910_v5  ;;  %v10476_v32 = vadd.f32 %v10911_v13, %v10198_v24  ;;  %v6759_v58 = vadd.f32 %v10305_v51, %v10298_v44  ;;  %v10914_v13 = vld [vmem:[#allocation9_spill] sm:$0xff]  ;;  %v6838_v46 = vadd.f32 %v10367_v56, %v10341_v30 }
 0x5a6   : > { %7183 = vpow2.f32 %v6077_v11  ;;  %v6073_v22 = vmul.f32 1.442695, %v6037_v1  ;;  %v6040_v60 = vsub.f32 0.0, %v10451_v55  ;;  %v10469_v31 = vadd.f32 %v5922_v61, %v5762_v15 }
 0x5a7   : > { %v10471_v45 = vpop.f32.mrf.mxu1  ;;  %v7005_v16 = vpop.f32.mrf.mxu0  ;;  %v10504_v34 = vadd.f32 %v6829_v17, %v10379_v29  ;;  %v10510_v57 = vadd.f32 %v6759_v58, %v10198_v24 }
 0x5a8   : > { %7185 = vpow2.f32 %v6073_v22  ;;  %v6079_v6 = vmul.f32 1.442695, %v6040_v60  ;;  %v10478_v11 = vadd.f32 %v7005_v16, %v5783_v20  ;;  %v6038_v15 = vsub.f32 0.0, %v10469_v31 }
 0x5a9   : > { %v10487_v1 = vpop.f32.mrf.mxu1  ;;  %v5935_v19 = vpop.f32.mrf.mxu0  ;;  %v5802_v60 = vadd.f32 %v6826_v18, %v10371_v26 }
 0x5aa   : > { %7187 = vpow2.f32 %v6079_v6  ;;  %v6043_v41 = vsub.f32 0.0, %v10478_v11  ;;  %v10493_v20 = vadd.f32 %v5935_v19, %v5775_v8  ;;  %v6075_v44 = vmul.f32 1.442695, %v6038_v15  ;;  %v10915_v6 = vld [vmem:[#allocation12_spill] sm:$0xff] }
 0x5ab   : > { %v7176_v61 = vpop.eup %7175  ;;  %v10500_v51 = vpop.f32.mrf.mxu1  ;;  %v6832_v9 = vadd.f32 %v10915_v6, %v10914_v13  ;;  %v6762_v15 = vadd.f32 %v10321_v62, %v10311_v59  ;;  %v6841_v13 = vadd.f32 %v10402_v42, %v10387_v50 }
 0x5ac   : > { %v7006_v22 = vpop.f32.mrf.mxu0  ;;  %v6131_v33 = vadd.f32 1.0, %v7176_v61  ;;  %v6085_v5 = vmul.f32 1.442695, %v6043_v41  ;;  %v6041_v8 = vsub.f32 0.0, %v10493_v20  ;;  %7189 = vpow2.f32 %v6075_v44  ;;  %v10916_v41 = vld [vmem:[#allocation13_spill] sm:$0xff]  ;;  %v10917_v61 = vld [vmem:[#allocation14_spill] sm:$0xff] }
 0x5ad   : > { %v10507_v16 = vadd.f32 %v7006_v22, %v5786_v40  ;;  %v7178_v48 = vpop.eup %7177  ;;  %v10516_v26 = vpop.f32.mrf.mxu1  ;;  %v6835_v58 = vadd.f32 %v10917_v61, %v10916_v41  ;;  %v5818_v41 = vadd.f32 %v6838_v46, %v10398_v63  ;;  %v6850_v46 = vadd.f32 %v10487_v1, %v10471_v45 }
 0x5ae   : > { %v5938_v29 = vpop.f32.mrf.mxu0  ;;  %7191 = vrcp.f32 %v6131_v33  ;;  %v6129_v18 = vadd.f32 1.0, %v7178_v48  ;;  %v6081_v17 = vmul.f32 1.442695, %v6041_v8  ;;  %v10918_v48 = vld [vmem:[#allocation15_spill] sm:$0xff] }
 0x5af   : > { %v6044_v40 = vsub.f32 0.0, %v10507_v16  ;;  %v7180_v19 = vpop.eup %7179  ;;  %7193 = vpow2.f32 %v6085_v5  ;;  %v10524_v22 = vadd.f32 %v5938_v29, %v10436_v28  ;;  %v10526_v59 = vpop.f32.mrf.mxu1  ;;  %vm6032_vm5 = vcmp.lt.s32.totalorder %v10918_v48, 2 }
 0x5b0   : > { %v7009_v62 = vpop.f32.mrf.mxu0  ;;  %7195 = vrcp.f32 %v6129_v18  ;;  %v6132_v44 = vadd.f32 1.0, %v7180_v19  ;;  %v10537_v5 = vadd.f32 %v6832_v9, %v10383_v52  ;;  %v10540_v29 = vadd.f32 %v6762_v15, %v10198_v24 }
 0x5b1   : > { %v6087_v33 = vmul.f32 1.442695, %v6044_v40  ;;  %v10528_v8 = vadd.f32 %v7009_v62, %v5799_v49  ;;  %7197 = vpow2.f32 %v6081_v17  ;;  %v6042_v30 = vsub.f32 0.0, %v10524_v22  ;;  %v10534_v56 = vpop.f32.mrf.mxu1  ;;  %v7182_v6 = vpop.eup %7181 }
 0x5b2   : > { %v5951_v28 = vpop.f32.mrf.mxu0  ;;  %7199 = vrcp.f32 %v6132_v44  ;;  %v6130_v42 = vadd.f32 1.0, %v7182_v6  ;;  %v5815_v52 = vadd.f32 %v6835_v58, %v10391_v37 }
 0x5b3   : > { %v6047_v49 = vsub.f32 0.0, %v10528_v8  ;;  %v10543_v18 = vadd.f32 %v5951_v28, %v5791_v25  ;;  %v7184_v50 = vpop.eup %7183  ;;  %7201 = vpow2.f32 %v6087_v33  ;;  %v6083_v17 = vmul.f32 1.442695, %v6042_v30  ;;  %v10545_v40 = vpop.f32.mrf.mxu1 }
 0x5b4   : > { %v7010_v19 = vpop.f32.mrf.mxu0  ;;  %v6135_v9 = vadd.f32 1.0, %v7184_v50  ;;  %7203 = vrcp.f32 %v6130_v42  ;;  %v6844_v25 = vadd.f32 %v10431_v2, %v10416_v35  ;;  %v10557_v30 = vadd.f32 %v6841_v13, %v10409_v7 }
 0x5b5   : > { %v6045_v24 = vsub.f32 0.0, %v10543_v18  ;;  %v10549_v15 = vadd.f32 %v7010_v19, %v5802_v60  ;;  %v7186_v61 = vpop.eup %7185  ;;  %v6093_v62 = vmul.f32 1.442695, %v6047_v49  ;;  %v10554_v44 = vpop.f32.mrf.mxu1  ;;  %v6847_v60 = vadd.f32 %v10459_v38, %v10444_v54 }
 0x5b6   : > { %v5954_v33 = vpop.f32.mrf.mxu0  ;;  %7205 = vrcp.f32 %v6135_v9  ;;  %v6133_v37 = vadd.f32 1.0, %v7186_v61  ;;  %v6853_v54 = vadd.f32 %v10516_v26, %v10500_v51  ;;  %v10576_v50 = vadd.f32 %v6844_v25, %v10420_v4 }
 0x5b7   : > { %v6048_v58 = vsub.f32 0.0, %v10549_v15  ;;  %v7188_v63 = vpop.eup %7187  ;;  %7207 = vpow2.f32 %v6083_v17  ;;  %v6089_v35 = vmul.f32 1.442695, %v6045_v24  ;;  %v10566_v2 = vadd.f32 %v5954_v33, %v10490_v23  ;;  %v10568_v28 = vpop.f32.mrf.mxu1 }
 0x5b8   : > { %v7013_v7 = vpop.f32.mrf.mxu0  ;;  %7209 = vrcp.f32 %v6133_v37  ;;  %v6136_v13 = vadd.f32 1.0, %v7188_v63  ;;  %v5831_v26 = vadd.f32 %v6847_v60, %v10426_v36  ;;  %v5834_v24 = vadd.f32 %v6850_v46, %v10440_v47 }
 0x5b9   : > { %v6095_v6 = vmul.f32 1.442695, %v6048_v58  ;;  %v10570_v49 = vadd.f32 %v7013_v7, %v5815_v52  ;;  %7211 = vpow2.f32 %v6093_v62  ;;  %v6046_v38 = vsub.f32 0.0, %v10566_v2  ;;  %v6861_v45 = vpop.f32.mrf.mxu1  ;;  %v7190_v23 = vpop.eup %7189 }
 0x5ba   : > { %v5967_v1 = vpop.f32.mrf.mxu0  ;;  %7213 = vrcp.f32 %v6136_v13  ;;  %v6134_v19 = vadd.f32 1.0, %v7190_v23  ;;  %v10602_v58 = vadd.f32 %v6853_v54, %v10448_v10  ;;  %v6856_v46 = vadd.f32 %v10534_v56, %v10526_v59 }
 0x5bb   : > { %v6051_v42 = vsub.f32 0.0, %v10570_v49  ;;  %v10585_v51 = vadd.f32 %v5967_v1, %v10504_v34  ;;  %v7192_v17 = vpop.eup %7191  ;;  %7215 = vpow2.f32 %v6089_v35  ;;  %v6091_v4 = vmul.f32 1.442695, %v6046_v38  ;;  %v10588_v52 = vpop.f32.mrf.mxu1 }
 0x5bc   : > { %v7014_v9 = vpop.f32.mrf.mxu0  ;;  %v7194_v61 = vpop.eup %7193  ;;  %v6227_v25 = vsel %vm6032_vm5, %v10353_v14, %v7192_v17  ;;  %7217 = vpow2.f32 %v6095_v6  ;;  %v6859_v56 = vadd.f32 %v10554_v44, %v10545_v40 }
 0x5bd   : > { %v6101_v62 = vmul.f32 1.442695, %v6051_v42  ;;  %v6049_v34 = vsub.f32 0.0, %v10585_v51  ;;  %v7196_v36 = vpop.eup %7195  ;;  %6260 = vst.msk [vmem:[%s10581_s18 + $0x10] sm:$0xff] %vm6257_vm6, %v6227_v25  ;;  %7219 = vrcp.f32 %v6134_v19  ;;  %v6139_v33 = vadd.f32 1.0, %v7194_v61  ;;  %v10599_v60 = vpop.f32.mrf.mxu1 }
 0x5be   : > { %v10597_v37 = vadd.f32 %v7014_v9, %v5818_v41  ;;  %v5970_v47 = vpop.f32.mrf.mxu0  ;;  %v7198_v63 = vpop.eup %7197  ;;  %v6225_v14 = vsel %vm6032_vm5, %v10375_v12, %v7196_v36  ;;  %7221 = vpow2.f32 %v6091_v4  ;;  %v6862_v4 = vadd.f32 %v6861_v45, %v10568_v28 }
 0x5bf   : > { %v6097_v35 = vmul.f32 1.442695, %v6049_v34  ;;  %v7200_v7 = vpop.eup %7199  ;;  %6258 = vst.msk [vmem:[%s10581_s18] sm:$0xff] %vm6257_vm6, %v6225_v14  ;;  %7223 = vrcp.f32 %v6139_v33  ;;  %v6137_v41 = vadd.f32 1.0, %v7198_v63  ;;  %v10613_v10 = vadd.f32 %v5970_v47, %v10537_v5  ;;  %v10615_v6 = vpop.f32.mrf.mxu1 }
 0x5c0   : > { %v6052_v13 = vsub.f32 0.0, %v10597_v37  ;;  %v7017_v54 = vpop.f32.mrf.mxu0  ;;  %v7202_v12 = vpop.eup %7201  ;;  %v6228_v59 = vsel %vm6032_vm5, %v10394_v0, %v7200_v7  ;;  %7225 = vpow2.f32 %v6101_v62  ;;  %v10636_v62 = vadd.f32 %v6856_v46, %v10455_v53 }
 0x5c1   : > { %v10622_v38 = vadd.f32 %v7017_v54, %v5831_v26  ;;  %6261 = vst.msk [vmem:[%s10581_s18 + $0x18] sm:$0xff] %vm6257_vm6, %v6228_v59  ;;  %7227 = vrcp.f32 %v6137_v41  ;;  %v6140_v1 = vadd.f32 1.0, %v7202_v12  ;;  %v6050_v23 = vsub.f32 0.0, %v10613_v10  ;;  %v6867_v42 = vpop.f32.mrf.mxu1  ;;  %v7204_v19 = vpop.eup %7203 }
 0x5c2   : > { %v6103_v5 = vmul.f32 1.442695, %v6052_v13  ;;  %v5983_v17 = vpop.f32.mrf.mxu0  ;;  %7229 = vpow2.f32 %v6097_v35  ;;  %v6226_v26 = vsel %vm6032_vm5, %v10414_v27, %v7204_v19  ;;  %v5847_v63 = vadd.f32 %v6859_v56, %v10476_v32 }
 0x5c3   : > { %v6055_v0 = vsub.f32 0.0, %v10622_v38  ;;  %v10630_v40 = vadd.f32 %v5983_v17, %v10557_v30  ;;  %v7206_v44 = vpop.eup %7205  ;;  %7231 = vrcp.f32 %v6140_v1  ;;  %v6099_v9 = vmul.f32 1.442695, %v6050_v23  ;;  %v6869_v61 = vpop.f32.mrf.mxu1  ;;  %6259 = vst.msk [vmem:[%s10581_s18 + $0x8] sm:$0xff] %vm6257_vm6, %v6226_v26 }
 0x5c4   : > { %v7018_v25 = vpop.f32.mrf.mxu0  ;;  %v7208_v28 = vpop.eup %7207  ;;  %v6231_v30 = vsel %vm6032_vm5, %v10422_v3, %v7206_v44  ;;  %7233 = vpow2.f32 %v6103_v5  ;;  %v5850_v35 = vadd.f32 %v6862_v4, %v10482_v39  ;;  %v6865_v4 = vadd.f32 %v10599_v60, %v10588_v52 }
 0x5c5   : > { %v6109_v45 = vmul.f32 1.442695, %v6055_v0  ;;  %v6053_v34 = vsub.f32 0.0, %v10630_v40  ;;  %v7210_v27 = vpop.eup %7209  ;;  %6264 = vst.msk [vmem:[%s10581_s18 + $0x30] sm:$0xff] %vm6257_vm6, %v6231_v30  ;;  %v6138_v36 = vadd.f32 1.0, %v7208_v28  ;;  %7235 = vpow2.f32 %v6099_v9  ;;  %v6870_v53 = vpop.f32.mrf.mxu1 }
 0x5c6   : > { %v10646_v33 = vadd.f32 %v7018_v25, %v5834_v24  ;;  %v5986_v47 = vpop.f32.mrf.mxu0  ;;  %v7212_v14 = vpop.eup %7211  ;;  %v6229_v3 = vsel %vm6032_vm5, %v10434_v21, %v7210_v27  ;;  %v6871_v59 = vadd.f32 %v6870_v53, %v6869_v61  ;;  %v6868_v9 = vadd.f32 %v6867_v42, %v10615_v6 }
 0x5c7   : > { %7237 = vpow2.f32 %v6109_v45  ;;  %v6105_v46 = vmul.f32 1.442695, %v6053_v34  ;;  %v7214_v7 = vpop.eup %7213  ;;  %6262 = vst.msk [vmem:[%s10581_s18 + $0x20] sm:$0xff] %vm6257_vm6, %v6229_v3  ;;  %v6143_v24 = vadd.f32 1.0, %v7212_v14  ;;  %v10657_v13 = vadd.f32 %v5986_v47, %v10576_v50  ;;  %v6872_v32 = vpop.f32.mrf.mxu1 }
 0x5c8   : > { %7239 = vrcp.f32 %v6138_v36  ;;  %v6056_v41 = vsub.f32 0.0, %v10646_v33  ;;  %v7021_v54 = vpop.f32.mrf.mxu0  ;;  %v7216_v12 = vpop.eup %7215  ;;  %v6232_v21 = vsel %vm6032_vm5, %v10451_v55, %v7214_v7 }
 0x5c9   : > { %7241 = vpow2.f32 %v6105_v46  ;;  %v10662_v39 = vadd.f32 %v7021_v54, %v5847_v63  ;;  %v7218_v56 = vpop.eup %7217  ;;  %6265 = vst.msk [vmem:[%s10581_s18 + $0x38] sm:$0xff] %vm6257_vm6, %v6232_v21  ;;  %v6141_v1 = vadd.f32 1.0, %v7216_v12  ;;  %v6054_v50 = vsub.f32 0.0, %v10657_v13  ;;  %v6873_v25 = vpop.f32.mrf.mxu1  ;;  %v10919_v54 = vld [vmem:[#allocation11_spill] sm:$0xff] }
 0x5ca   : > { %7243 = vrcp.f32 %v6143_v24  ;;  %v6111_v5 = vmul.f32 1.442695, %v6056_v41  ;;  %v5999_v23 = vpop.f32.mrf.mxu0  ;;  %v7220_v17 = vpop.eup %7219  ;;  %v6144_v19 = vadd.f32 1.0, %v7218_v56  ;;  %v6874_v53 = vadd.f32 %v6873_v25, %v6872_v32 }
 0x5cb   : > { %v6059_v55 = vsub.f32 0.0, %v10662_v39  ;;  %v10671_v0 = vadd.f32 %v5999_v23, %v10602_v58  ;;  %v7222_v44 = vpop.eup %7221  ;;  %v6230_v26 = vsel %vm6032_vm5, %v10469_v31, %v7220_v17  ;;  %7245 = vrcp.f32 %v6141_v1 }
 0x5cc   : > { %v6107_v61 = vmul.f32 1.442695, %v6054_v50  ;;  %v7022_v28 = vpop.f32.mrf.mxu0  ;;  %v7224_v30 = vpop.eup %7223  ;;  %6263 = vst.msk [vmem:[%s10581_s18 + $0x28] sm:$0xff] %vm6257_vm6, %v6230_v26  ;;  %7247 = vrcp.f32 %v6144_v19  ;;  %v6142_v52 = vadd.f32 1.0, %v7222_v44  ;;  %v5863_v58 = vadd.f32 %v6871_v59, %v10510_v57 }
 0x5cd   : > { %v6057_v60 = vsub.f32 0.0, %v10671_v0  ;;  %v7226_v45 = vpop.eup %7225  ;;  %v6235_v31 = vsel %vm6032_vm5, %v10478_v11, %v7224_v30  ;;  %7249 = vpow2.f32 %v6111_v5  ;;  %v6117_v6 = vmul.f32 1.442695, %v6059_v55 }
 0x5ce   : > { %v10684_v42 = vadd.f32 %v7022_v28, %v5850_v35  ;;  %v6002_v34 = vpop.f32.mrf.mxu0  ;;  %v7228_v27 = vpop.eup %7227  ;;  %6268 = vst.msk [vmem:[%s10581_s18 + $0x50] sm:$0xff] %vm6257_vm6, %v6235_v31  ;;  %7251 = vrcp.f32 %v6142_v52  ;;  %v6147_v36 = vadd.f32 1.0, %v7226_v45  ;;  %v5855_v41 = vadd.f32 %v6865_v4, %v10498_v43 }
 0x5cf   : > { %v10689_v47 = vadd.f32 %v6002_v34, %v10636_v62  ;;  %v7230_v57 = vpop.eup %7229  ;;  %v6233_v11 = vsel %vm6032_vm5, %v10493_v20, %v7228_v27  ;;  %7253 = vpow2.f32 %v6107_v61  ;;  %v6113_v63 = vmul.f32 1.442695, %v6057_v60 }
 0x5d0   : > { %v6060_v14 = vsub.f32 0.0, %v10684_v42  ;;  %v7025_v3 = vpop.f32.mrf.mxu0  ;;  %v7232_v46 = vpop.eup %7231  ;;  %6266 = vst.msk [vmem:[%s10581_s18 + $0x40] sm:$0xff] %vm6257_vm6, %v6233_v11  ;;  %7255 = vrcp.f32 %v6147_v36  ;;  %v6145_v35 = vadd.f32 1.0, %v7230_v57  ;;  %v5858_v12 = vadd.f32 %v6868_v9, %v10919_v54 }
 0x5d1   : > { %v6058_v7 = vsub.f32 0.0, %v10689_v47  ;;  %v10698_v62 = vadd.f32 %v7025_v3, %v5863_v58  ;;  %v7234_v24 = vpop.eup %7233  ;;  %v6236_v20 = vsel %vm6032_vm5, %v10507_v16, %v7232_v46  ;;  %7257 = vpow2.f32 %v6117_v6 }
 0x5d2   : > { %v6015_v32 = vpop.f32.mrf.mxu0  ;;  %v7236_v21 = vpop.eup %7235  ;;  %6269 = vst.msk [vmem:[%s10581_s18 + $0x58] sm:$0xff] %vm6257_vm6, %v6236_v20  ;;  %7259 = vrcp.f32 %v6145_v35  ;;  %v6148_v59 = vadd.f32 1.0, %v7234_v24  ;;  %v5866_v1 = vadd.f32 %v6874_v53, %v10540_v29  ;;  %v6119_v16 = vmul.f32 1.442695, %v6060_v14 }
 0x5d3   : > { %v6063_v56 = vsub.f32 0.0, %v10698_v62  ;;  %v6146_v50 = vadd.f32 1.0, %v7236_v21  ;;  %7261 = vpow2.f32 %v6113_v63  ;;  %v10709_v23 = vadd.f32 %v6015_v32, %v5855_v41 }
 0x5d4   : > { %v7238_v5 = vpop.eup %7237  ;;  %v7026_v43 = vpop.f32.mrf.mxu0  ;;  %7263 = vrcp.f32 %v6148_v59  ;;  %v6115_v4 = vmul.f32 1.442695, %v6058_v7 }
 0x5d5   : > { %v7240_v17 = vpop.eup %7239  ;;  %v6151_v19 = vadd.f32 1.0, %v7238_v5  ;;  %v10711_v55 = vadd.f32 %v7026_v43, %v5866_v1  ;;  %7265 = vrcp.f32 %v6146_v50  ;;  %v6125_v26 = vmul.f32 1.442695, %v6063_v56 }
 0x5d6   : > { %v7242_v44 = vpop.eup %7241  ;;  %v6234_v29 = vsel %vm6032_vm5, %v10524_v22, %v7240_v17  ;;  %v6061_v9 = vsub.f32 0.0, %v10709_v23  ;;  %v6018_v61 = vpop.f32.mrf.mxu0 }
 0x5d7   : > { %v7244_v25 = vpop.eup %7243  ;;  %6267 = vst.msk [vmem:[%s10581_s18 + $0x48] sm:$0xff] %vm6257_vm6, %v6234_v29  ;;  %7267 = vrcp.f32 %v6151_v19  ;;  %v6149_v28 = vadd.f32 1.0, %v7242_v44  ;;  %v6064_v30 = vsub.f32 0.0, %v10711_v55  ;;  %v10720_v52 = vadd.f32 %v6018_v61, %v5858_v12 }
 0x5d8   : > { %v6239_v60 = vsel %vm6032_vm5, %v10528_v8, %v7244_v25  ;;  %7269 = vpow2.f32 %v6119_v16  ;;  %v6121_v22 = vmul.f32 1.442695, %v6061_v9  ;;  %v7246_v58 = vpop.eup %7245 }
 0x5d9   : > { %6272 = vst.msk [vmem:[%s10581_s18 + $0x70] sm:$0xff] %vm6257_vm6, %v6239_v60  ;;  %7271 = vrcp.f32 %v6149_v28  ;;  %v6127_v45 = vmul.f32 1.442695, %v6064_v30  ;;  %v6062_v31 = vsub.f32 0.0, %v10720_v52  ;;  %v7248_v6 = vpop.eup %7247  ;;  %v6237_v34 = vsel %vm6032_vm5, %v10543_v18, %v7246_v58 }
 0x5da   : > { %7273 = vpow2.f32 %v6115_v4  ;;  %v7250_v27 = vpop.eup %7249  ;;  %6270 = vst.msk [vmem:[%s10581_s18 + $0x60] sm:$0xff] %vm6257_vm6, %v6237_v34  ;;  %v6240_v8 = vsel %vm6032_vm5, %v10549_v15, %v7248_v6 }
 0x5db   : > { %7275 = vpow2.f32 %v6125_v26  ;;  %v6123_v36 = vmul.f32 1.442695, %v6062_v31  ;;  %v7252_v53 = vpop.eup %7251  ;;  %6273 = vst.msk [vmem:[%s10581_s18 + $0x78] sm:$0xff] %vm6257_vm6, %v6240_v8  ;;  %v6152_v57 = vadd.f32 1.0, %v7250_v27 }
 0x5dc   : > { %7277 = vpow2.f32 %v6121_v22  ;;  %v7254_v11 = vpop.eup %7253  ;;  %v6238_v18 = vsel %vm6032_vm5, %v10566_v2, %v7252_v53 }
 0x5dd   : > { %7279 = vpow2.f32 %v6127_v45  ;;  %v7256_v63 = vpop.eup %7255  ;;  %6271 = vst.msk [vmem:[%s10581_s18 + $0x68] sm:$0xff] %vm6257_vm6, %v6238_v18  ;;  %v6150_v15 = vadd.f32 1.0, %v7254_v11 }
 0x5de   : > { %7281 = vrcp.f32 %v6152_v57  ;;  %v7258_v14 = vpop.eup %7257  ;;  %v6243_v3 = vsel %vm6032_vm5, %v10570_v49, %v7256_v63 }
 0x5df   : > { %7283 = vpow2.f32 %v6123_v36  ;;  %v7260_v46 = vpop.eup %7259  ;;  %6276 = vst.msk [vmem:[%s10581_s18 + $0x90] sm:$0xff] %vm6257_vm6, %v6243_v3  ;;  %v6155_v2 = vadd.f32 1.0, %v7258_v14 }
 0x5e0   : > { %7285 = vrcp.f32 %v6150_v15  ;;  %v7262_v35 = vpop.eup %7261  ;;  %v6241_v7 = vsel %vm6032_vm5, %v10585_v51, %v7260_v46 }
 0x5e1   : > { %v7264_v24 = vpop.eup %7263  ;;  %6274 = vst.msk [vmem:[%s10581_s18 + $0x80] sm:$0xff] %vm6257_vm6, %v6241_v7  ;;  %7287 = vrcp.f32 %v6155_v2  ;;  %v6153_v20 = vadd.f32 1.0, %v7262_v35 }
 0x5e2   : > { %v7266_v49 = vpop.eup %7265  ;;  %v6244_v41 = vsel %vm6032_vm5, %v10597_v37, %v7264_v24 }
 0x5e3   : > { %6277 = vst.msk [vmem:[%s10581_s18 + $0x98] sm:$0xff] %vm6257_vm6, %v6244_v41  ;;  %v6242_v54 = vsel %vm6032_vm5, %v10613_v10, %v7266_v49  ;;  %7289 = vrcp.f32 %v6153_v20 }
 0x5e4   : > { %v7268_v32 = vpop.eup %7267  ;;  %6275 = vst.msk [vmem:[%s10581_s18 + $0x88] sm:$0xff] %vm6257_vm6, %v6242_v54 }
 0x5e5   : > { %v7270_v51 = vpop.eup %7269  ;;  %v6247_v12 = vsel %vm6032_vm5, %v10622_v38, %v7268_v32 }
 0x5e6   : > { %v7272_v21 = vpop.eup %7271  ;;  %6280 = vst.msk [vmem:[%s10581_s18 + $0xb0] sm:$0xff] %vm6257_vm6, %v6247_v12  ;;  %v6156_v59 = vadd.f32 1.0, %v7270_v51 }
 0x5e7   : > { %v7274_v37 = vpop.eup %7273  ;;  %v6245_v56 = vsel %vm6032_vm5, %v10630_v40, %v7272_v21 }
 0x5e8   : > { %v7276_v1 = vpop.eup %7275  ;;  %6278 = vst.msk [vmem:[%s10581_s18 + $0xa0] sm:$0xff] %vm6257_vm6, %v6245_v56  ;;  %7291 = vrcp.f32 %v6156_v59  ;;  %v6154_v10 = vadd.f32 1.0, %v7274_v37 }
 0x5e9   : > { %v7278_v5 = vpop.eup %7277  ;;  %v6159_v50 = vadd.f32 1.0, %v7276_v1 }
 0x5ea   : > { %v7280_v16 = vpop.eup %7279  ;;  %7293 = vrcp.f32 %v6154_v10  ;;  %v6157_v38 = vadd.f32 1.0, %v7278_v5 }
 0x5eb   : > { %v7282_v43 = vpop.eup %7281  ;;  %7295 = vrcp.f32 %v6159_v50  ;;  %v6160_v17 = vadd.f32 1.0, %v7280_v16 }
 0x5ec   : > { %v7284_v19 = vpop.eup %7283  ;;  %v6248_v40 = vsel %vm6032_vm5, %v10646_v33, %v7282_v43  ;;  %7297 = vrcp.f32 %v6157_v38 }
 0x5ed   : > { %v7286_v4 = vpop.eup %7285  ;;  %6281 = vst.msk [vmem:[%s10581_s18 + $0xb8] sm:$0xff] %vm6257_vm6, %v6248_v40  ;;  %7299 = vrcp.f32 %v6160_v17  ;;  %v6158_v44 = vadd.f32 1.0, %v7284_v19 }
 0x5ee   : > { %v6246_v29 = vsel %vm6032_vm5, %v10657_v13, %v7286_v4  ;;  %v7288_v26 = vpop.eup %7287 }
 0x5ef   : > { %6279 = vst.msk [vmem:[%s10581_s18 + $0xa8] sm:$0xff] %vm6257_vm6, %v6246_v29  ;;  %7301 = vrcp.f32 %v6158_v44  ;;  %v6251_v33 = vsel %vm6032_vm5, %v10662_v39, %v7288_v26 }
 0x5f0   : > { %v7290_v9 = vpop.eup %7289  ;;  %6284 = vst.msk [vmem:[%s10581_s18 + $0xd0] sm:$0xff] %vm6257_vm6, %v6251_v33 }
 0x5f1   : > { %v6249_v61 = vsel %vm6032_vm5, %v10671_v0, %v7290_v9 }
 0x5f2   : > { %6282 = vst.msk [vmem:[%s10581_s18 + $0xc0] sm:$0xff] %vm6257_vm6, %v6249_v61 }
 0x5f5   : > { %v7292_v13 = vpop.eup %7291 }
 0x5f6   : > { %v6252_v25 = vsel %vm6032_vm5, %v10684_v42, %v7292_v13 }
 0x5f7   : > { %v7294_v28 = vpop.eup %7293  ;;  %6285 = vst.msk [vmem:[%s10581_s18 + $0xd8] sm:$0xff] %vm6257_vm6, %v6252_v25 }
 0x5f8   : > { %v7296_v39 = vpop.eup %7295  ;;  %v6250_v30 = vsel %vm6032_vm5, %v10689_v47, %v7294_v28 }
 0x5f9   : > { %v7298_v60 = vpop.eup %7297  ;;  %6283 = vst.msk [vmem:[%s10581_s18 + $0xc8] sm:$0xff] %vm6257_vm6, %v6250_v30  ;;  %v6255_v0 = vsel %vm6032_vm5, %v10698_v62, %v7296_v39 }
 0x5fa   : > { %v7300_v22 = vpop.eup %7299  ;;  %6288 = vst.msk [vmem:[%s10581_s18 + $0xf0] sm:$0xff] %vm6257_vm6, %v6255_v0  ;;  %v6253_v42 = vsel %vm6032_vm5, %v10709_v23, %v7298_v60 }
 0x5fb   : > { %6286 = vst.msk [vmem:[%s10581_s18 + $0xe0] sm:$0xff] %vm6257_vm6, %v6253_v42  ;;  %v6256_v47 = vsel %vm6032_vm5, %v10711_v55, %v7300_v22 }
 0x5fc   : > { %v7302_v58 = vpop.eup %7301  ;;  %6289 = vst.msk [vmem:[%s10581_s18 + $0xf8] sm:$0xff] %vm6257_vm6, %v6256_v47 }
 0x5fd   : > { %v6254_v62 = vsel %vm6032_vm5, %v10720_v52, %v7302_v58 }
 0x5fe   : > { %6287 = vst.msk [vmem:[%s10581_s18 + $0xe8] sm:$0xff] %vm6257_vm6, %v6254_v62 }
 0x5ff PF: > { %s17_s26 = sadd.s32 1, %s7327_s26   ;;  %s10920_s24 = smov %s7323_s25 }
 0x600   : > { %p14_p5 = scmp.ge.s32.totalorder %s17_s26, 4   ;;  %s10921_s25 = smov %s10923_s27 }
 0x602   :  { %16 = sbr.rel (!%p14_p5) target bundleno = 2 (0x2), region = 79 }

</bundles_post_ra>
